<compile_context>
chip_gen: v7x
topology: tpu7x:2x2x1
jax: 0.10.0
libtpu: 0.0.40
codegen_flags: <defaults>
</compile_context>

<pallas_src>
import functools

import numpy as np
import jax
import jax.numpy as jnp
from jax.experimental import pallas as pl
from jax.experimental.pallas import tpu as pltpu


# -----------------------------------------------------------------------------
# Single fused Pallas kernel
# -----------------------------------------------------------------------------
def _unet_kernel(x_ref, w_ref, b_ref, e0_ref, e1_ref, o_ref, pool_ref, *,
                 L, steps, w_meta, b_meta):
    w_it = iter(w_meta)
    b_ctr = [0]

    def next_w():
        off, r, c = next(w_it)
        return w_ref[off:off + r, :c]                   # bf16 (r, c)

    def next_b():
        i = b_ctr[0]
        b_ctr[0] += 1
        return b_ref[i:i + 1, :b_meta[i]]               # f32 (1, c)

    def im2row(h, Ls):
        # h: (M, Cin) f32 folded over the batch block; Ls = per-sample length.
        M, C = h.shape
        z = jnp.zeros((1, C), jnp.float32)
        prv = jnp.concatenate([z, h[:-1]], axis=0)      # row l <- h[l-1]
        nxt = jnp.concatenate([h[1:], z], axis=0)       # row l <- h[l+1]
        nb = M // Ls
        if nb > 1:
            # zero the taps that would leak across sample boundaries
            r = jax.lax.broadcasted_iota(jnp.int32, (M, 1), 0)
            first = functools.reduce(jnp.logical_or,
                                     [r == s * Ls for s in range(nb)])
            last = functools.reduce(jnp.logical_or,
                                    [r == (s * Ls + Ls - 1) for s in range(nb)])
            prv = jnp.where(first, 0.0, prv)
            nxt = jnp.where(last, 0.0, nxt)
        return jnp.concatenate([prv.astype(jnp.bfloat16),
                                h.astype(jnp.bfloat16),
                                nxt.astype(jnp.bfloat16)], axis=1)   # (M, 3C)

    def conv_k3(h, Ls, W, b):
        return jnp.dot(im2row(h, Ls), W,
                       preferred_element_type=jnp.float32) + b

    def relu(v):
        return jnp.maximum(v, 0.0)

    def maxpool2(h):
        # (M, C) -> (M//2, C): VMEM scratch + two strided reads (no matmuls).
        M, C = h.shape
        pool_ref[0:M, 0:C] = h
        ev = pool_ref[pl.ds(0, M // 2, stride=2), 0:C]
        od = pool_ref[pl.ds(1, M // 2, stride=2), 0:C]
        return jnp.maximum(ev, od)

    def interleave2(y0, y1):
        # out[2l] = y0[l], out[2l+1] = y1[l] via precomputed bf16 0/1 matrices.
        M, C = y0.shape
        E0 = e0_ref[0:2 * M, 0:M]
        E1 = e1_ref[0:2 * M, 0:M]
        return (jnp.dot(E0, y0.astype(jnp.bfloat16),
                        preferred_element_type=jnp.float32)
                + jnp.dot(E1, y1.astype(jnp.bfloat16),
                          preferred_element_type=jnp.float32))

    # ------------------------------ forward -------------------------------
    h = x_ref[...]                                  # (bb*L, Cin) f32
    Ls = L
    skips = []
    for _ in range(steps):                          # down path
        h = relu(conv_k3(h, Ls, next_w(), next_b()))
        h = relu(conv_k3(h, Ls, next_w(), next_b()))
        skips.append((h, Ls))
        h = maxpool2(h)
        Ls //= 2

    h = relu(conv_k3(h, Ls, next_w(), next_b()))    # bottleneck
    h = relu(conv_k3(h, Ls, next_w(), next_b()))

    for d, Ls_d in skips[::-1]:                     # up path
        T0, T1 = next_w(), next_w()
        bt = next_b()
        hb = h.astype(jnp.bfloat16)
        y0 = jnp.dot(hb, T0, preferred_element_type=jnp.float32)
        y1 = jnp.dot(hb, T1, preferred_element_type=jnp.float32)
        u = interleave2(y0, y1) + bt                # ConvTranspose1d(k=2, s=2)
        Ls = Ls_d
        # skip concat avoided: conv1 weight split into W_u / W_d halves
        Wu, Wd, b1 = next_w(), next_w(), next_b()
        h = relu(jnp.dot(im2row(u, Ls), Wu, preferred_element_type=jnp.float32)
                 + jnp.dot(im2row(d, Ls), Wd, preferred_element_type=jnp.float32)
                 + b1)
        h = relu(conv_k3(h, Ls, next_w(), next_b()))

    Wo, bo = next_w(), next_b()                     # 1x1 output conv, no ReLU
    out = jnp.dot(h.astype(jnp.bfloat16), Wo,
                  preferred_element_type=jnp.float32) + bo
    o_ref[...] = out.astype(o_ref.dtype)


# -----------------------------------------------------------------------------
# One-time weight packing (outside the jitted forward): one bf16 weight slab +
# one f32 bias slab + static (offset, rows, cols) metadata.
# -----------------------------------------------------------------------------
def pack_params(params):
    w_list, b_list = [], []

    def im2row_w(w):                 # (Cout, Cin, K) -> (K*Cin, Cout)
        w = np.asarray(w, np.float32)
        Cout, Cin, K = w.shape
        return np.transpose(w, (2, 1, 0)).reshape(K * Cin, Cout)

    def add_conv(w, b):
        w_list.append(im2row_w(w))
        b_list.append(np.asarray(b, np.float32))

    for p in params["down"]:
        add_conv(p["w1"], p["b1"])
        add_conv(p["w2"], p["b2"])
    p = params["bottleneck"]
    add_conv(p["w1"], p["b1"])
    add_conv(p["w2"], p["b2"])
    for p in params["up"]:
        wt = np.asarray(p["wt"], np.float32)        # (Cin, Cout, 2)
        w_list.append(wt[:, :, 0])
        w_list.append(wt[:, :, 1])
        b_list.append(np.asarray(p["bt"], np.float32))
        w1 = np.asarray(p["w1"], np.float32)        # (Cout, 2*half, 3)
        half = w1.shape[1] // 2
        w_list.append(im2row_w(w1[:, :half, :]))    # acts on upsampled u
        w_list.append(im2row_w(w1[:, half:, :]))    # acts on skip d
        b_list.append(np.asarray(p["b1"], np.float32))
        add_conv(p["w2"], p["b2"])
    add_conv(params["out_w"], params["out_b"])

    cmax = max(w.shape[1] for w in w_list)
    cpad = ((cmax + 127) // 128) * 128
    blocks, w_meta, off = [], [], 0
    for W in w_list:
        r, c = W.shape
        rp = ((r + 15) // 16) * 16                  # 16-row align for bf16
        Wp = np.zeros((rp, cpad), np.float32)
        Wp[:r, :c] = W
        blocks.append(Wp)
        w_meta.append((int(off), int(r), int(c)))
        off += rp
    w_flat = jnp.asarray(np.concatenate(blocks, axis=0), dtype=jnp.bfloat16)

    b_rows = np.zeros((len(b_list), cpad), np.float32)
    b_meta = []
    for i, b in enumerate(b_list):
        b_rows[i, :b.shape[0]] = b
        b_meta.append(int(b.shape[0]))
    b_flat = jnp.asarray(b_rows)
    return w_flat, b_flat, tuple(w_meta), tuple(b_meta)


# -----------------------------------------------------------------------------
# Forward: a single pallas_call; grid over batch blocks ("parallel").
# -----------------------------------------------------------------------------
@functools.partial(jax.jit, static_argnames=("steps", "w_meta", "b_meta"))
def unet_forward(w_flat, b_flat, x, *, steps, w_meta, b_meta):
    B, C, L = x.shape
    assert L % (1 << steps) == 0, "L must be divisible by 2**steps"

    # Fold batch into the matmul M dimension; target ~128 rows per block.
    bb = min(B, max(1, 128 // L))
    while B % bb:
        bb -= 1
    n_blocks = B // bb
    N = bb * L

    # (B, C, L) -> folded (B*L, C): channels on lanes.
    xt = jnp.transpose(x, (0, 2, 1)).reshape(B * L, C)

    # Precomputed stride-2 interleave selection constants (bf16, built once).
    rr = jnp.arange(N)[:, None]
    cc = jnp.arange(N // 2)[None, :]
    e0 = (rr == 2 * cc).astype(jnp.bfloat16)
    e1 = (rr == 2 * cc + 1).astype(jnp.bfloat16)

    c_scr = max(c for (_, _, c) in w_meta)          # widest channel count

    # VMEM budget from the actual footprint (headroom; <=64MiB so v7x fits).
    bytes_w = int(np.prod(w_flat.shape)) * 2
    bytes_b = int(np.prod(b_flat.shape)) * 4
    bytes_sel = 2 * N * (N // 2) * 2
    bytes_io = 2 * 2 * N * C * 4
    bytes_scr = N * c_scr * 4
    e_ch = max(w_meta[0][2], 8)
    bytes_act = (steps + 10) * N * e_ch * 4 * 3     # skips + im2row transients
    vmem_limit = int(min(64 << 20,
                         max(32 << 20,
                             2 * (bytes_w + bytes_b + bytes_sel + bytes_io
                                  + bytes_scr + bytes_act))))

    kern = functools.partial(_unet_kernel, L=L, steps=steps,
                             w_meta=w_meta, b_meta=b_meta)
    vmem_full = pl.BlockSpec(memory_space=pltpu.MemorySpace.VMEM)
    out2d = pl.pallas_call(
        kern,
        out_shape=jax.ShapeDtypeStruct((B * L, C), jnp.float32),
        grid=(n_blocks,),
        in_specs=[
            pl.BlockSpec((N, C), lambda i: (i, 0)),   # activations (blocked)
            vmem_full,                                # packed weights (bf16)
            vmem_full,                                # packed biases (f32)
            vmem_full,                                # interleave E0
            vmem_full,                                # interleave E1
        ],
        out_specs=pl.BlockSpec((N, C), lambda i: (i, 0)),
        scratch_shapes=[pltpu.VMEM((N, c_scr), jnp.float32)],
        compiler_params=pltpu.CompilerParams(
            dimension_semantics=("parallel",),
            vmem_limit_bytes=vmem_limit),
    )(xt, w_flat, b_flat, e0, e1)
    # TODO(synk): output stays (B*L, C) in-kernel (lane dim = in_channels);
    # the lane-dense (B, C, L) store is left to this cheap XLA transpose.
    return out2d.reshape(B, L, C).transpose(0, 2, 1)


# -----------------------------------------------------------------------------
# Deterministic parameter init (PyTorch-style uniform bounds, PyTorch layouts)
# -----------------------------------------------------------------------------
def _init_conv(key, cout, cin, k):
    k1, k2 = jax.random.split(key)
    bound = 1.0 / np.sqrt(cin * k)
    w = jax.random.uniform(k1, (cout, cin, k), jnp.float32, -bound, bound)
    b = jax.random.uniform(k2, (cout,), jnp.float32, -bound, bound)
    return w, b


def _init_conv_transpose(key, cin, cout, k):
    k1, k2 = jax.random.split(key)
    bound = 1.0 / np.sqrt(cout * k)
    w = jax.random.uniform(k1, (cin, cout, k), jnp.float32, -bound, bound)
    b = jax.random.uniform(k2, (cout,), jnp.float32, -bound, bound)
    return w, b


def init_params(key, in_channels, expanded, steps_num, kernel_size=3):
    keys = list(jax.random.split(key, 4 * steps_num + 8))
    ki = iter(keys)
    params = {"down": [], "up": []}
    for i in range(steps_num):
        in_ch = in_channels if i == 0 else expanded * 2 ** (i - 1)
        out_ch = expanded if i == 0 else in_ch * 2
        w1, b1 = _init_conv(next(ki), out_ch, in_ch, kernel_size)
        w2, b2 = _init_conv(next(ki), out_ch, out_ch, kernel_size)
        params["down"].append({"w1": w1, "b1": b1, "w2": w2, "b2": b2})
    ch = expanded * 2 ** (steps_num - 1)
    w1, b1 = _init_conv(next(ki), ch * 2, ch, kernel_size)
    w2, b2 = _init_conv(next(ki), ch * 2, ch * 2, kernel_size)
    params["bottleneck"] = {"w1": w1, "b1": b1, "w2": w2, "b2": b2}
    for i in range(steps_num, 0, -1):
        in_ch = expanded * 2 ** i
        out_ch = in_ch // 2
        wt, bt = _init_conv_transpose(next(ki), in_ch, in_ch // 2, 2)
        w1, b1 = _init_conv(next(ki), out_ch, in_ch, kernel_size)
        w2, b2 = _init_conv(next(ki), out_ch, out_ch, kernel_size)
        params["up"].append({"wt": wt, "bt": bt,
                             "w1": w1, "b1": b1, "w2": w2, "b2": b2})
    ow, ob = _init_conv(next(ki), in_channels, expanded, 1)
    params["out_w"], params["out_b"] = ow, ob
    return params


# -----------------------------------------------------------------------------
# Pure-JAX reference (matches the PyTorch semantics; f32)
# -----------------------------------------------------------------------------
def _ref_conv1d(x, w, b, padding, relu):
    xp = jnp.pad(x, ((0, 0), (0, 0), (padding, padding)))
    K = w.shape[-1]
    L = x.shape[-1] + 2 * padding - (K - 1)
    out = b[None, :, None]
    for k in range(K):
        out = out + jnp.einsum("oi,bil->bol", w[:, :, k], xp[:, :, k:k + L],
                               precision=jax.lax.Precision.HIGHEST)
    return jnp.maximum(out, 0.0) if relu else out


def _ref_maxpool(x):
    B, C, L = x.shape
    return x.reshape(B, C, L // 2, 2).max(-1)


def _ref_conv_transpose(x, w, b):
    B, Cin, L = x.shape
    Cout = w.shape[1]
    ys = [jnp.einsum("io,bil->bol", w[:, :, k], x,
                     precision=jax.lax.Precision.HIGHEST) + b[None, :, None]
          for k in range(2)]
    return jnp.stack(ys, axis=-1).reshape(B, Cout, 2 * L)


def _ref_double_conv(x, p):
    x = _ref_conv1d(x, p["w1"], p["b1"], 1, True)
    return _ref_conv1d(x, p["w2"], p["b2"], 1, True)


def ref_forward(params, x):
    down_list, h = [], x
    for p in params["down"]:
        d = _ref_double_conv(h, p)
        down_list.append(d)
        h = _ref_maxpool(d)
    h = _ref_double_conv(h, params["bottleneck"])
    for p, d in zip(params["up"], down_list[::-1]):
        u = _ref_conv_transpose(h, p["wt"], p["bt"])
        h = jnp.concatenate([u, d], axis=-2)
        h = _ref_double_conv(h, p)
    return _ref_conv1d(h, params["out_w"], params["out_b"], 0, False)


# -----------------------------------------------------------------------------
if __name__ == "__main__":
    B, C_IN, EXPANDED, STEPS, L = 2, 4, 8, 4, 32   # L divisible by 2**STEPS

    key = jax.random.PRNGKey(0)
    kx, kp = jax.random.split(key)
    x = jax.random.normal(kx, (B, C_IN, L), dtype=jnp.float32)
    params = init_params(kp, C_IN, EXPANDED, STEPS, kernel_size=3)
    w_flat, b_flat, w_meta, b_meta = pack_params(params)   # one-time packing

    out = unet_forward(w_flat, b_flat, x, steps=STEPS,
                       w_meta=w_meta, b_meta=b_meta)
    out = jax.block_until_ready(out)
    assert out.shape == (B, C_IN, L), out.shape

    ref = jax.block_until_ready(ref_forward(params, x))
    # bf16 MXU operands with f32 accumulation vs. an f32 HIGHEST reference.
    np.testing.assert_allclose(np.asarray(out), np.asarray(ref),
                               rtol=5e-2, atol=5e-2)

    print("KERNEL_OK")
</pallas_src>

<mosaic_0001>
module attributes {stable_mosaic.version = 11 : i64} {
  func.func @_unet_kernel(%arg0: i32, %arg1: memref<64x4xf32, #tpu.memory_space<vmem>>, %arg2: memref<2736x128xbf16, #tpu.memory_space<vmem>>, %arg3: memref<23x128xf32, #tpu.memory_space<vmem>>, %arg4: memref<64x32xbf16, #tpu.memory_space<vmem>>, %arg5: memref<64x32xbf16, #tpu.memory_space<vmem>>, %arg6: memref<64x4xf32, #tpu.memory_space<vmem>>, %arg7: memref<64x128xf32, #tpu.memory_space<vmem>>) attributes {dimension_semantics = [#tpu.dimension_semantics<parallel>], iteration_bounds = array<i64: 1>, scalar_prefetch = 0 : i64, scratch_operands = 1 : i64, tpu.core_type = #tpu.core_type<tc>, window_params = [{transform_indices = @transform_0, window_bounds = array<i64: 64, 4>}, {pipeline_mode = #tpu.pipeline_mode<synchronous>, transform_indices = @transform_1, window_bounds = array<i64: 2736, 128>}, {pipeline_mode = #tpu.pipeline_mode<synchronous>, transform_indices = @transform_2, window_bounds = array<i64: 23, 128>}, {pipeline_mode = #tpu.pipeline_mode<synchronous>, transform_indices = @transform_3, window_bounds = array<i64: 64, 32>}, {pipeline_mode = #tpu.pipeline_mode<synchronous>, transform_indices = @transform_4, window_bounds = array<i64: 64, 32>}, {transform_indices = @transform_5, window_bounds = array<i64: 64, 4>}]} {
    %c0 = arith.constant 0 : index
    %c0_0 = arith.constant 0 : index
    %0 = vector.load %arg1[%c0, %c0_0] : memref<64x4xf32, #tpu.memory_space<vmem>>, vector<64x4xf32>
    %c0_1 = arith.constant 0 : index
    %c0_2 = arith.constant 0 : index
    %1 = vector.load %arg2[%c0_1, %c0_2] : memref<2736x128xbf16, #tpu.memory_space<vmem>>, vector<12x8xbf16>
    %c0_3 = arith.constant 0 : index
    %c0_4 = arith.constant 0 : index
    %2 = vector.load %arg3[%c0_3, %c0_4] : memref<23x128xf32, #tpu.memory_space<vmem>>, vector<1x8xf32>
    %cst = arith.constant 0.000000e+00 : f32
    %3 = vector.broadcast %cst : f32 to vector<1x4xf32>
    %4 = vector.extract_strided_slice %0 {offsets = [0, 0], sizes = [63, 4], strides = [1, 1]} : vector<64x4xf32> to vector<63x4xf32>
    %5 = tpu.concatenate %3, %4 in 0 : vector<1x4xf32>, vector<63x4xf32> -> vector<64x4xf32>
    %6 = vector.extract_strided_slice %0 {offsets = [1, 0], sizes = [63, 4], strides = [1, 1]} : vector<64x4xf32> to vector<63x4xf32>
    %7 = tpu.concatenate %6, %3 in 0 : vector<63x4xf32>, vector<1x4xf32> -> vector<64x4xf32>
    %8 = tpu.iota {dimensions = array<i32: 0>} : vector<64x1xi32>
    %c0_i32 = arith.constant 0 : i32
    %9 = vector.broadcast %c0_i32 : i32 to vector<64x1xi32>
    %10 = arith.cmpi eq, %8, %9 : vector<64x1xi32>
    %c32_i32 = arith.constant 32 : i32
    %11 = vector.broadcast %c32_i32 : i32 to vector<64x1xi32>
    %12 = arith.cmpi eq, %8, %11 : vector<64x1xi32>
    %13 = arith.ori %10, %12 : vector<64x1xi1>
    %c31_i32 = arith.constant 31 : i32
    %14 = vector.broadcast %c31_i32 : i32 to vector<64x1xi32>
    %15 = arith.cmpi eq, %8, %14 : vector<64x1xi32>
    %c63_i32 = arith.constant 63 : i32
    %16 = vector.broadcast %c63_i32 : i32 to vector<64x1xi32>
    %17 = arith.cmpi eq, %8, %16 : vector<64x1xi32>
    %18 = arith.ori %15, %17 : vector<64x1xi1>
    %cst_5 = arith.constant 0.000000e+00 : f32
    %19 = vector.shape_cast %13 : vector<64x1xi1> to vector<64x1xi1>
    %20 = vector.broadcast %19 : vector<64x1xi1> to vector<64x4xi1>
    %21 = vector.broadcast %cst_5 : f32 to vector<64x4xf32>
    %22 = arith.select %20, %21, %5 : vector<64x4xi1>, vector<64x4xf32>
    %cst_6 = arith.constant 0.000000e+00 : f32
    %23 = vector.shape_cast %18 : vector<64x1xi1> to vector<64x1xi1>
    %24 = vector.broadcast %23 : vector<64x1xi1> to vector<64x4xi1>
    %25 = vector.broadcast %cst_6 : f32 to vector<64x4xf32>
    %26 = arith.select %24, %25, %7 : vector<64x4xi1>, vector<64x4xf32>
    %27 = arith.truncf %22 : vector<64x4xf32> to vector<64x4xbf16>
    %28 = arith.truncf %0 : vector<64x4xf32> to vector<64x4xbf16>
    %29 = arith.truncf %26 : vector<64x4xf32> to vector<64x4xbf16>
    %30 = tpu.concatenate %27, %28, %29 in 1 : vector<64x4xbf16>, vector<64x4xbf16>, vector<64x4xbf16> -> vector<64x12xbf16>
    %cst_7 = arith.constant dense<0.000000e+00> : vector<64x8xf32>
    %31 = tpu.matmul %30, %1, %cst_7 {dimension_numbers = #tpu.dot_dimension_numbers<[1], [0], [0], [1], [0, 0, 1, 1], [], []>} : vector<64x12xbf16>, vector<12x8xbf16>, vector<64x8xf32> -> vector<64x8xf32>
    %32 = vector.broadcast %2 : vector<1x8xf32> to vector<64x8xf32>
    %33 = arith.addf %31, %32 : vector<64x8xf32>
    %cst_8 = arith.constant 0.000000e+00 : f32
    %34 = vector.broadcast %cst_8 : f32 to vector<64x8xf32>
    %35 = arith.maximumf %33, %34 : vector<64x8xf32>
    %c16 = arith.constant 16 : index
    %c0_9 = arith.constant 0 : index
    %36 = vector.load %arg2[%c16, %c0_9] : memref<2736x128xbf16, #tpu.memory_space<vmem>>, vector<24x8xbf16>
    %c1 = arith.constant 1 : index
    %c0_10 = arith.constant 0 : index
    %37 = vector.load %arg3[%c1, %c0_10] : memref<23x128xf32, #tpu.memory_space<vmem>>, vector<1x8xf32>
    %cst_11 = arith.constant 0.000000e+00 : f32
    %38 = vector.broadcast %cst_11 : f32 to vector<1x8xf32>
    %39 = vector.extract_strided_slice %35 {offsets = [0, 0], sizes = [63, 8], strides = [1, 1]} : vector<64x8xf32> to vector<63x8xf32>
    %40 = tpu.concatenate %38, %39 in 0 : vector<1x8xf32>, vector<63x8xf32> -> vector<64x8xf32>
    %41 = vector.extract_strided_slice %35 {offsets = [1, 0], sizes = [63, 8], strides = [1, 1]} : vector<64x8xf32> to vector<63x8xf32>
    %42 = tpu.concatenate %41, %38 in 0 : vector<63x8xf32>, vector<1x8xf32> -> vector<64x8xf32>
    %43 = tpu.iota {dimensions = array<i32: 0>} : vector<64x1xi32>
    %c0_i32_12 = arith.constant 0 : i32
    %44 = vector.broadcast %c0_i32_12 : i32 to vector<64x1xi32>
    %45 = arith.cmpi eq, %43, %44 : vector<64x1xi32>
    %c32_i32_13 = arith.constant 32 : i32
    %46 = vector.broadcast %c32_i32_13 : i32 to vector<64x1xi32>
    %47 = arith.cmpi eq, %43, %46 : vector<64x1xi32>
    %48 = arith.ori %45, %47 : vector<64x1xi1>
    %c31_i32_14 = arith.constant 31 : i32
    %49 = vector.broadcast %c31_i32_14 : i32 to vector<64x1xi32>
    %50 = arith.cmpi eq, %43, %49 : vector<64x1xi32>
    %c63_i32_15 = arith.constant 63 : i32
    %51 = vector.broadcast %c63_i32_15 : i32 to vector<64x1xi32>
    %52 = arith.cmpi eq, %43, %51 : vector<64x1xi32>
    %53 = arith.ori %50, %52 : vector<64x1xi1>
    %cst_16 = arith.constant 0.000000e+00 : f32
    %54 = vector.shape_cast %48 : vector<64x1xi1> to vector<64x1xi1>
    %55 = vector.broadcast %54 : vector<64x1xi1> to vector<64x8xi1>
    %56 = vector.broadcast %cst_16 : f32 to vector<64x8xf32>
    %57 = arith.select %55, %56, %40 : vector<64x8xi1>, vector<64x8xf32>
    %cst_17 = arith.constant 0.000000e+00 : f32
    %58 = vector.shape_cast %53 : vector<64x1xi1> to vector<64x1xi1>
    %59 = vector.broadcast %58 : vector<64x1xi1> to vector<64x8xi1>
    %60 = vector.broadcast %cst_17 : f32 to vector<64x8xf32>
    %61 = arith.select %59, %60, %42 : vector<64x8xi1>, vector<64x8xf32>
    %62 = arith.truncf %57 : vector<64x8xf32> to vector<64x8xbf16>
    %63 = arith.truncf %35 : vector<64x8xf32> to vector<64x8xbf16>
    %64 = arith.truncf %61 : vector<64x8xf32> to vector<64x8xbf16>
    %65 = tpu.concatenate %62, %63, %64 in 1 : vector<64x8xbf16>, vector<64x8xbf16>, vector<64x8xbf16> -> vector<64x24xbf16>
    %cst_18 = arith.constant dense<0.000000e+00> : vector<64x8xf32>
    %66 = tpu.matmul %65, %36, %cst_18 {dimension_numbers = #tpu.dot_dimension_numbers<[1], [0], [0], [1], [0, 0, 1, 1], [], []>} : vector<64x24xbf16>, vector<24x8xbf16>, vector<64x8xf32> -> vector<64x8xf32>
    %67 = vector.broadcast %37 : vector<1x8xf32> to vector<64x8xf32>
    %68 = arith.addf %66, %67 : vector<64x8xf32>
    %cst_19 = arith.constant 0.000000e+00 : f32
    %69 = vector.broadcast %cst_19 : f32 to vector<64x8xf32>
    %70 = arith.maximumf %68, %69 : vector<64x8xf32>
    %c0_20 = arith.constant 0 : index
    %c0_21 = arith.constant 0 : index
    %71 = vector.load %arg7[%c0_20, %c0_21] : memref<64x128xf32, #tpu.memory_space<vmem>>, vector<64x8xf32>
    tpu.vector_store %arg7[%c0_20, %c0_21], %70 {strides = array<i32>} : memref<64x128xf32, #tpu.memory_space<vmem>>, vector<64x8xf32>,
    %c0_22 = arith.constant 0 : index
    %c0_23 = arith.constant 0 : index
    %72 = tpu.strided_load %arg7[%c0_22, %c0_23] {strides = array<i32: 2, 1>} : memref<64x128xf32, #tpu.memory_space<vmem>>, vector<32x8xf32>
    %c1_24 = arith.constant 1 : index
    %c0_25 = arith.constant 0 : index
    %73 = tpu.strided_load %arg7[%c1_24, %c0_25] {strides = array<i32: 2, 1>} : memref<64x128xf32, #tpu.memory_space<vmem>>, vector<32x8xf32>
    %74 = arith.maximumf %72, %73 : vector<32x8xf32>
    %c48 = arith.constant 48 : index
    %c0_26 = arith.constant 0 : index
    %75 = vector.load %arg2[%c48, %c0_26] : memref<2736x128xbf16, #tpu.memory_space<vmem>>, vector<24x16xbf16>
    %c2 = arith.constant 2 : index
    %c0_27 = arith.constant 0 : index
    %76 = vector.load %arg3[%c2, %c0_27] : memref<23x128xf32, #tpu.memory_space<vmem>>, vector<1x16xf32>
    %cst_28 = arith.constant 0.000000e+00 : f32
    %77 = vector.broadcast %cst_28 : f32 to vector<1x8xf32>
    %78 = vector.extract_strided_slice %74 {offsets = [0, 0], sizes = [31, 8], strides = [1, 1]} : vector<32x8xf32> to vector<31x8xf32>
    %79 = tpu.concatenate %77, %78 in 0 : vector<1x8xf32>, vector<31x8xf32> -> vector<32x8xf32>
    %80 = vector.extract_strided_slice %74 {offsets = [1, 0], sizes = [31, 8], strides = [1, 1]} : vector<32x8xf32> to vector<31x8xf32>
    %81 = tpu.concatenate %80, %77 in 0 : vector<31x8xf32>, vector<1x8xf32> -> vector<32x8xf32>
    %82 = tpu.iota {dimensions = array<i32: 0>} : vector<32x1xi32>
    %c0_i32_29 = arith.constant 0 : i32
    %83 = vector.broadcast %c0_i32_29 : i32 to vector<32x1xi32>
    %84 = arith.cmpi eq, %82, %83 : vector<32x1xi32>
    %c16_i32 = arith.constant 16 : i32
    %85 = vector.broadcast %c16_i32 : i32 to vector<32x1xi32>
    %86 = arith.cmpi eq, %82, %85 : vector<32x1xi32>
    %87 = arith.ori %84, %86 : vector<32x1xi1>
    %c15_i32 = arith.constant 15 : i32
    %88 = vector.broadcast %c15_i32 : i32 to vector<32x1xi32>
    %89 = arith.cmpi eq, %82, %88 : vector<32x1xi32>
    %c31_i32_30 = arith.constant 31 : i32
    %90 = vector.broadcast %c31_i32_30 : i32 to vector<32x1xi32>
    %91 = arith.cmpi eq, %82, %90 : vector<32x1xi32>
    %92 = arith.ori %89, %91 : vector<32x1xi1>
    %cst_31 = arith.constant 0.000000e+00 : f32
    %93 = vector.shape_cast %87 : vector<32x1xi1> to vector<32x1xi1>
    %94 = vector.broadcast %93 : vector<32x1xi1> to vector<32x8xi1>
    %95 = vector.broadcast %cst_31 : f32 to vector<32x8xf32>
    %96 = arith.select %94, %95, %79 : vector<32x8xi1>, vector<32x8xf32>
    %cst_32 = arith.constant 0.000000e+00 : f32
    %97 = vector.shape_cast %92 : vector<32x1xi1> to vector<32x1xi1>
    %98 = vector.broadcast %97 : vector<32x1xi1> to vector<32x8xi1>
    %99 = vector.broadcast %cst_32 : f32 to vector<32x8xf32>
    %100 = arith.select %98, %99, %81 : vector<32x8xi1>, vector<32x8xf32>
    %101 = arith.truncf %96 : vector<32x8xf32> to vector<32x8xbf16>
    %102 = arith.truncf %74 : vector<32x8xf32> to vector<32x8xbf16>
    %103 = arith.truncf %100 : vector<32x8xf32> to vector<32x8xbf16>
    %104 = tpu.concatenate %101, %102, %103 in 1 : vector<32x8xbf16>, vector<32x8xbf16>, vector<32x8xbf16> -> vector<32x24xbf16>
    %cst_33 = arith.constant dense<0.000000e+00> : vector<32x16xf32>
    %105 = tpu.matmul %104, %75, %cst_33 {dimension_numbers = #tpu.dot_dimension_numbers<[1], [0], [0], [1], [0, 0, 1, 1], [], []>} : vector<32x24xbf16>, vector<24x16xbf16>, vector<32x16xf32> -> vector<32x16xf32>
    %106 = vector.broadcast %76 : vector<1x16xf32> to vector<32x16xf32>
    %107 = arith.addf %105, %106 : vector<32x16xf32>
    %cst_34 = arith.constant 0.000000e+00 : f32
    %108 = vector.broadcast %cst_34 : f32 to vector<32x16xf32>
    %109 = arith.maximumf %107, %108 : vector<32x16xf32>
    %c80 = arith.constant 80 : index
    %c0_35 = arith.constant 0 : index
    %110 = vector.load %arg2[%c80, %c0_35] : memref<2736x128xbf16, #tpu.memory_space<vmem>>, vector<48x16xbf16>
    %c3 = arith.constant 3 : index
    %c0_36 = arith.constant 0 : index
    %111 = vector.load %arg3[%c3, %c0_36] : memref<23x128xf32, #tpu.memory_space<vmem>>, vector<1x16xf32>
    %cst_37 = arith.constant 0.000000e+00 : f32
    %112 = vector.broadcast %cst_37 : f32 to vector<1x16xf32>
    %113 = vector.extract_strided_slice %109 {offsets = [0, 0], sizes = [31, 16], strides = [1, 1]} : vector<32x16xf32> to vector<31x16xf32>
    %114 = tpu.concatenate %112, %113 in 0 : vector<1x16xf32>, vector<31x16xf32> -> vector<32x16xf32>
    %115 = vector.extract_strided_slice %109 {offsets = [1, 0], sizes = [31, 16], strides = [1, 1]} : vector<32x16xf32> to vector<31x16xf32>
    %116 = tpu.concatenate %115, %112 in 0 : vector<31x16xf32>, vector<1x16xf32> -> vector<32x16xf32>
    %117 = tpu.iota {dimensions = array<i32: 0>} : vector<32x1xi32>
    %c0_i32_38 = arith.constant 0 : i32
    %118 = vector.broadcast %c0_i32_38 : i32 to vector<32x1xi32>
    %119 = arith.cmpi eq, %117, %118 : vector<32x1xi32>
    %c16_i32_39 = arith.constant 16 : i32
    %120 = vector.broadcast %c16_i32_39 : i32 to vector<32x1xi32>
    %121 = arith.cmpi eq, %117, %120 : vector<32x1xi32>
    %122 = arith.ori %119, %121 : vector<32x1xi1>
    %c15_i32_40 = arith.constant 15 : i32
    %123 = vector.broadcast %c15_i32_40 : i32 to vector<32x1xi32>
    %124 = arith.cmpi eq, %117, %123 : vector<32x1xi32>
    %c31_i32_41 = arith.constant 31 : i32
    %125 = vector.broadcast %c31_i32_41 : i32 to vector<32x1xi32>
    %126 = arith.cmpi eq, %117, %125 : vector<32x1xi32>
    %127 = arith.ori %124, %126 : vector<32x1xi1>
    %cst_42 = arith.constant 0.000000e+00 : f32
    %128 = vector.shape_cast %122 : vector<32x1xi1> to vector<32x1xi1>
    %129 = vector.broadcast %128 : vector<32x1xi1> to vector<32x16xi1>
    %130 = vector.broadcast %cst_42 : f32 to vector<32x16xf32>
    %131 = arith.select %129, %130, %114 : vector<32x16xi1>, vector<32x16xf32>
    %cst_43 = arith.constant 0.000000e+00 : f32
    %132 = vector.shape_cast %127 : vector<32x1xi1> to vector<32x1xi1>
    %133 = vector.broadcast %132 : vector<32x1xi1> to vector<32x16xi1>
    %134 = vector.broadcast %cst_43 : f32 to vector<32x16xf32>
    %135 = arith.select %133, %134, %116 : vector<32x16xi1>, vector<32x16xf32>
    %136 = arith.truncf %131 : vector<32x16xf32> to vector<32x16xbf16>
    %137 = arith.truncf %109 : vector<32x16xf32> to vector<32x16xbf16>
    %138 = arith.truncf %135 : vector<32x16xf32> to vector<32x16xbf16>
    %139 = tpu.concatenate %136, %137, %138 in 1 : vector<32x16xbf16>, vector<32x16xbf16>, vector<32x16xbf16> -> vector<32x48xbf16>
    %cst_44 = arith.constant dense<0.000000e+00> : vector<32x16xf32>
    %140 = tpu.matmul %139, %110, %cst_44 {dimension_numbers = #tpu.dot_dimension_numbers<[1], [0], [0], [1], [0, 0, 1, 1], [], []>} : vector<32x48xbf16>, vector<48x16xbf16>, vector<32x16xf32> -> vector<32x16xf32>
    %141 = vector.broadcast %111 : vector<1x16xf32> to vector<32x16xf32>
    %142 = arith.addf %140, %141 : vector<32x16xf32>
    %cst_45 = arith.constant 0.000000e+00 : f32
    %143 = vector.broadcast %cst_45 : f32 to vector<32x16xf32>
    %144 = arith.maximumf %142, %143 : vector<32x16xf32>
    %c0_46 = arith.constant 0 : index
    %c0_47 = arith.constant 0 : index
    %145 = vector.load %arg7[%c0_46, %c0_47] : memref<64x128xf32, #tpu.memory_space<vmem>>, vector<32x16xf32>
    tpu.vector_store %arg7[%c0_46, %c0_47], %144 {strides = array<i32>} : memref<64x128xf32, #tpu.memory_space<vmem>>, vector<32x16xf32>,
    %c0_48 = arith.constant 0 : index
    %c0_49 = arith.constant 0 : index
    %146 = tpu.strided_load %arg7[%c0_48, %c0_49] {strides = array<i32: 2, 1>} : memref<64x128xf32, #tpu.memory_space<vmem>>, vector<16x16xf32>
    %c1_50 = arith.constant 1 : index
    %c0_51 = arith.constant 0 : index
    %147 = tpu.strided_load %arg7[%c1_50, %c0_51] {strides = array<i32: 2, 1>} : memref<64x128xf32, #tpu.memory_space<vmem>>, vector<16x16xf32>
    %148 = arith.maximumf %146, %147 : vector<16x16xf32>
    %c128 = arith.constant 128 : index
    %c0_52 = arith.constant 0 : index
    %149 = vector.load %arg2[%c128, %c0_52] : memref<2736x128xbf16, #tpu.memory_space<vmem>>, vector<48x32xbf16>
    %c4 = arith.constant 4 : index
    %c0_53 = arith.constant 0 : index
    %150 = vector.load %arg3[%c4, %c0_53] : memref<23x128xf32, #tpu.memory_space<vmem>>, vector<1x32xf32>
    %cst_54 = arith.constant 0.000000e+00 : f32
    %151 = vector.broadcast %cst_54 : f32 to vector<1x16xf32>
    %152 = vector.extract_strided_slice %148 {offsets = [0, 0], sizes = [15, 16], strides = [1, 1]} : vector<16x16xf32> to vector<15x16xf32>
    %153 = tpu.concatenate %151, %152 in 0 : vector<1x16xf32>, vector<15x16xf32> -> vector<16x16xf32>
    %154 = vector.extract_strided_slice %148 {offsets = [1, 0], sizes = [15, 16], strides = [1, 1]} : vector<16x16xf32> to vector<15x16xf32>
    %155 = tpu.concatenate %154, %151 in 0 : vector<15x16xf32>, vector<1x16xf32> -> vector<16x16xf32>
    %156 = tpu.iota {dimensions = array<i32: 0>} : vector<16x1xi32>
    %c0_i32_55 = arith.constant 0 : i32
    %157 = vector.broadcast %c0_i32_55 : i32 to vector<16x1xi32>
    %158 = arith.cmpi eq, %156, %157 : vector<16x1xi32>
    %c8_i32 = arith.constant 8 : i32
    %159 = vector.broadcast %c8_i32 : i32 to vector<16x1xi32>
    %160 = arith.cmpi eq, %156, %159 : vector<16x1xi32>
    %161 = arith.ori %158, %160 : vector<16x1xi1>
    %c7_i32 = arith.constant 7 : i32
    %162 = vector.broadcast %c7_i32 : i32 to vector<16x1xi32>
    %163 = arith.cmpi eq, %156, %162 : vector<16x1xi32>
    %c15_i32_56 = arith.constant 15 : i32
    %164 = vector.broadcast %c15_i32_56 : i32 to vector<16x1xi32>
    %165 = arith.cmpi eq, %156, %164 : vector<16x1xi32>
    %166 = arith.ori %163, %165 : vector<16x1xi1>
    %cst_57 = arith.constant 0.000000e+00 : f32
    %167 = vector.shape_cast %161 : vector<16x1xi1> to vector<16x1xi1>
    %168 = vector.broadcast %167 : vector<16x1xi1> to vector<16x16xi1>
    %169 = vector.broadcast %cst_57 : f32 to vector<16x16xf32>
    %170 = arith.select %168, %169, %153 : vector<16x16xi1>, vector<16x16xf32>
    %cst_58 = arith.constant 0.000000e+00 : f32
    %171 = vector.shape_cast %166 : vector<16x1xi1> to vector<16x1xi1>
    %172 = vector.broadcast %171 : vector<16x1xi1> to vector<16x16xi1>
    %173 = vector.broadcast %cst_58 : f32 to vector<16x16xf32>
    %174 = arith.select %172, %173, %155 : vector<16x16xi1>, vector<16x16xf32>
    %175 = arith.truncf %170 : vector<16x16xf32> to vector<16x16xbf16>
    %176 = arith.truncf %148 : vector<16x16xf32> to vector<16x16xbf16>
    %177 = arith.truncf %174 : vector<16x16xf32> to vector<16x16xbf16>
    %178 = tpu.concatenate %175, %176, %177 in 1 : vector<16x16xbf16>, vector<16x16xbf16>, vector<16x16xbf16> -> vector<16x48xbf16>
    %cst_59 = arith.constant dense<0.000000e+00> : vector<16x32xf32>
    %179 = tpu.matmul %178, %149, %cst_59 {dimension_numbers = #tpu.dot_dimension_numbers<[1], [0], [0], [1], [0, 0, 1, 1], [], []>} : vector<16x48xbf16>, vector<48x32xbf16>, vector<16x32xf32> -> vector<16x32xf32>
    %180 = vector.broadcast %150 : vector<1x32xf32> to vector<16x32xf32>
    %181 = arith.addf %179, %180 : vector<16x32xf32>
    %cst_60 = arith.constant 0.000000e+00 : f32
    %182 = vector.broadcast %cst_60 : f32 to vector<16x32xf32>
    %183 = arith.maximumf %181, %182 : vector<16x32xf32>
    %c176 = arith.constant 176 : index
    %c0_61 = arith.constant 0 : index
    %184 = vector.load %arg2[%c176, %c0_61] : memref<2736x128xbf16, #tpu.memory_space<vmem>>, vector<96x32xbf16>
    %c5 = arith.constant 5 : index
    %c0_62 = arith.constant 0 : index
    %185 = vector.load %arg3[%c5, %c0_62] : memref<23x128xf32, #tpu.memory_space<vmem>>, vector<1x32xf32>
    %cst_63 = arith.constant 0.000000e+00 : f32
    %186 = vector.broadcast %cst_63 : f32 to vector<1x32xf32>
    %187 = vector.extract_strided_slice %183 {offsets = [0, 0], sizes = [15, 32], strides = [1, 1]} : vector<16x32xf32> to vector<15x32xf32>
    %188 = tpu.concatenate %186, %187 in 0 : vector<1x32xf32>, vector<15x32xf32> -> vector<16x32xf32>
    %189 = vector.extract_strided_slice %183 {offsets = [1, 0], sizes = [15, 32], strides = [1, 1]} : vector<16x32xf32> to vector<15x32xf32>
    %190 = tpu.concatenate %189, %186 in 0 : vector<15x32xf32>, vector<1x32xf32> -> vector<16x32xf32>
    %191 = tpu.iota {dimensions = array<i32: 0>} : vector<16x1xi32>
    %c0_i32_64 = arith.constant 0 : i32
    %192 = vector.broadcast %c0_i32_64 : i32 to vector<16x1xi32>
    %193 = arith.cmpi eq, %191, %192 : vector<16x1xi32>
    %c8_i32_65 = arith.constant 8 : i32
    %194 = vector.broadcast %c8_i32_65 : i32 to vector<16x1xi32>
    %195 = arith.cmpi eq, %191, %194 : vector<16x1xi32>
    %196 = arith.ori %193, %195 : vector<16x1xi1>
    %c7_i32_66 = arith.constant 7 : i32
    %197 = vector.broadcast %c7_i32_66 : i32 to vector<16x1xi32>
    %198 = arith.cmpi eq, %191, %197 : vector<16x1xi32>
    %c15_i32_67 = arith.constant 15 : i32
    %199 = vector.broadcast %c15_i32_67 : i32 to vector<16x1xi32>
    %200 = arith.cmpi eq, %191, %199 : vector<16x1xi32>
    %201 = arith.ori %198, %200 : vector<16x1xi1>
    %cst_68 = arith.constant 0.000000e+00 : f32
    %202 = vector.shape_cast %196 : vector<16x1xi1> to vector<16x1xi1>
    %203 = vector.broadcast %202 : vector<16x1xi1> to vector<16x32xi1>
    %204 = vector.broadcast %cst_68 : f32 to vector<16x32xf32>
    %205 = arith.select %203, %204, %188 : vector<16x32xi1>, vector<16x32xf32>
    %cst_69 = arith.constant 0.000000e+00 : f32
    %206 = vector.shape_cast %201 : vector<16x1xi1> to vector<16x1xi1>
    %207 = vector.broadcast %206 : vector<16x1xi1> to vector<16x32xi1>
    %208 = vector.broadcast %cst_69 : f32 to vector<16x32xf32>
    %209 = arith.select %207, %208, %190 : vector<16x32xi1>, vector<16x32xf32>
    %210 = arith.truncf %205 : vector<16x32xf32> to vector<16x32xbf16>
    %211 = arith.truncf %183 : vector<16x32xf32> to vector<16x32xbf16>
    %212 = arith.truncf %209 : vector<16x32xf32> to vector<16x32xbf16>
    %213 = tpu.concatenate %210, %211, %212 in 1 : vector<16x32xbf16>, vector<16x32xbf16>, vector<16x32xbf16> -> vector<16x96xbf16>
    %cst_70 = arith.constant dense<0.000000e+00> : vector<16x32xf32>
    %214 = tpu.matmul %213, %184, %cst_70 {dimension_numbers = #tpu.dot_dimension_numbers<[1], [0], [0], [1], [0, 0, 1, 1], [], []>} : vector<16x96xbf16>, vector<96x32xbf16>, vector<16x32xf32> -> vector<16x32xf32>
    %215 = vector.broadcast %185 : vector<1x32xf32> to vector<16x32xf32>
    %216 = arith.addf %214, %215 : vector<16x32xf32>
    %cst_71 = arith.constant 0.000000e+00 : f32
    %217 = vector.broadcast %cst_71 : f32 to vector<16x32xf32>
    %218 = arith.maximumf %216, %217 : vector<16x32xf32>
    %c0_72 = arith.constant 0 : index
    %c0_73 = arith.constant 0 : index
    %219 = vector.load %arg7[%c0_72, %c0_73] : memref<64x128xf32, #tpu.memory_space<vmem>>, vector<16x32xf32>
    tpu.vector_store %arg7[%c0_72, %c0_73], %218 {strides = array<i32>} : memref<64x128xf32, #tpu.memory_space<vmem>>, vector<16x32xf32>,
    %c0_74 = arith.constant 0 : index
    %c0_75 = arith.constant 0 : index
    %220 = tpu.strided_load %arg7[%c0_74, %c0_75] {strides = array<i32: 2, 1>} : memref<64x128xf32, #tpu.memory_space<vmem>>, vector<8x32xf32>
    %c1_76 = arith.constant 1 : index
    %c0_77 = arith.constant 0 : index
    %221 = tpu.strided_load %arg7[%c1_76, %c0_77] {strides = array<i32: 2, 1>} : memref<64x128xf32, #tpu.memory_space<vmem>>, vector<8x32xf32>
    %222 = arith.maximumf %220, %221 : vector<8x32xf32>
    %c272 = arith.constant 272 : index
    %c0_78 = arith.constant 0 : index
    %223 = vector.load %arg2[%c272, %c0_78] : memref<2736x128xbf16, #tpu.memory_space<vmem>>, vector<96x64xbf16>
    %c6 = arith.constant 6 : index
    %c0_79 = arith.constant 0 : index
    %224 = vector.load %arg3[%c6, %c0_79] : memref<23x128xf32, #tpu.memory_space<vmem>>, vector<1x64xf32>
    %cst_80 = arith.constant 0.000000e+00 : f32
    %225 = vector.broadcast %cst_80 : f32 to vector<1x32xf32>
    %226 = vector.extract_strided_slice %222 {offsets = [0, 0], sizes = [7, 32], strides = [1, 1]} : vector<8x32xf32> to vector<7x32xf32>
    %227 = tpu.concatenate %225, %226 in 0 : vector<1x32xf32>, vector<7x32xf32> -> vector<8x32xf32>
    %228 = vector.extract_strided_slice %222 {offsets = [1, 0], sizes = [7, 32], strides = [1, 1]} : vector<8x32xf32> to vector<7x32xf32>
    %229 = tpu.concatenate %228, %225 in 0 : vector<7x32xf32>, vector<1x32xf32> -> vector<8x32xf32>
    %230 = tpu.iota {dimensions = array<i32: 0>} : vector<8x1xi32>
    %c0_i32_81 = arith.constant 0 : i32
    %231 = vector.broadcast %c0_i32_81 : i32 to vector<8x1xi32>
    %232 = arith.cmpi eq, %230, %231 : vector<8x1xi32>
    %c4_i32 = arith.constant 4 : i32
    %233 = vector.broadcast %c4_i32 : i32 to vector<8x1xi32>
    %234 = arith.cmpi eq, %230, %233 : vector<8x1xi32>
    %235 = arith.ori %232, %234 : vector<8x1xi1>
    %c3_i32 = arith.constant 3 : i32
    %236 = vector.broadcast %c3_i32 : i32 to vector<8x1xi32>
    %237 = arith.cmpi eq, %230, %236 : vector<8x1xi32>
    %c7_i32_82 = arith.constant 7 : i32
    %238 = vector.broadcast %c7_i32_82 : i32 to vector<8x1xi32>
    %239 = arith.cmpi eq, %230, %238 : vector<8x1xi32>
    %240 = arith.ori %237, %239 : vector<8x1xi1>
    %cst_83 = arith.constant 0.000000e+00 : f32
    %241 = vector.shape_cast %235 : vector<8x1xi1> to vector<8x1xi1>
    %242 = vector.broadcast %241 : vector<8x1xi1> to vector<8x32xi1>
    %243 = vector.broadcast %cst_83 : f32 to vector<8x32xf32>
    %244 = arith.select %242, %243, %227 : vector<8x32xi1>, vector<8x32xf32>
    %cst_84 = arith.constant 0.000000e+00 : f32
    %245 = vector.shape_cast %240 : vector<8x1xi1> to vector<8x1xi1>
    %246 = vector.broadcast %245 : vector<8x1xi1> to vector<8x32xi1>
    %247 = vector.broadcast %cst_84 : f32 to vector<8x32xf32>
    %248 = arith.select %246, %247, %229 : vector<8x32xi1>, vector<8x32xf32>
    %249 = arith.truncf %244 : vector<8x32xf32> to vector<8x32xbf16>
    %250 = arith.truncf %222 : vector<8x32xf32> to vector<8x32xbf16>
    %251 = arith.truncf %248 : vector<8x32xf32> to vector<8x32xbf16>
    %252 = tpu.concatenate %249, %250, %251 in 1 : vector<8x32xbf16>, vector<8x32xbf16>, vector<8x32xbf16> -> vector<8x96xbf16>
    %cst_85 = arith.constant dense<0.000000e+00> : vector<8x64xf32>
    %253 = tpu.matmul %252, %223, %cst_85 {dimension_numbers = #tpu.dot_dimension_numbers<[1], [0], [0], [1], [0, 0, 1, 1], [], []>} : vector<8x96xbf16>, vector<96x64xbf16>, vector<8x64xf32> -> vector<8x64xf32>
    %254 = vector.broadcast %224 : vector<1x64xf32> to vector<8x64xf32>
    %255 = arith.addf %253, %254 : vector<8x64xf32>
    %cst_86 = arith.constant 0.000000e+00 : f32
    %256 = vector.broadcast %cst_86 : f32 to vector<8x64xf32>
    %257 = arith.maximumf %255, %256 : vector<8x64xf32>
    %c368 = arith.constant 368 : index
    %c0_87 = arith.constant 0 : index
    %258 = vector.load %arg2[%c368, %c0_87] : memref<2736x128xbf16, #tpu.memory_space<vmem>>, vector<192x64xbf16>
    %c7 = arith.constant 7 : index
    %c0_88 = arith.constant 0 : index
    %259 = vector.load %arg3[%c7, %c0_88] : memref<23x128xf32, #tpu.memory_space<vmem>>, vector<1x64xf32>
    %cst_89 = arith.constant 0.000000e+00 : f32
    %260 = vector.broadcast %cst_89 : f32 to vector<1x64xf32>
    %261 = vector.extract_strided_slice %257 {offsets = [0, 0], sizes = [7, 64], strides = [1, 1]} : vector<8x64xf32> to vector<7x64xf32>
    %262 = tpu.concatenate %260, %261 in 0 : vector<1x64xf32>, vector<7x64xf32> -> vector<8x64xf32>
    %263 = vector.extract_strided_slice %257 {offsets = [1, 0], sizes = [7, 64], strides = [1, 1]} : vector<8x64xf32> to vector<7x64xf32>
    %264 = tpu.concatenate %263, %260 in 0 : vector<7x64xf32>, vector<1x64xf32> -> vector<8x64xf32>
    %265 = tpu.iota {dimensions = array<i32: 0>} : vector<8x1xi32>
    %c0_i32_90 = arith.constant 0 : i32
    %266 = vector.broadcast %c0_i32_90 : i32 to vector<8x1xi32>
    %267 = arith.cmpi eq, %265, %266 : vector<8x1xi32>
    %c4_i32_91 = arith.constant 4 : i32
    %268 = vector.broadcast %c4_i32_91 : i32 to vector<8x1xi32>
    %269 = arith.cmpi eq, %265, %268 : vector<8x1xi32>
    %270 = arith.ori %267, %269 : vector<8x1xi1>
    %c3_i32_92 = arith.constant 3 : i32
    %271 = vector.broadcast %c3_i32_92 : i32 to vector<8x1xi32>
    %272 = arith.cmpi eq, %265, %271 : vector<8x1xi32>
    %c7_i32_93 = arith.constant 7 : i32
    %273 = vector.broadcast %c7_i32_93 : i32 to vector<8x1xi32>
    %274 = arith.cmpi eq, %265, %273 : vector<8x1xi32>
    %275 = arith.ori %272, %274 : vector<8x1xi1>
    %cst_94 = arith.constant 0.000000e+00 : f32
    %276 = vector.shape_cast %270 : vector<8x1xi1> to vector<8x1xi1>
    %277 = vector.broadcast %276 : vector<8x1xi1> to vector<8x64xi1>
    %278 = vector.broadcast %cst_94 : f32 to vector<8x64xf32>
    %279 = arith.select %277, %278, %262 : vector<8x64xi1>, vector<8x64xf32>
    %cst_95 = arith.constant 0.000000e+00 : f32
    %280 = vector.shape_cast %275 : vector<8x1xi1> to vector<8x1xi1>
    %281 = vector.broadcast %280 : vector<8x1xi1> to vector<8x64xi1>
    %282 = vector.broadcast %cst_95 : f32 to vector<8x64xf32>
    %283 = arith.select %281, %282, %264 : vector<8x64xi1>, vector<8x64xf32>
    %284 = arith.truncf %279 : vector<8x64xf32> to vector<8x64xbf16>
    %285 = arith.truncf %257 : vector<8x64xf32> to vector<8x64xbf16>
    %286 = arith.truncf %283 : vector<8x64xf32> to vector<8x64xbf16>
    %287 = tpu.concatenate %284, %285, %286 in 1 : vector<8x64xbf16>, vector<8x64xbf16>, vector<8x64xbf16> -> vector<8x192xbf16>
    %cst_96 = arith.constant dense<0.000000e+00> : vector<8x64xf32>
    %288 = tpu.matmul %287, %258, %cst_96 {dimension_numbers = #tpu.dot_dimension_numbers<[1], [0], [0], [1], [0, 0, 1, 1], [], []>} : vector<8x192xbf16>, vector<192x64xbf16>, vector<8x64xf32> -> vector<8x64xf32>
    %289 = vector.broadcast %259 : vector<1x64xf32> to vector<8x64xf32>
    %290 = arith.addf %288, %289 : vector<8x64xf32>
    %cst_97 = arith.constant 0.000000e+00 : f32
    %291 = vector.broadcast %cst_97 : f32 to vector<8x64xf32>
    %292 = arith.maximumf %290, %291 : vector<8x64xf32>
    %c0_98 = arith.constant 0 : index
    %c0_99 = arith.constant 0 : index
    %293 = vector.load %arg7[%c0_98, %c0_99] : memref<64x128xf32, #tpu.memory_space<vmem>>, vector<8x64xf32>
    tpu.vector_store %arg7[%c0_98, %c0_99], %292 {strides = array<i32>} : memref<64x128xf32, #tpu.memory_space<vmem>>, vector<8x64xf32>,
    %c0_100 = arith.constant 0 : index
    %c0_101 = arith.constant 0 : index
    %294 = tpu.strided_load %arg7[%c0_100, %c0_101] {strides = array<i32: 2, 1>} : memref<64x128xf32, #tpu.memory_space<vmem>>, vector<4x64xf32>
    %c1_102 = arith.constant 1 : index
    %c0_103 = arith.constant 0 : index
    %295 = tpu.strided_load %arg7[%c1_102, %c0_103] {strides = array<i32: 2, 1>} : memref<64x128xf32, #tpu.memory_space<vmem>>, vector<4x64xf32>
    %296 = arith.maximumf %294, %295 : vector<4x64xf32>
    %c560 = arith.constant 560 : index
    %c0_104 = arith.constant 0 : index
    %297 = vector.load %arg2[%c560, %c0_104] : memref<2736x128xbf16, #tpu.memory_space<vmem>>, vector<192x128xbf16>
    %c8 = arith.constant 8 : index
    %c0_105 = arith.constant 0 : index
    %298 = vector.load %arg3[%c8, %c0_105] : memref<23x128xf32, #tpu.memory_space<vmem>>, vector<1x128xf32>
    %cst_106 = arith.constant 0.000000e+00 : f32
    %299 = vector.broadcast %cst_106 : f32 to vector<1x64xf32>
    %300 = vector.extract_strided_slice %296 {offsets = [0, 0], sizes = [3, 64], strides = [1, 1]} : vector<4x64xf32> to vector<3x64xf32>
    %301 = tpu.concatenate %299, %300 in 0 : vector<1x64xf32>, vector<3x64xf32> -> vector<4x64xf32>
    %302 = vector.extract_strided_slice %296 {offsets = [1, 0], sizes = [3, 64], strides = [1, 1]} : vector<4x64xf32> to vector<3x64xf32>
    %303 = tpu.concatenate %302, %299 in 0 : vector<3x64xf32>, vector<1x64xf32> -> vector<4x64xf32>
    %304 = tpu.iota {dimensions = array<i32: 0>} : vector<4x1xi32>
    %c0_i32_107 = arith.constant 0 : i32
    %305 = vector.broadcast %c0_i32_107 : i32 to vector<4x1xi32>
    %306 = arith.cmpi eq, %304, %305 : vector<4x1xi32>
    %c2_i32 = arith.constant 2 : i32
    %307 = vector.broadcast %c2_i32 : i32 to vector<4x1xi32>
    %308 = arith.cmpi eq, %304, %307 : vector<4x1xi32>
    %309 = arith.ori %306, %308 : vector<4x1xi1>
    %c1_i32 = arith.constant 1 : i32
    %310 = vector.broadcast %c1_i32 : i32 to vector<4x1xi32>
    %311 = arith.cmpi eq, %304, %310 : vector<4x1xi32>
    %c3_i32_108 = arith.constant 3 : i32
    %312 = vector.broadcast %c3_i32_108 : i32 to vector<4x1xi32>
    %313 = arith.cmpi eq, %304, %312 : vector<4x1xi32>
    %314 = arith.ori %311, %313 : vector<4x1xi1>
    %cst_109 = arith.constant 0.000000e+00 : f32
    %315 = vector.shape_cast %309 : vector<4x1xi1> to vector<4x1xi1>
    %316 = vector.broadcast %315 : vector<4x1xi1> to vector<4x64xi1>
    %317 = vector.broadcast %cst_109 : f32 to vector<4x64xf32>
    %318 = arith.select %316, %317, %301 : vector<4x64xi1>, vector<4x64xf32>
    %cst_110 = arith.constant 0.000000e+00 : f32
    %319 = vector.shape_cast %314 : vector<4x1xi1> to vector<4x1xi1>
    %320 = vector.broadcast %319 : vector<4x1xi1> to vector<4x64xi1>
    %321 = vector.broadcast %cst_110 : f32 to vector<4x64xf32>
    %322 = arith.select %320, %321, %303 : vector<4x64xi1>, vector<4x64xf32>
    %323 = arith.truncf %318 : vector<4x64xf32> to vector<4x64xbf16>
    %324 = arith.truncf %296 : vector<4x64xf32> to vector<4x64xbf16>
    %325 = arith.truncf %322 : vector<4x64xf32> to vector<4x64xbf16>
    %326 = tpu.concatenate %323, %324, %325 in 1 : vector<4x64xbf16>, vector<4x64xbf16>, vector<4x64xbf16> -> vector<4x192xbf16>
    %cst_111 = arith.constant dense<0.000000e+00> : vector<4x128xf32>
    %327 = tpu.matmul %326, %297, %cst_111 {dimension_numbers = #tpu.dot_dimension_numbers<[1], [0], [0], [1], [0, 0, 1, 1], [], []>} : vector<4x192xbf16>, vector<192x128xbf16>, vector<4x128xf32> -> vector<4x128xf32>
    %328 = vector.broadcast %298 : vector<1x128xf32> to vector<4x128xf32>
    %329 = arith.addf %327, %328 : vector<4x128xf32>
    %cst_112 = arith.constant 0.000000e+00 : f32
    %330 = vector.broadcast %cst_112 : f32 to vector<4x128xf32>
    %331 = arith.maximumf %329, %330 : vector<4x128xf32>
    %c752 = arith.constant 752 : index
    %c0_113 = arith.constant 0 : index
    %332 = vector.load %arg2[%c752, %c0_113] : memref<2736x128xbf16, #tpu.memory_space<vmem>>, vector<384x128xbf16>
    %c9 = arith.constant 9 : index
    %c0_114 = arith.constant 0 : index
    %333 = vector.load %arg3[%c9, %c0_114] : memref<23x128xf32, #tpu.memory_space<vmem>>, vector<1x128xf32>
    %cst_115 = arith.constant 0.000000e+00 : f32
    %334 = vector.broadcast %cst_115 : f32 to vector<1x128xf32>
    %335 = vector.extract_strided_slice %331 {offsets = [0, 0], sizes = [3, 128], strides = [1, 1]} : vector<4x128xf32> to vector<3x128xf32>
    %336 = tpu.concatenate %334, %335 in 0 : vector<1x128xf32>, vector<3x128xf32> -> vector<4x128xf32>
    %337 = vector.extract_strided_slice %331 {offsets = [1, 0], sizes = [3, 128], strides = [1, 1]} : vector<4x128xf32> to vector<3x128xf32>
    %338 = tpu.concatenate %337, %334 in 0 : vector<3x128xf32>, vector<1x128xf32> -> vector<4x128xf32>
    %339 = tpu.iota {dimensions = array<i32: 0>} : vector<4x1xi32>
    %c0_i32_116 = arith.constant 0 : i32
    %340 = vector.broadcast %c0_i32_116 : i32 to vector<4x1xi32>
    %341 = arith.cmpi eq, %339, %340 : vector<4x1xi32>
    %c2_i32_117 = arith.constant 2 : i32
    %342 = vector.broadcast %c2_i32_117 : i32 to vector<4x1xi32>
    %343 = arith.cmpi eq, %339, %342 : vector<4x1xi32>
    %344 = arith.ori %341, %343 : vector<4x1xi1>
    %c1_i32_118 = arith.constant 1 : i32
    %345 = vector.broadcast %c1_i32_118 : i32 to vector<4x1xi32>
    %346 = arith.cmpi eq, %339, %345 : vector<4x1xi32>
    %c3_i32_119 = arith.constant 3 : i32
    %347 = vector.broadcast %c3_i32_119 : i32 to vector<4x1xi32>
    %348 = arith.cmpi eq, %339, %347 : vector<4x1xi32>
    %349 = arith.ori %346, %348 : vector<4x1xi1>
    %cst_120 = arith.constant 0.000000e+00 : f32
    %350 = vector.shape_cast %344 : vector<4x1xi1> to vector<4x1xi1>
    %351 = vector.broadcast %350 : vector<4x1xi1> to vector<4x128xi1>
    %352 = vector.broadcast %cst_120 : f32 to vector<4x128xf32>
    %353 = arith.select %351, %352, %336 : vector<4x128xi1>, vector<4x128xf32>
    %cst_121 = arith.constant 0.000000e+00 : f32
    %354 = vector.shape_cast %349 : vector<4x1xi1> to vector<4x1xi1>
    %355 = vector.broadcast %354 : vector<4x1xi1> to vector<4x128xi1>
    %356 = vector.broadcast %cst_121 : f32 to vector<4x128xf32>
    %357 = arith.select %355, %356, %338 : vector<4x128xi1>, vector<4x128xf32>
    %358 = arith.truncf %353 : vector<4x128xf32> to vector<4x128xbf16>
    %359 = arith.truncf %331 : vector<4x128xf32> to vector<4x128xbf16>
    %360 = arith.truncf %357 : vector<4x128xf32> to vector<4x128xbf16>
    %361 = tpu.concatenate %358, %359, %360 in 1 : vector<4x128xbf16>, vector<4x128xbf16>, vector<4x128xbf16> -> vector<4x384xbf16>
    %cst_122 = arith.constant dense<0.000000e+00> : vector<4x128xf32>
    %362 = tpu.matmul %361, %332, %cst_122 {dimension_numbers = #tpu.dot_dimension_numbers<[1], [0], [0], [1], [0, 0, 1, 1], [], []>} : vector<4x384xbf16>, vector<384x128xbf16>, vector<4x128xf32> -> vector<4x128xf32>
    %363 = vector.broadcast %333 : vector<1x128xf32> to vector<4x128xf32>
    %364 = arith.addf %362, %363 : vector<4x128xf32>
    %cst_123 = arith.constant 0.000000e+00 : f32
    %365 = vector.broadcast %cst_123 : f32 to vector<4x128xf32>
    %366 = arith.maximumf %364, %365 : vector<4x128xf32>
    %c1136 = arith.constant 1136 : index
    %c0_124 = arith.constant 0 : index
    %367 = vector.load %arg2[%c1136, %c0_124] : memref<2736x128xbf16, #tpu.memory_space<vmem>>, vector<128x64xbf16>
    %c1264 = arith.constant 1264 : index
    %c0_125 = arith.constant 0 : index
    %368 = vector.load %arg2[%c1264, %c0_125] : memref<2736x128xbf16, #tpu.memory_space<vmem>>, vector<128x64xbf16>
    %c10 = arith.constant 10 : index
    %c0_126 = arith.constant 0 : index
    %369 = vector.load %arg3[%c10, %c0_126] : memref<23x128xf32, #tpu.memory_space<vmem>>, vector<1x64xf32>
    %370 = arith.truncf %366 : vector<4x128xf32> to vector<4x128xbf16>
    %cst_127 = arith.constant dense<0.000000e+00> : vector<4x64xf32>
    %371 = tpu.matmul %370, %367, %cst_127 {dimension_numbers = #tpu.dot_dimension_numbers<[1], [0], [0], [1], [0, 0, 1, 1], [], []>} : vector<4x128xbf16>, vector<128x64xbf16>, vector<4x64xf32> -> vector<4x64xf32>
    %cst_128 = arith.constant dense<0.000000e+00> : vector<4x64xf32>
    %372 = tpu.matmul %370, %368, %cst_128 {dimension_numbers = #tpu.dot_dimension_numbers<[1], [0], [0], [1], [0, 0, 1, 1], [], []>} : vector<4x128xbf16>, vector<128x64xbf16>, vector<4x64xf32> -> vector<4x64xf32>
    %c0_129 = arith.constant 0 : index
    %c0_130 = arith.constant 0 : index
    %373 = vector.load %arg4[%c0_129, %c0_130] : memref<64x32xbf16, #tpu.memory_space<vmem>>, vector<8x4xbf16>
    %c0_131 = arith.constant 0 : index
    %c0_132 = arith.constant 0 : index
    %374 = vector.load %arg5[%c0_131, %c0_132] : memref<64x32xbf16, #tpu.memory_space<vmem>>, vector<8x4xbf16>
    %375 = arith.truncf %371 : vector<4x64xf32> to vector<4x64xbf16>
    %cst_133 = arith.constant dense<0.000000e+00> : vector<8x64xf32>
    %376 = tpu.matmul %373, %375, %cst_133 {dimension_numbers = #tpu.dot_dimension_numbers<[1], [0], [0], [1], [0, 0, 1, 1], [], []>} : vector<8x4xbf16>, vector<4x64xbf16>, vector<8x64xf32> -> vector<8x64xf32>
    %377 = arith.truncf %372 : vector<4x64xf32> to vector<4x64xbf16>
    %cst_134 = arith.constant dense<0.000000e+00> : vector<8x64xf32>
    %378 = tpu.matmul %374, %377, %cst_134 {dimension_numbers = #tpu.dot_dimension_numbers<[1], [0], [0], [1], [0, 0, 1, 1], [], []>} : vector<8x4xbf16>, vector<4x64xbf16>, vector<8x64xf32> -> vector<8x64xf32>
    %379 = arith.addf %376, %378 : vector<8x64xf32>
    %380 = vector.broadcast %369 : vector<1x64xf32> to vector<8x64xf32>
    %381 = arith.addf %379, %380 : vector<8x64xf32>
    %c1392 = arith.constant 1392 : index
    %c0_135 = arith.constant 0 : index
    %382 = vector.load %arg2[%c1392, %c0_135] : memref<2736x128xbf16, #tpu.memory_space<vmem>>, vector<192x64xbf16>
    %c1584 = arith.constant 1584 : index
    %c0_136 = arith.constant 0 : index
    %383 = vector.load %arg2[%c1584, %c0_136] : memref<2736x128xbf16, #tpu.memory_space<vmem>>, vector<192x64xbf16>
    %c11 = arith.constant 11 : index
    %c0_137 = arith.constant 0 : index
    %384 = vector.load %arg3[%c11, %c0_137] : memref<23x128xf32, #tpu.memory_space<vmem>>, vector<1x64xf32>
    %cst_138 = arith.constant 0.000000e+00 : f32
    %385 = vector.broadcast %cst_138 : f32 to vector<1x64xf32>
    %386 = vector.extract_strided_slice %381 {offsets = [0, 0], sizes = [7, 64], strides = [1, 1]} : vector<8x64xf32> to vector<7x64xf32>
    %387 = tpu.concatenate %385, %386 in 0 : vector<1x64xf32>, vector<7x64xf32> -> vector<8x64xf32>
    %388 = vector.extract_strided_slice %381 {offsets = [1, 0], sizes = [7, 64], strides = [1, 1]} : vector<8x64xf32> to vector<7x64xf32>
    %389 = tpu.concatenate %388, %385 in 0 : vector<7x64xf32>, vector<1x64xf32> -> vector<8x64xf32>
    %390 = tpu.iota {dimensions = array<i32: 0>} : vector<8x1xi32>
    %c0_i32_139 = arith.constant 0 : i32
    %391 = vector.broadcast %c0_i32_139 : i32 to vector<8x1xi32>
    %392 = arith.cmpi eq, %390, %391 : vector<8x1xi32>
    %c4_i32_140 = arith.constant 4 : i32
    %393 = vector.broadcast %c4_i32_140 : i32 to vector<8x1xi32>
    %394 = arith.cmpi eq, %390, %393 : vector<8x1xi32>
    %395 = arith.ori %392, %394 : vector<8x1xi1>
    %c3_i32_141 = arith.constant 3 : i32
    %396 = vector.broadcast %c3_i32_141 : i32 to vector<8x1xi32>
    %397 = arith.cmpi eq, %390, %396 : vector<8x1xi32>
    %c7_i32_142 = arith.constant 7 : i32
    %398 = vector.broadcast %c7_i32_142 : i32 to vector<8x1xi32>
    %399 = arith.cmpi eq, %390, %398 : vector<8x1xi32>
    %400 = arith.ori %397, %399 : vector<8x1xi1>
    %cst_143 = arith.constant 0.000000e+00 : f32
    %401 = vector.shape_cast %395 : vector<8x1xi1> to vector<8x1xi1>
    %402 = vector.broadcast %401 : vector<8x1xi1> to vector<8x64xi1>
    %403 = vector.broadcast %cst_143 : f32 to vector<8x64xf32>
    %404 = arith.select %402, %403, %387 : vector<8x64xi1>, vector<8x64xf32>
    %cst_144 = arith.constant 0.000000e+00 : f32
    %405 = vector.shape_cast %400 : vector<8x1xi1> to vector<8x1xi1>
    %406 = vector.broadcast %405 : vector<8x1xi1> to vector<8x64xi1>
    %407 = vector.broadcast %cst_144 : f32 to vector<8x64xf32>
    %408 = arith.select %406, %407, %389 : vector<8x64xi1>, vector<8x64xf32>
    %409 = arith.truncf %404 : vector<8x64xf32> to vector<8x64xbf16>
    %410 = arith.truncf %381 : vector<8x64xf32> to vector<8x64xbf16>
    %411 = arith.truncf %408 : vector<8x64xf32> to vector<8x64xbf16>
    %412 = tpu.concatenate %409, %410, %411 in 1 : vector<8x64xbf16>, vector<8x64xbf16>, vector<8x64xbf16> -> vector<8x192xbf16>
    %cst_145 = arith.constant dense<0.000000e+00> : vector<8x64xf32>
    %413 = tpu.matmul %412, %382, %cst_145 {dimension_numbers = #tpu.dot_dimension_numbers<[1], [0], [0], [1], [0, 0, 1, 1], [], []>} : vector<8x192xbf16>, vector<192x64xbf16>, vector<8x64xf32> -> vector<8x64xf32>
    %cst_146 = arith.constant 0.000000e+00 : f32
    %414 = vector.broadcast %cst_146 : f32 to vector<1x64xf32>
    %415 = vector.extract_strided_slice %292 {offsets = [0, 0], sizes = [7, 64], strides = [1, 1]} : vector<8x64xf32> to vector<7x64xf32>
    %416 = tpu.concatenate %414, %415 in 0 : vector<1x64xf32>, vector<7x64xf32> -> vector<8x64xf32>
    %417 = vector.extract_strided_slice %292 {offsets = [1, 0], sizes = [7, 64], strides = [1, 1]} : vector<8x64xf32> to vector<7x64xf32>
    %418 = tpu.concatenate %417, %414 in 0 : vector<7x64xf32>, vector<1x64xf32> -> vector<8x64xf32>
    %419 = tpu.iota {dimensions = array<i32: 0>} : vector<8x1xi32>
    %c0_i32_147 = arith.constant 0 : i32
    %420 = vector.broadcast %c0_i32_147 : i32 to vector<8x1xi32>
    %421 = arith.cmpi eq, %419, %420 : vector<8x1xi32>
    %c4_i32_148 = arith.constant 4 : i32
    %422 = vector.broadcast %c4_i32_148 : i32 to vector<8x1xi32>
    %423 = arith.cmpi eq, %419, %422 : vector<8x1xi32>
    %424 = arith.ori %421, %423 : vector<8x1xi1>
    %c3_i32_149 = arith.constant 3 : i32
    %425 = vector.broadcast %c3_i32_149 : i32 to vector<8x1xi32>
    %426 = arith.cmpi eq, %419, %425 : vector<8x1xi32>
    %c7_i32_150 = arith.constant 7 : i32
    %427 = vector.broadcast %c7_i32_150 : i32 to vector<8x1xi32>
    %428 = arith.cmpi eq, %419, %427 : vector<8x1xi32>
    %429 = arith.ori %426, %428 : vector<8x1xi1>
    %cst_151 = arith.constant 0.000000e+00 : f32
    %430 = vector.shape_cast %424 : vector<8x1xi1> to vector<8x1xi1>
    %431 = vector.broadcast %430 : vector<8x1xi1> to vector<8x64xi1>
    %432 = vector.broadcast %cst_151 : f32 to vector<8x64xf32>
    %433 = arith.select %431, %432, %416 : vector<8x64xi1>, vector<8x64xf32>
    %cst_152 = arith.constant 0.000000e+00 : f32
    %434 = vector.shape_cast %429 : vector<8x1xi1> to vector<8x1xi1>
    %435 = vector.broadcast %434 : vector<8x1xi1> to vector<8x64xi1>
    %436 = vector.broadcast %cst_152 : f32 to vector<8x64xf32>
    %437 = arith.select %435, %436, %418 : vector<8x64xi1>, vector<8x64xf32>
    %438 = arith.truncf %433 : vector<8x64xf32> to vector<8x64xbf16>
    %439 = arith.truncf %292 : vector<8x64xf32> to vector<8x64xbf16>
    %440 = arith.truncf %437 : vector<8x64xf32> to vector<8x64xbf16>
    %441 = tpu.concatenate %438, %439, %440 in 1 : vector<8x64xbf16>, vector<8x64xbf16>, vector<8x64xbf16> -> vector<8x192xbf16>
    %cst_153 = arith.constant dense<0.000000e+00> : vector<8x64xf32>
    %442 = tpu.matmul %441, %383, %cst_153 {dimension_numbers = #tpu.dot_dimension_numbers<[1], [0], [0], [1], [0, 0, 1, 1], [], []>} : vector<8x192xbf16>, vector<192x64xbf16>, vector<8x64xf32> -> vector<8x64xf32>
    %443 = arith.addf %413, %442 : vector<8x64xf32>
    %444 = vector.broadcast %384 : vector<1x64xf32> to vector<8x64xf32>
    %445 = arith.addf %443, %444 : vector<8x64xf32>
    %cst_154 = arith.constant 0.000000e+00 : f32
    %446 = vector.broadcast %cst_154 : f32 to vector<8x64xf32>
    %447 = arith.maximumf %445, %446 : vector<8x64xf32>
    %c1776 = arith.constant 1776 : index
    %c0_155 = arith.constant 0 : index
    %448 = vector.load %arg2[%c1776, %c0_155] : memref<2736x128xbf16, #tpu.memory_space<vmem>>, vector<192x64xbf16>
    %c12 = arith.constant 12 : index
    %c0_156 = arith.constant 0 : index
    %449 = vector.load %arg3[%c12, %c0_156] : memref<23x128xf32, #tpu.memory_space<vmem>>, vector<1x64xf32>
    %cst_157 = arith.constant 0.000000e+00 : f32
    %450 = vector.broadcast %cst_157 : f32 to vector<1x64xf32>
    %451 = vector.extract_strided_slice %447 {offsets = [0, 0], sizes = [7, 64], strides = [1, 1]} : vector<8x64xf32> to vector<7x64xf32>
    %452 = tpu.concatenate %450, %451 in 0 : vector<1x64xf32>, vector<7x64xf32> -> vector<8x64xf32>
    %453 = vector.extract_strided_slice %447 {offsets = [1, 0], sizes = [7, 64], strides = [1, 1]} : vector<8x64xf32> to vector<7x64xf32>
    %454 = tpu.concatenate %453, %450 in 0 : vector<7x64xf32>, vector<1x64xf32> -> vector<8x64xf32>
    %455 = tpu.iota {dimensions = array<i32: 0>} : vector<8x1xi32>
    %c0_i32_158 = arith.constant 0 : i32
    %456 = vector.broadcast %c0_i32_158 : i32 to vector<8x1xi32>
    %457 = arith.cmpi eq, %455, %456 : vector<8x1xi32>
    %c4_i32_159 = arith.constant 4 : i32
    %458 = vector.broadcast %c4_i32_159 : i32 to vector<8x1xi32>
    %459 = arith.cmpi eq, %455, %458 : vector<8x1xi32>
    %460 = arith.ori %457, %459 : vector<8x1xi1>
    %c3_i32_160 = arith.constant 3 : i32
    %461 = vector.broadcast %c3_i32_160 : i32 to vector<8x1xi32>
    %462 = arith.cmpi eq, %455, %461 : vector<8x1xi32>
    %c7_i32_161 = arith.constant 7 : i32
    %463 = vector.broadcast %c7_i32_161 : i32 to vector<8x1xi32>
    %464 = arith.cmpi eq, %455, %463 : vector<8x1xi32>
    %465 = arith.ori %462, %464 : vector<8x1xi1>
    %cst_162 = arith.constant 0.000000e+00 : f32
    %466 = vector.shape_cast %460 : vector<8x1xi1> to vector<8x1xi1>
    %467 = vector.broadcast %466 : vector<8x1xi1> to vector<8x64xi1>
    %468 = vector.broadcast %cst_162 : f32 to vector<8x64xf32>
    %469 = arith.select %467, %468, %452 : vector<8x64xi1>, vector<8x64xf32>
    %cst_163 = arith.constant 0.000000e+00 : f32
    %470 = vector.shape_cast %465 : vector<8x1xi1> to vector<8x1xi1>
    %471 = vector.broadcast %470 : vector<8x1xi1> to vector<8x64xi1>
    %472 = vector.broadcast %cst_163 : f32 to vector<8x64xf32>
    %473 = arith.select %471, %472, %454 : vector<8x64xi1>, vector<8x64xf32>
    %474 = arith.truncf %469 : vector<8x64xf32> to vector<8x64xbf16>
    %475 = arith.truncf %447 : vector<8x64xf32> to vector<8x64xbf16>
    %476 = arith.truncf %473 : vector<8x64xf32> to vector<8x64xbf16>
    %477 = tpu.concatenate %474, %475, %476 in 1 : vector<8x64xbf16>, vector<8x64xbf16>, vector<8x64xbf16> -> vector<8x192xbf16>
    %cst_164 = arith.constant dense<0.000000e+00> : vector<8x64xf32>
    %478 = tpu.matmul %477, %448, %cst_164 {dimension_numbers = #tpu.dot_dimension_numbers<[1], [0], [0], [1], [0, 0, 1, 1], [], []>} : vector<8x192xbf16>, vector<192x64xbf16>, vector<8x64xf32> -> vector<8x64xf32>
    %479 = vector.broadcast %449 : vector<1x64xf32> to vector<8x64xf32>
    %480 = arith.addf %478, %479 : vector<8x64xf32>
    %cst_165 = arith.constant 0.000000e+00 : f32
    %481 = vector.broadcast %cst_165 : f32 to vector<8x64xf32>
    %482 = arith.maximumf %480, %481 : vector<8x64xf32>
    %c1968 = arith.constant 1968 : index
    %c0_166 = arith.constant 0 : index
    %483 = vector.load %arg2[%c1968, %c0_166] : memref<2736x128xbf16, #tpu.memory_space<vmem>>, vector<64x32xbf16>
    %c2032 = arith.constant 2032 : index
    %c0_167 = arith.constant 0 : index
    %484 = vector.load %arg2[%c2032, %c0_167] : memref<2736x128xbf16, #tpu.memory_space<vmem>>, vector<64x32xbf16>
    %c13 = arith.constant 13 : index
    %c0_168 = arith.constant 0 : index
    %485 = vector.load %arg3[%c13, %c0_168] : memref<23x128xf32, #tpu.memory_space<vmem>>, vector<1x32xf32>
    %486 = arith.truncf %482 : vector<8x64xf32> to vector<8x64xbf16>
    %cst_169 = arith.constant dense<0.000000e+00> : vector<8x32xf32>
    %487 = tpu.matmul %486, %483, %cst_169 {dimension_numbers = #tpu.dot_dimension_numbers<[1], [0], [0], [1], [0, 0, 1, 1], [], []>} : vector<8x64xbf16>, vector<64x32xbf16>, vector<8x32xf32> -> vector<8x32xf32>
    %cst_170 = arith.constant dense<0.000000e+00> : vector<8x32xf32>
    %488 = tpu.matmul %486, %484, %cst_170 {dimension_numbers = #tpu.dot_dimension_numbers<[1], [0], [0], [1], [0, 0, 1, 1], [], []>} : vector<8x64xbf16>, vector<64x32xbf16>, vector<8x32xf32> -> vector<8x32xf32>
    %c0_171 = arith.constant 0 : index
    %c0_172 = arith.constant 0 : index
    %489 = vector.load %arg4[%c0_171, %c0_172] : memref<64x32xbf16, #tpu.memory_space<vmem>>, vector<16x8xbf16>
    %c0_173 = arith.constant 0 : index
    %c0_174 = arith.constant 0 : index
    %490 = vector.load %arg5[%c0_173, %c0_174] : memref<64x32xbf16, #tpu.memory_space<vmem>>, vector<16x8xbf16>
    %491 = arith.truncf %487 : vector<8x32xf32> to vector<8x32xbf16>
    %cst_175 = arith.constant dense<0.000000e+00> : vector<16x32xf32>
    %492 = tpu.matmul %489, %491, %cst_175 {dimension_numbers = #tpu.dot_dimension_numbers<[1], [0], [0], [1], [0, 0, 1, 1], [], []>} : vector<16x8xbf16>, vector<8x32xbf16>, vector<16x32xf32> -> vector<16x32xf32>
    %493 = arith.truncf %488 : vector<8x32xf32> to vector<8x32xbf16>
    %cst_176 = arith.constant dense<0.000000e+00> : vector<16x32xf32>
    %494 = tpu.matmul %490, %493, %cst_176 {dimension_numbers = #tpu.dot_dimension_numbers<[1], [0], [0], [1], [0, 0, 1, 1], [], []>} : vector<16x8xbf16>, vector<8x32xbf16>, vector<16x32xf32> -> vector<16x32xf32>
    %495 = arith.addf %492, %494 : vector<16x32xf32>
    %496 = vector.broadcast %485 : vector<1x32xf32> to vector<16x32xf32>
    %497 = arith.addf %495, %496 : vector<16x32xf32>
    %c2096 = arith.constant 2096 : index
    %c0_177 = arith.constant 0 : index
    %498 = vector.load %arg2[%c2096, %c0_177] : memref<2736x128xbf16, #tpu.memory_space<vmem>>, vector<96x32xbf16>
    %c2192 = arith.constant 2192 : index
    %c0_178 = arith.constant 0 : index
    %499 = vector.load %arg2[%c2192, %c0_178] : memref<2736x128xbf16, #tpu.memory_space<vmem>>, vector<96x32xbf16>
    %c14 = arith.constant 14 : index
    %c0_179 = arith.constant 0 : index
    %500 = vector.load %arg3[%c14, %c0_179] : memref<23x128xf32, #tpu.memory_space<vmem>>, vector<1x32xf32>
    %cst_180 = arith.constant 0.000000e+00 : f32
    %501 = vector.broadcast %cst_180 : f32 to vector<1x32xf32>
    %502 = vector.extract_strided_slice %497 {offsets = [0, 0], sizes = [15, 32], strides = [1, 1]} : vector<16x32xf32> to vector<15x32xf32>
    %503 = tpu.concatenate %501, %502 in 0 : vector<1x32xf32>, vector<15x32xf32> -> vector<16x32xf32>
    %504 = vector.extract_strided_slice %497 {offsets = [1, 0], sizes = [15, 32], strides = [1, 1]} : vector<16x32xf32> to vector<15x32xf32>
    %505 = tpu.concatenate %504, %501 in 0 : vector<15x32xf32>, vector<1x32xf32> -> vector<16x32xf32>
    %506 = tpu.iota {dimensions = array<i32: 0>} : vector<16x1xi32>
    %c0_i32_181 = arith.constant 0 : i32
    %507 = vector.broadcast %c0_i32_181 : i32 to vector<16x1xi32>
    %508 = arith.cmpi eq, %506, %507 : vector<16x1xi32>
    %c8_i32_182 = arith.constant 8 : i32
    %509 = vector.broadcast %c8_i32_182 : i32 to vector<16x1xi32>
    %510 = arith.cmpi eq, %506, %509 : vector<16x1xi32>
    %511 = arith.ori %508, %510 : vector<16x1xi1>
    %c7_i32_183 = arith.constant 7 : i32
    %512 = vector.broadcast %c7_i32_183 : i32 to vector<16x1xi32>
    %513 = arith.cmpi eq, %506, %512 : vector<16x1xi32>
    %c15_i32_184 = arith.constant 15 : i32
    %514 = vector.broadcast %c15_i32_184 : i32 to vector<16x1xi32>
    %515 = arith.cmpi eq, %506, %514 : vector<16x1xi32>
    %516 = arith.ori %513, %515 : vector<16x1xi1>
    %cst_185 = arith.constant 0.000000e+00 : f32
    %517 = vector.shape_cast %511 : vector<16x1xi1> to vector<16x1xi1>
    %518 = vector.broadcast %517 : vector<16x1xi1> to vector<16x32xi1>
    %519 = vector.broadcast %cst_185 : f32 to vector<16x32xf32>
    %520 = arith.select %518, %519, %503 : vector<16x32xi1>, vector<16x32xf32>
    %cst_186 = arith.constant 0.000000e+00 : f32
    %521 = vector.shape_cast %516 : vector<16x1xi1> to vector<16x1xi1>
    %522 = vector.broadcast %521 : vector<16x1xi1> to vector<16x32xi1>
    %523 = vector.broadcast %cst_186 : f32 to vector<16x32xf32>
    %524 = arith.select %522, %523, %505 : vector<16x32xi1>, vector<16x32xf32>
    %525 = arith.truncf %520 : vector<16x32xf32> to vector<16x32xbf16>
    %526 = arith.truncf %497 : vector<16x32xf32> to vector<16x32xbf16>
    %527 = arith.truncf %524 : vector<16x32xf32> to vector<16x32xbf16>
    %528 = tpu.concatenate %525, %526, %527 in 1 : vector<16x32xbf16>, vector<16x32xbf16>, vector<16x32xbf16> -> vector<16x96xbf16>
    %cst_187 = arith.constant dense<0.000000e+00> : vector<16x32xf32>
    %529 = tpu.matmul %528, %498, %cst_187 {dimension_numbers = #tpu.dot_dimension_numbers<[1], [0], [0], [1], [0, 0, 1, 1], [], []>} : vector<16x96xbf16>, vector<96x32xbf16>, vector<16x32xf32> -> vector<16x32xf32>
    %cst_188 = arith.constant 0.000000e+00 : f32
    %530 = vector.broadcast %cst_188 : f32 to vector<1x32xf32>
    %531 = vector.extract_strided_slice %218 {offsets = [0, 0], sizes = [15, 32], strides = [1, 1]} : vector<16x32xf32> to vector<15x32xf32>
    %532 = tpu.concatenate %530, %531 in 0 : vector<1x32xf32>, vector<15x32xf32> -> vector<16x32xf32>
    %533 = vector.extract_strided_slice %218 {offsets = [1, 0], sizes = [15, 32], strides = [1, 1]} : vector<16x32xf32> to vector<15x32xf32>
    %534 = tpu.concatenate %533, %530 in 0 : vector<15x32xf32>, vector<1x32xf32> -> vector<16x32xf32>
    %535 = tpu.iota {dimensions = array<i32: 0>} : vector<16x1xi32>
    %c0_i32_189 = arith.constant 0 : i32
    %536 = vector.broadcast %c0_i32_189 : i32 to vector<16x1xi32>
    %537 = arith.cmpi eq, %535, %536 : vector<16x1xi32>
    %c8_i32_190 = arith.constant 8 : i32
    %538 = vector.broadcast %c8_i32_190 : i32 to vector<16x1xi32>
    %539 = arith.cmpi eq, %535, %538 : vector<16x1xi32>
    %540 = arith.ori %537, %539 : vector<16x1xi1>
    %c7_i32_191 = arith.constant 7 : i32
    %541 = vector.broadcast %c7_i32_191 : i32 to vector<16x1xi32>
    %542 = arith.cmpi eq, %535, %541 : vector<16x1xi32>
    %c15_i32_192 = arith.constant 15 : i32
    %543 = vector.broadcast %c15_i32_192 : i32 to vector<16x1xi32>
    %544 = arith.cmpi eq, %535, %543 : vector<16x1xi32>
    %545 = arith.ori %542, %544 : vector<16x1xi1>
    %cst_193 = arith.constant 0.000000e+00 : f32
    %546 = vector.shape_cast %540 : vector<16x1xi1> to vector<16x1xi1>
    %547 = vector.broadcast %546 : vector<16x1xi1> to vector<16x32xi1>
    %548 = vector.broadcast %cst_193 : f32 to vector<16x32xf32>
    %549 = arith.select %547, %548, %532 : vector<16x32xi1>, vector<16x32xf32>
    %cst_194 = arith.constant 0.000000e+00 : f32
    %550 = vector.shape_cast %545 : vector<16x1xi1> to vector<16x1xi1>
    %551 = vector.broadcast %550 : vector<16x1xi1> to vector<16x32xi1>
    %552 = vector.broadcast %cst_194 : f32 to vector<16x32xf32>
    %553 = arith.select %551, %552, %534 : vector<16x32xi1>, vector<16x32xf32>
    %554 = arith.truncf %549 : vector<16x32xf32> to vector<16x32xbf16>
    %555 = arith.truncf %218 : vector<16x32xf32> to vector<16x32xbf16>
    %556 = arith.truncf %553 : vector<16x32xf32> to vector<16x32xbf16>
    %557 = tpu.concatenate %554, %555, %556 in 1 : vector<16x32xbf16>, vector<16x32xbf16>, vector<16x32xbf16> -> vector<16x96xbf16>
    %cst_195 = arith.constant dense<0.000000e+00> : vector<16x32xf32>
    %558 = tpu.matmul %557, %499, %cst_195 {dimension_numbers = #tpu.dot_dimension_numbers<[1], [0], [0], [1], [0, 0, 1, 1], [], []>} : vector<16x96xbf16>, vector<96x32xbf16>, vector<16x32xf32> -> vector<16x32xf32>
    %559 = arith.addf %529, %558 : vector<16x32xf32>
    %560 = vector.broadcast %500 : vector<1x32xf32> to vector<16x32xf32>
    %561 = arith.addf %559, %560 : vector<16x32xf32>
    %cst_196 = arith.constant 0.000000e+00 : f32
    %562 = vector.broadcast %cst_196 : f32 to vector<16x32xf32>
    %563 = arith.maximumf %561, %562 : vector<16x32xf32>
    %c2288 = arith.constant 2288 : index
    %c0_197 = arith.constant 0 : index
    %564 = vector.load %arg2[%c2288, %c0_197] : memref<2736x128xbf16, #tpu.memory_space<vmem>>, vector<96x32xbf16>
    %c15 = arith.constant 15 : index
    %c0_198 = arith.constant 0 : index
    %565 = vector.load %arg3[%c15, %c0_198] : memref<23x128xf32, #tpu.memory_space<vmem>>, vector<1x32xf32>
    %cst_199 = arith.constant 0.000000e+00 : f32
    %566 = vector.broadcast %cst_199 : f32 to vector<1x32xf32>
    %567 = vector.extract_strided_slice %563 {offsets = [0, 0], sizes = [15, 32], strides = [1, 1]} : vector<16x32xf32> to vector<15x32xf32>
    %568 = tpu.concatenate %566, %567 in 0 : vector<1x32xf32>, vector<15x32xf32> -> vector<16x32xf32>
    %569 = vector.extract_strided_slice %563 {offsets = [1, 0], sizes = [15, 32], strides = [1, 1]} : vector<16x32xf32> to vector<15x32xf32>
    %570 = tpu.concatenate %569, %566 in 0 : vector<15x32xf32>, vector<1x32xf32> -> vector<16x32xf32>
    %571 = tpu.iota {dimensions = array<i32: 0>} : vector<16x1xi32>
    %c0_i32_200 = arith.constant 0 : i32
    %572 = vector.broadcast %c0_i32_200 : i32 to vector<16x1xi32>
    %573 = arith.cmpi eq, %571, %572 : vector<16x1xi32>
    %c8_i32_201 = arith.constant 8 : i32
    %574 = vector.broadcast %c8_i32_201 : i32 to vector<16x1xi32>
    %575 = arith.cmpi eq, %571, %574 : vector<16x1xi32>
    %576 = arith.ori %573, %575 : vector<16x1xi1>
    %c7_i32_202 = arith.constant 7 : i32
    %577 = vector.broadcast %c7_i32_202 : i32 to vector<16x1xi32>
    %578 = arith.cmpi eq, %571, %577 : vector<16x1xi32>
    %c15_i32_203 = arith.constant 15 : i32
    %579 = vector.broadcast %c15_i32_203 : i32 to vector<16x1xi32>
    %580 = arith.cmpi eq, %571, %579 : vector<16x1xi32>
    %581 = arith.ori %578, %580 : vector<16x1xi1>
    %cst_204 = arith.constant 0.000000e+00 : f32
    %582 = vector.shape_cast %576 : vector<16x1xi1> to vector<16x1xi1>
    %583 = vector.broadcast %582 : vector<16x1xi1> to vector<16x32xi1>
    %584 = vector.broadcast %cst_204 : f32 to vector<16x32xf32>
    %585 = arith.select %583, %584, %568 : vector<16x32xi1>, vector<16x32xf32>
    %cst_205 = arith.constant 0.000000e+00 : f32
    %586 = vector.shape_cast %581 : vector<16x1xi1> to vector<16x1xi1>
    %587 = vector.broadcast %586 : vector<16x1xi1> to vector<16x32xi1>
    %588 = vector.broadcast %cst_205 : f32 to vector<16x32xf32>
    %589 = arith.select %587, %588, %570 : vector<16x32xi1>, vector<16x32xf32>
    %590 = arith.truncf %585 : vector<16x32xf32> to vector<16x32xbf16>
    %591 = arith.truncf %563 : vector<16x32xf32> to vector<16x32xbf16>
    %592 = arith.truncf %589 : vector<16x32xf32> to vector<16x32xbf16>
    %593 = tpu.concatenate %590, %591, %592 in 1 : vector<16x32xbf16>, vector<16x32xbf16>, vector<16x32xbf16> -> vector<16x96xbf16>
    %cst_206 = arith.constant dense<0.000000e+00> : vector<16x32xf32>
    %594 = tpu.matmul %593, %564, %cst_206 {dimension_numbers = #tpu.dot_dimension_numbers<[1], [0], [0], [1], [0, 0, 1, 1], [], []>} : vector<16x96xbf16>, vector<96x32xbf16>, vector<16x32xf32> -> vector<16x32xf32>
    %595 = vector.broadcast %565 : vector<1x32xf32> to vector<16x32xf32>
    %596 = arith.addf %594, %595 : vector<16x32xf32>
    %cst_207 = arith.constant 0.000000e+00 : f32
    %597 = vector.broadcast %cst_207 : f32 to vector<16x32xf32>
    %598 = arith.maximumf %596, %597 : vector<16x32xf32>
    %c2384 = arith.constant 2384 : index
    %c0_208 = arith.constant 0 : index
    %599 = vector.load %arg2[%c2384, %c0_208] : memref<2736x128xbf16, #tpu.memory_space<vmem>>, vector<32x16xbf16>
    %c2416 = arith.constant 2416 : index
    %c0_209 = arith.constant 0 : index
    %600 = vector.load %arg2[%c2416, %c0_209] : memref<2736x128xbf16, #tpu.memory_space<vmem>>, vector<32x16xbf16>
    %c16_210 = arith.constant 16 : index
    %c0_211 = arith.constant 0 : index
    %601 = vector.load %arg3[%c16_210, %c0_211] : memref<23x128xf32, #tpu.memory_space<vmem>>, vector<1x16xf32>
    %602 = arith.truncf %598 : vector<16x32xf32> to vector<16x32xbf16>
    %cst_212 = arith.constant dense<0.000000e+00> : vector<16x16xf32>
    %603 = tpu.matmul %602, %599, %cst_212 {dimension_numbers = #tpu.dot_dimension_numbers<[1], [0], [0], [1], [0, 0, 1, 1], [], []>} : vector<16x32xbf16>, vector<32x16xbf16>, vector<16x16xf32> -> vector<16x16xf32>
    %cst_213 = arith.constant dense<0.000000e+00> : vector<16x16xf32>
    %604 = tpu.matmul %602, %600, %cst_213 {dimension_numbers = #tpu.dot_dimension_numbers<[1], [0], [0], [1], [0, 0, 1, 1], [], []>} : vector<16x32xbf16>, vector<32x16xbf16>, vector<16x16xf32> -> vector<16x16xf32>
    %c0_214 = arith.constant 0 : index
    %c0_215 = arith.constant 0 : index
    %605 = vector.load %arg4[%c0_214, %c0_215] : memref<64x32xbf16, #tpu.memory_space<vmem>>, vector<32x16xbf16>
    %c0_216 = arith.constant 0 : index
    %c0_217 = arith.constant 0 : index
    %606 = vector.load %arg5[%c0_216, %c0_217] : memref<64x32xbf16, #tpu.memory_space<vmem>>, vector<32x16xbf16>
    %607 = arith.truncf %603 : vector<16x16xf32> to vector<16x16xbf16>
    %cst_218 = arith.constant dense<0.000000e+00> : vector<32x16xf32>
    %608 = tpu.matmul %605, %607, %cst_218 {dimension_numbers = #tpu.dot_dimension_numbers<[1], [0], [0], [1], [0, 0, 1, 1], [], []>} : vector<32x16xbf16>, vector<16x16xbf16>, vector<32x16xf32> -> vector<32x16xf32>
    %609 = arith.truncf %604 : vector<16x16xf32> to vector<16x16xbf16>
    %cst_219 = arith.constant dense<0.000000e+00> : vector<32x16xf32>
    %610 = tpu.matmul %606, %609, %cst_219 {dimension_numbers = #tpu.dot_dimension_numbers<[1], [0], [0], [1], [0, 0, 1, 1], [], []>} : vector<32x16xbf16>, vector<16x16xbf16>, vector<32x16xf32> -> vector<32x16xf32>
    %611 = arith.addf %608, %610 : vector<32x16xf32>
    %612 = vector.broadcast %601 : vector<1x16xf32> to vector<32x16xf32>
    %613 = arith.addf %611, %612 : vector<32x16xf32>
    %c2448 = arith.constant 2448 : index
    %c0_220 = arith.constant 0 : index
    %614 = vector.load %arg2[%c2448, %c0_220] : memref<2736x128xbf16, #tpu.memory_space<vmem>>, vector<48x16xbf16>
    %c2496 = arith.constant 2496 : index
    %c0_221 = arith.constant 0 : index
    %615 = vector.load %arg2[%c2496, %c0_221] : memref<2736x128xbf16, #tpu.memory_space<vmem>>, vector<48x16xbf16>
    %c17 = arith.constant 17 : index
    %c0_222 = arith.constant 0 : index
    %616 = vector.load %arg3[%c17, %c0_222] : memref<23x128xf32, #tpu.memory_space<vmem>>, vector<1x16xf32>
    %cst_223 = arith.constant 0.000000e+00 : f32
    %617 = vector.broadcast %cst_223 : f32 to vector<1x16xf32>
    %618 = vector.extract_strided_slice %613 {offsets = [0, 0], sizes = [31, 16], strides = [1, 1]} : vector<32x16xf32> to vector<31x16xf32>
    %619 = tpu.concatenate %617, %618 in 0 : vector<1x16xf32>, vector<31x16xf32> -> vector<32x16xf32>
    %620 = vector.extract_strided_slice %613 {offsets = [1, 0], sizes = [31, 16], strides = [1, 1]} : vector<32x16xf32> to vector<31x16xf32>
    %621 = tpu.concatenate %620, %617 in 0 : vector<31x16xf32>, vector<1x16xf32> -> vector<32x16xf32>
    %622 = tpu.iota {dimensions = array<i32: 0>} : vector<32x1xi32>
    %c0_i32_224 = arith.constant 0 : i32
    %623 = vector.broadcast %c0_i32_224 : i32 to vector<32x1xi32>
    %624 = arith.cmpi eq, %622, %623 : vector<32x1xi32>
    %c16_i32_225 = arith.constant 16 : i32
    %625 = vector.broadcast %c16_i32_225 : i32 to vector<32x1xi32>
    %626 = arith.cmpi eq, %622, %625 : vector<32x1xi32>
    %627 = arith.ori %624, %626 : vector<32x1xi1>
    %c15_i32_226 = arith.constant 15 : i32
    %628 = vector.broadcast %c15_i32_226 : i32 to vector<32x1xi32>
    %629 = arith.cmpi eq, %622, %628 : vector<32x1xi32>
    %c31_i32_227 = arith.constant 31 : i32
    %630 = vector.broadcast %c31_i32_227 : i32 to vector<32x1xi32>
    %631 = arith.cmpi eq, %622, %630 : vector<32x1xi32>
    %632 = arith.ori %629, %631 : vector<32x1xi1>
    %cst_228 = arith.constant 0.000000e+00 : f32
    %633 = vector.shape_cast %627 : vector<32x1xi1> to vector<32x1xi1>
    %634 = vector.broadcast %633 : vector<32x1xi1> to vector<32x16xi1>
    %635 = vector.broadcast %cst_228 : f32 to vector<32x16xf32>
    %636 = arith.select %634, %635, %619 : vector<32x16xi1>, vector<32x16xf32>
    %cst_229 = arith.constant 0.000000e+00 : f32
    %637 = vector.shape_cast %632 : vector<32x1xi1> to vector<32x1xi1>
    %638 = vector.broadcast %637 : vector<32x1xi1> to vector<32x16xi1>
    %639 = vector.broadcast %cst_229 : f32 to vector<32x16xf32>
    %640 = arith.select %638, %639, %621 : vector<32x16xi1>, vector<32x16xf32>
    %641 = arith.truncf %636 : vector<32x16xf32> to vector<32x16xbf16>
    %642 = arith.truncf %613 : vector<32x16xf32> to vector<32x16xbf16>
    %643 = arith.truncf %640 : vector<32x16xf32> to vector<32x16xbf16>
    %644 = tpu.concatenate %641, %642, %643 in 1 : vector<32x16xbf16>, vector<32x16xbf16>, vector<32x16xbf16> -> vector<32x48xbf16>
    %cst_230 = arith.constant dense<0.000000e+00> : vector<32x16xf32>
    %645 = tpu.matmul %644, %614, %cst_230 {dimension_numbers = #tpu.dot_dimension_numbers<[1], [0], [0], [1], [0, 0, 1, 1], [], []>} : vector<32x48xbf16>, vector<48x16xbf16>, vector<32x16xf32> -> vector<32x16xf32>
    %cst_231 = arith.constant 0.000000e+00 : f32
    %646 = vector.broadcast %cst_231 : f32 to vector<1x16xf32>
    %647 = vector.extract_strided_slice %144 {offsets = [0, 0], sizes = [31, 16], strides = [1, 1]} : vector<32x16xf32> to vector<31x16xf32>
    %648 = tpu.concatenate %646, %647 in 0 : vector<1x16xf32>, vector<31x16xf32> -> vector<32x16xf32>
    %649 = vector.extract_strided_slice %144 {offsets = [1, 0], sizes = [31, 16], strides = [1, 1]} : vector<32x16xf32> to vector<31x16xf32>
    %650 = tpu.concatenate %649, %646 in 0 : vector<31x16xf32>, vector<1x16xf32> -> vector<32x16xf32>
    %651 = tpu.iota {dimensions = array<i32: 0>} : vector<32x1xi32>
    %c0_i32_232 = arith.constant 0 : i32
    %652 = vector.broadcast %c0_i32_232 : i32 to vector<32x1xi32>
    %653 = arith.cmpi eq, %651, %652 : vector<32x1xi32>
    %c16_i32_233 = arith.constant 16 : i32
    %654 = vector.broadcast %c16_i32_233 : i32 to vector<32x1xi32>
    %655 = arith.cmpi eq, %651, %654 : vector<32x1xi32>
    %656 = arith.ori %653, %655 : vector<32x1xi1>
    %c15_i32_234 = arith.constant 15 : i32
    %657 = vector.broadcast %c15_i32_234 : i32 to vector<32x1xi32>
    %658 = arith.cmpi eq, %651, %657 : vector<32x1xi32>
    %c31_i32_235 = arith.constant 31 : i32
    %659 = vector.broadcast %c31_i32_235 : i32 to vector<32x1xi32>
    %660 = arith.cmpi eq, %651, %659 : vector<32x1xi32>
    %661 = arith.ori %658, %660 : vector<32x1xi1>
    %cst_236 = arith.constant 0.000000e+00 : f32
    %662 = vector.shape_cast %656 : vector<32x1xi1> to vector<32x1xi1>
    %663 = vector.broadcast %662 : vector<32x1xi1> to vector<32x16xi1>
    %664 = vector.broadcast %cst_236 : f32 to vector<32x16xf32>
    %665 = arith.select %663, %664, %648 : vector<32x16xi1>, vector<32x16xf32>
    %cst_237 = arith.constant 0.000000e+00 : f32
    %666 = vector.shape_cast %661 : vector<32x1xi1> to vector<32x1xi1>
    %667 = vector.broadcast %666 : vector<32x1xi1> to vector<32x16xi1>
    %668 = vector.broadcast %cst_237 : f32 to vector<32x16xf32>
    %669 = arith.select %667, %668, %650 : vector<32x16xi1>, vector<32x16xf32>
    %670 = arith.truncf %665 : vector<32x16xf32> to vector<32x16xbf16>
    %671 = arith.truncf %144 : vector<32x16xf32> to vector<32x16xbf16>
    %672 = arith.truncf %669 : vector<32x16xf32> to vector<32x16xbf16>
    %673 = tpu.concatenate %670, %671, %672 in 1 : vector<32x16xbf16>, vector<32x16xbf16>, vector<32x16xbf16> -> vector<32x48xbf16>
    %cst_238 = arith.constant dense<0.000000e+00> : vector<32x16xf32>
    %674 = tpu.matmul %673, %615, %cst_238 {dimension_numbers = #tpu.dot_dimension_numbers<[1], [0], [0], [1], [0, 0, 1, 1], [], []>} : vector<32x48xbf16>, vector<48x16xbf16>, vector<32x16xf32> -> vector<32x16xf32>
    %675 = arith.addf %645, %674 : vector<32x16xf32>
    %676 = vector.broadcast %616 : vector<1x16xf32> to vector<32x16xf32>
    %677 = arith.addf %675, %676 : vector<32x16xf32>
    %cst_239 = arith.constant 0.000000e+00 : f32
    %678 = vector.broadcast %cst_239 : f32 to vector<32x16xf32>
    %679 = arith.maximumf %677, %678 : vector<32x16xf32>
    %c2544 = arith.constant 2544 : index
    %c0_240 = arith.constant 0 : index
    %680 = vector.load %arg2[%c2544, %c0_240] : memref<2736x128xbf16, #tpu.memory_space<vmem>>, vector<48x16xbf16>
    %c18 = arith.constant 18 : index
    %c0_241 = arith.constant 0 : index
    %681 = vector.load %arg3[%c18, %c0_241] : memref<23x128xf32, #tpu.memory_space<vmem>>, vector<1x16xf32>
    %cst_242 = arith.constant 0.000000e+00 : f32
    %682 = vector.broadcast %cst_242 : f32 to vector<1x16xf32>
    %683 = vector.extract_strided_slice %679 {offsets = [0, 0], sizes = [31, 16], strides = [1, 1]} : vector<32x16xf32> to vector<31x16xf32>
    %684 = tpu.concatenate %682, %683 in 0 : vector<1x16xf32>, vector<31x16xf32> -> vector<32x16xf32>
    %685 = vector.extract_strided_slice %679 {offsets = [1, 0], sizes = [31, 16], strides = [1, 1]} : vector<32x16xf32> to vector<31x16xf32>
    %686 = tpu.concatenate %685, %682 in 0 : vector<31x16xf32>, vector<1x16xf32> -> vector<32x16xf32>
    %687 = tpu.iota {dimensions = array<i32: 0>} : vector<32x1xi32>
    %c0_i32_243 = arith.constant 0 : i32
    %688 = vector.broadcast %c0_i32_243 : i32 to vector<32x1xi32>
    %689 = arith.cmpi eq, %687, %688 : vector<32x1xi32>
    %c16_i32_244 = arith.constant 16 : i32
    %690 = vector.broadcast %c16_i32_244 : i32 to vector<32x1xi32>
    %691 = arith.cmpi eq, %687, %690 : vector<32x1xi32>
    %692 = arith.ori %689, %691 : vector<32x1xi1>
    %c15_i32_245 = arith.constant 15 : i32
    %693 = vector.broadcast %c15_i32_245 : i32 to vector<32x1xi32>
    %694 = arith.cmpi eq, %687, %693 : vector<32x1xi32>
    %c31_i32_246 = arith.constant 31 : i32
    %695 = vector.broadcast %c31_i32_246 : i32 to vector<32x1xi32>
    %696 = arith.cmpi eq, %687, %695 : vector<32x1xi32>
    %697 = arith.ori %694, %696 : vector<32x1xi1>
    %cst_247 = arith.constant 0.000000e+00 : f32
    %698 = vector.shape_cast %692 : vector<32x1xi1> to vector<32x1xi1>
    %699 = vector.broadcast %698 : vector<32x1xi1> to vector<32x16xi1>
    %700 = vector.broadcast %cst_247 : f32 to vector<32x16xf32>
    %701 = arith.select %699, %700, %684 : vector<32x16xi1>, vector<32x16xf32>
    %cst_248 = arith.constant 0.000000e+00 : f32
    %702 = vector.shape_cast %697 : vector<32x1xi1> to vector<32x1xi1>
    %703 = vector.broadcast %702 : vector<32x1xi1> to vector<32x16xi1>
    %704 = vector.broadcast %cst_248 : f32 to vector<32x16xf32>
    %705 = arith.select %703, %704, %686 : vector<32x16xi1>, vector<32x16xf32>
    %706 = arith.truncf %701 : vector<32x16xf32> to vector<32x16xbf16>
    %707 = arith.truncf %679 : vector<32x16xf32> to vector<32x16xbf16>
    %708 = arith.truncf %705 : vector<32x16xf32> to vector<32x16xbf16>
    %709 = tpu.concatenate %706, %707, %708 in 1 : vector<32x16xbf16>, vector<32x16xbf16>, vector<32x16xbf16> -> vector<32x48xbf16>
    %cst_249 = arith.constant dense<0.000000e+00> : vector<32x16xf32>
    %710 = tpu.matmul %709, %680, %cst_249 {dimension_numbers = #tpu.dot_dimension_numbers<[1], [0], [0], [1], [0, 0, 1, 1], [], []>} : vector<32x48xbf16>, vector<48x16xbf16>, vector<32x16xf32> -> vector<32x16xf32>
    %711 = vector.broadcast %681 : vector<1x16xf32> to vector<32x16xf32>
    %712 = arith.addf %710, %711 : vector<32x16xf32>
    %cst_250 = arith.constant 0.000000e+00 : f32
    %713 = vector.broadcast %cst_250 : f32 to vector<32x16xf32>
    %714 = arith.maximumf %712, %713 : vector<32x16xf32>
    %c2592 = arith.constant 2592 : index
    %c0_251 = arith.constant 0 : index
    %715 = vector.load %arg2[%c2592, %c0_251] : memref<2736x128xbf16, #tpu.memory_space<vmem>>, vector<16x8xbf16>
    %c2608 = arith.constant 2608 : index
    %c0_252 = arith.constant 0 : index
    %716 = vector.load %arg2[%c2608, %c0_252] : memref<2736x128xbf16, #tpu.memory_space<vmem>>, vector<16x8xbf16>
    %c19 = arith.constant 19 : index
    %c0_253 = arith.constant 0 : index
    %717 = vector.load %arg3[%c19, %c0_253] : memref<23x128xf32, #tpu.memory_space<vmem>>, vector<1x8xf32>
    %718 = arith.truncf %714 : vector<32x16xf32> to vector<32x16xbf16>
    %cst_254 = arith.constant dense<0.000000e+00> : vector<32x8xf32>
    %719 = tpu.matmul %718, %715, %cst_254 {dimension_numbers = #tpu.dot_dimension_numbers<[1], [0], [0], [1], [0, 0, 1, 1], [], []>} : vector<32x16xbf16>, vector<16x8xbf16>, vector<32x8xf32> -> vector<32x8xf32>
    %cst_255 = arith.constant dense<0.000000e+00> : vector<32x8xf32>
    %720 = tpu.matmul %718, %716, %cst_255 {dimension_numbers = #tpu.dot_dimension_numbers<[1], [0], [0], [1], [0, 0, 1, 1], [], []>} : vector<32x16xbf16>, vector<16x8xbf16>, vector<32x8xf32> -> vector<32x8xf32>
    %c0_256 = arith.constant 0 : index
    %c0_257 = arith.constant 0 : index
    %721 = vector.load %arg4[%c0_256, %c0_257] : memref<64x32xbf16, #tpu.memory_space<vmem>>, vector<64x32xbf16>
    %c0_258 = arith.constant 0 : index
    %c0_259 = arith.constant 0 : index
    %722 = vector.load %arg5[%c0_258, %c0_259] : memref<64x32xbf16, #tpu.memory_space<vmem>>, vector<64x32xbf16>
    %723 = arith.truncf %719 : vector<32x8xf32> to vector<32x8xbf16>
    %cst_260 = arith.constant dense<0.000000e+00> : vector<64x8xf32>
    %724 = tpu.matmul %721, %723, %cst_260 {dimension_numbers = #tpu.dot_dimension_numbers<[1], [0], [0], [1], [0, 0, 1, 1], [], []>} : vector<64x32xbf16>, vector<32x8xbf16>, vector<64x8xf32> -> vector<64x8xf32>
    %725 = arith.truncf %720 : vector<32x8xf32> to vector<32x8xbf16>
    %cst_261 = arith.constant dense<0.000000e+00> : vector<64x8xf32>
    %726 = tpu.matmul %722, %725, %cst_261 {dimension_numbers = #tpu.dot_dimension_numbers<[1], [0], [0], [1], [0, 0, 1, 1], [], []>} : vector<64x32xbf16>, vector<32x8xbf16>, vector<64x8xf32> -> vector<64x8xf32>
    %727 = arith.addf %724, %726 : vector<64x8xf32>
    %728 = vector.broadcast %717 : vector<1x8xf32> to vector<64x8xf32>
    %729 = arith.addf %727, %728 : vector<64x8xf32>
    %c2624 = arith.constant 2624 : index
    %c0_262 = arith.constant 0 : index
    %730 = vector.load %arg2[%c2624, %c0_262] : memref<2736x128xbf16, #tpu.memory_space<vmem>>, vector<24x8xbf16>
    %c2656 = arith.constant 2656 : index
    %c0_263 = arith.constant 0 : index
    %731 = vector.load %arg2[%c2656, %c0_263] : memref<2736x128xbf16, #tpu.memory_space<vmem>>, vector<24x8xbf16>
    %c20 = arith.constant 20 : index
    %c0_264 = arith.constant 0 : index
    %732 = vector.load %arg3[%c20, %c0_264] : memref<23x128xf32, #tpu.memory_space<vmem>>, vector<1x8xf32>
    %cst_265 = arith.constant 0.000000e+00 : f32
    %733 = vector.broadcast %cst_265 : f32 to vector<1x8xf32>
    %734 = vector.extract_strided_slice %729 {offsets = [0, 0], sizes = [63, 8], strides = [1, 1]} : vector<64x8xf32> to vector<63x8xf32>
    %735 = tpu.concatenate %733, %734 in 0 : vector<1x8xf32>, vector<63x8xf32> -> vector<64x8xf32>
    %736 = vector.extract_strided_slice %729 {offsets = [1, 0], sizes = [63, 8], strides = [1, 1]} : vector<64x8xf32> to vector<63x8xf32>
    %737 = tpu.concatenate %736, %733 in 0 : vector<63x8xf32>, vector<1x8xf32> -> vector<64x8xf32>
    %738 = tpu.iota {dimensions = array<i32: 0>} : vector<64x1xi32>
    %c0_i32_266 = arith.constant 0 : i32
    %739 = vector.broadcast %c0_i32_266 : i32 to vector<64x1xi32>
    %740 = arith.cmpi eq, %738, %739 : vector<64x1xi32>
    %c32_i32_267 = arith.constant 32 : i32
    %741 = vector.broadcast %c32_i32_267 : i32 to vector<64x1xi32>
    %742 = arith.cmpi eq, %738, %741 : vector<64x1xi32>
    %743 = arith.ori %740, %742 : vector<64x1xi1>
    %c31_i32_268 = arith.constant 31 : i32
    %744 = vector.broadcast %c31_i32_268 : i32 to vector<64x1xi32>
    %745 = arith.cmpi eq, %738, %744 : vector<64x1xi32>
    %c63_i32_269 = arith.constant 63 : i32
    %746 = vector.broadcast %c63_i32_269 : i32 to vector<64x1xi32>
    %747 = arith.cmpi eq, %738, %746 : vector<64x1xi32>
    %748 = arith.ori %745, %747 : vector<64x1xi1>
    %cst_270 = arith.constant 0.000000e+00 : f32
    %749 = vector.shape_cast %743 : vector<64x1xi1> to vector<64x1xi1>
    %750 = vector.broadcast %749 : vector<64x1xi1> to vector<64x8xi1>
    %751 = vector.broadcast %cst_270 : f32 to vector<64x8xf32>
    %752 = arith.select %750, %751, %735 : vector<64x8xi1>, vector<64x8xf32>
    %cst_271 = arith.constant 0.000000e+00 : f32
    %753 = vector.shape_cast %748 : vector<64x1xi1> to vector<64x1xi1>
    %754 = vector.broadcast %753 : vector<64x1xi1> to vector<64x8xi1>
    %755 = vector.broadcast %cst_271 : f32 to vector<64x8xf32>
    %756 = arith.select %754, %755, %737 : vector<64x8xi1>, vector<64x8xf32>
    %757 = arith.truncf %752 : vector<64x8xf32> to vector<64x8xbf16>
    %758 = arith.truncf %729 : vector<64x8xf32> to vector<64x8xbf16>
    %759 = arith.truncf %756 : vector<64x8xf32> to vector<64x8xbf16>
    %760 = tpu.concatenate %757, %758, %759 in 1 : vector<64x8xbf16>, vector<64x8xbf16>, vector<64x8xbf16> -> vector<64x24xbf16>
    %cst_272 = arith.constant dense<0.000000e+00> : vector<64x8xf32>
    %761 = tpu.matmul %760, %730, %cst_272 {dimension_numbers = #tpu.dot_dimension_numbers<[1], [0], [0], [1], [0, 0, 1, 1], [], []>} : vector<64x24xbf16>, vector<24x8xbf16>, vector<64x8xf32> -> vector<64x8xf32>
    %cst_273 = arith.constant 0.000000e+00 : f32
    %762 = vector.broadcast %cst_273 : f32 to vector<1x8xf32>
    %763 = vector.extract_strided_slice %70 {offsets = [0, 0], sizes = [63, 8], strides = [1, 1]} : vector<64x8xf32> to vector<63x8xf32>
    %764 = tpu.concatenate %762, %763 in 0 : vector<1x8xf32>, vector<63x8xf32> -> vector<64x8xf32>
    %765 = vector.extract_strided_slice %70 {offsets = [1, 0], sizes = [63, 8], strides = [1, 1]} : vector<64x8xf32> to vector<63x8xf32>
    %766 = tpu.concatenate %765, %762 in 0 : vector<63x8xf32>, vector<1x8xf32> -> vector<64x8xf32>
    %767 = tpu.iota {dimensions = array<i32: 0>} : vector<64x1xi32>
    %c0_i32_274 = arith.constant 0 : i32
    %768 = vector.broadcast %c0_i32_274 : i32 to vector<64x1xi32>
    %769 = arith.cmpi eq, %767, %768 : vector<64x1xi32>
    %c32_i32_275 = arith.constant 32 : i32
    %770 = vector.broadcast %c32_i32_275 : i32 to vector<64x1xi32>
    %771 = arith.cmpi eq, %767, %770 : vector<64x1xi32>
    %772 = arith.ori %769, %771 : vector<64x1xi1>
    %c31_i32_276 = arith.constant 31 : i32
    %773 = vector.broadcast %c31_i32_276 : i32 to vector<64x1xi32>
    %774 = arith.cmpi eq, %767, %773 : vector<64x1xi32>
    %c63_i32_277 = arith.constant 63 : i32
    %775 = vector.broadcast %c63_i32_277 : i32 to vector<64x1xi32>
    %776 = arith.cmpi eq, %767, %775 : vector<64x1xi32>
    %777 = arith.ori %774, %776 : vector<64x1xi1>
    %cst_278 = arith.constant 0.000000e+00 : f32
    %778 = vector.shape_cast %772 : vector<64x1xi1> to vector<64x1xi1>
    %779 = vector.broadcast %778 : vector<64x1xi1> to vector<64x8xi1>
    %780 = vector.broadcast %cst_278 : f32 to vector<64x8xf32>
    %781 = arith.select %779, %780, %764 : vector<64x8xi1>, vector<64x8xf32>
    %cst_279 = arith.constant 0.000000e+00 : f32
    %782 = vector.shape_cast %777 : vector<64x1xi1> to vector<64x1xi1>
    %783 = vector.broadcast %782 : vector<64x1xi1> to vector<64x8xi1>
    %784 = vector.broadcast %cst_279 : f32 to vector<64x8xf32>
    %785 = arith.select %783, %784, %766 : vector<64x8xi1>, vector<64x8xf32>
    %786 = arith.truncf %781 : vector<64x8xf32> to vector<64x8xbf16>
    %787 = arith.truncf %70 : vector<64x8xf32> to vector<64x8xbf16>
    %788 = arith.truncf %785 : vector<64x8xf32> to vector<64x8xbf16>
    %789 = tpu.concatenate %786, %787, %788 in 1 : vector<64x8xbf16>, vector<64x8xbf16>, vector<64x8xbf16> -> vector<64x24xbf16>
    %cst_280 = arith.constant dense<0.000000e+00> : vector<64x8xf32>
    %790 = tpu.matmul %789, %731, %cst_280 {dimension_numbers = #tpu.dot_dimension_numbers<[1], [0], [0], [1], [0, 0, 1, 1], [], []>} : vector<64x24xbf16>, vector<24x8xbf16>, vector<64x8xf32> -> vector<64x8xf32>
    %791 = arith.addf %761, %790 : vector<64x8xf32>
    %792 = vector.broadcast %732 : vector<1x8xf32> to vector<64x8xf32>
    %793 = arith.addf %791, %792 : vector<64x8xf32>
    %cst_281 = arith.constant 0.000000e+00 : f32
    %794 = vector.broadcast %cst_281 : f32 to vector<64x8xf32>
    %795 = arith.maximumf %793, %794 : vector<64x8xf32>
    %c2688 = arith.constant 2688 : index
    %c0_282 = arith.constant 0 : index
    %796 = vector.load %arg2[%c2688, %c0_282] : memref<2736x128xbf16, #tpu.memory_space<vmem>>, vector<24x8xbf16>
    %c21 = arith.constant 21 : index
    %c0_283 = arith.constant 0 : index
    %797 = vector.load %arg3[%c21, %c0_283] : memref<23x128xf32, #tpu.memory_space<vmem>>, vector<1x8xf32>
    %cst_284 = arith.constant 0.000000e+00 : f32
    %798 = vector.broadcast %cst_284 : f32 to vector<1x8xf32>
    %799 = vector.extract_strided_slice %795 {offsets = [0, 0], sizes = [63, 8], strides = [1, 1]} : vector<64x8xf32> to vector<63x8xf32>
    %800 = tpu.concatenate %798, %799 in 0 : vector<1x8xf32>, vector<63x8xf32> -> vector<64x8xf32>
    %801 = vector.extract_strided_slice %795 {offsets = [1, 0], sizes = [63, 8], strides = [1, 1]} : vector<64x8xf32> to vector<63x8xf32>
    %802 = tpu.concatenate %801, %798 in 0 : vector<63x8xf32>, vector<1x8xf32> -> vector<64x8xf32>
    %803 = tpu.iota {dimensions = array<i32: 0>} : vector<64x1xi32>
    %c0_i32_285 = arith.constant 0 : i32
    %804 = vector.broadcast %c0_i32_285 : i32 to vector<64x1xi32>
    %805 = arith.cmpi eq, %803, %804 : vector<64x1xi32>
    %c32_i32_286 = arith.constant 32 : i32
    %806 = vector.broadcast %c32_i32_286 : i32 to vector<64x1xi32>
    %807 = arith.cmpi eq, %803, %806 : vector<64x1xi32>
    %808 = arith.ori %805, %807 : vector<64x1xi1>
    %c31_i32_287 = arith.constant 31 : i32
    %809 = vector.broadcast %c31_i32_287 : i32 to vector<64x1xi32>
    %810 = arith.cmpi eq, %803, %809 : vector<64x1xi32>
    %c63_i32_288 = arith.constant 63 : i32
    %811 = vector.broadcast %c63_i32_288 : i32 to vector<64x1xi32>
    %812 = arith.cmpi eq, %803, %811 : vector<64x1xi32>
    %813 = arith.ori %810, %812 : vector<64x1xi1>
    %cst_289 = arith.constant 0.000000e+00 : f32
    %814 = vector.shape_cast %808 : vector<64x1xi1> to vector<64x1xi1>
    %815 = vector.broadcast %814 : vector<64x1xi1> to vector<64x8xi1>
    %816 = vector.broadcast %cst_289 : f32 to vector<64x8xf32>
    %817 = arith.select %815, %816, %800 : vector<64x8xi1>, vector<64x8xf32>
    %cst_290 = arith.constant 0.000000e+00 : f32
    %818 = vector.shape_cast %813 : vector<64x1xi1> to vector<64x1xi1>
    %819 = vector.broadcast %818 : vector<64x1xi1> to vector<64x8xi1>
    %820 = vector.broadcast %cst_290 : f32 to vector<64x8xf32>
    %821 = arith.select %819, %820, %802 : vector<64x8xi1>, vector<64x8xf32>
    %822 = arith.truncf %817 : vector<64x8xf32> to vector<64x8xbf16>
    %823 = arith.truncf %795 : vector<64x8xf32> to vector<64x8xbf16>
    %824 = arith.truncf %821 : vector<64x8xf32> to vector<64x8xbf16>
    %825 = tpu.concatenate %822, %823, %824 in 1 : vector<64x8xbf16>, vector<64x8xbf16>, vector<64x8xbf16> -> vector<64x24xbf16>
    %cst_291 = arith.constant dense<0.000000e+00> : vector<64x8xf32>
    %826 = tpu.matmul %825, %796, %cst_291 {dimension_numbers = #tpu.dot_dimension_numbers<[1], [0], [0], [1], [0, 0, 1, 1], [], []>} : vector<64x24xbf16>, vector<24x8xbf16>, vector<64x8xf32> -> vector<64x8xf32>
    %827 = vector.broadcast %797 : vector<1x8xf32> to vector<64x8xf32>
    %828 = arith.addf %826, %827 : vector<64x8xf32>
    %cst_292 = arith.constant 0.000000e+00 : f32
    %829 = vector.broadcast %cst_292 : f32 to vector<64x8xf32>
    %830 = arith.maximumf %828, %829 : vector<64x8xf32>
    %c2720 = arith.constant 2720 : index
    %c0_293 = arith.constant 0 : index
    %831 = vector.load %arg2[%c2720, %c0_293] : memref<2736x128xbf16, #tpu.memory_space<vmem>>, vector<8x4xbf16>
    %c22 = arith.constant 22 : index
    %c0_294 = arith.constant 0 : index
    %832 = vector.load %arg3[%c22, %c0_294] : memref<23x128xf32, #tpu.memory_space<vmem>>, vector<1x4xf32>
    %833 = arith.truncf %830 : vector<64x8xf32> to vector<64x8xbf16>
    %cst_295 = arith.constant dense<0.000000e+00> : vector<64x4xf32>
    %834 = tpu.matmul %833, %831, %cst_295 {dimension_numbers = #tpu.dot_dimension_numbers<[1], [0], [0], [1], [0, 0, 1, 1], [], []>} : vector<64x8xbf16>, vector<8x4xbf16>, vector<64x4xf32> -> vector<64x4xf32>
    %835 = vector.broadcast %832 : vector<1x4xf32> to vector<64x4xf32>
    %836 = arith.addf %834, %835 : vector<64x4xf32>
    %c0_296 = arith.constant 0 : index
    %c0_297 = arith.constant 0 : index
    %837 = vector.load %arg6[%c0_296, %c0_297] : memref<64x4xf32, #tpu.memory_space<vmem>>, vector<64x4xf32>
    tpu.vector_store %arg6[%c0_296, %c0_297], %836 {strides = array<i32>} : memref<64x4xf32, #tpu.memory_space<vmem>>, vector<64x4xf32>,
    return
  }
  func.func @transform_0(%arg0: i32) -> (i32, i32) {
    %c0_i32 = arith.constant 0 : i32
    %c0_i32_0 = arith.constant 0 : i32
    return %arg0, %c0_i32 : i32, i32
  }
  func.func @transform_1(%arg0: i32) -> (i32, i32) {
    %c0_i32 = arith.constant 0 : i32
    %c0_i32_0 = arith.constant 0 : i32
    %c0_i32_1 = arith.constant 0 : i32
    return %c0_i32, %c0_i32_0 : i32, i32
  }
  func.func @transform_2(%arg0: i32) -> (i32, i32) {
    %c0_i32 = arith.constant 0 : i32
    %c0_i32_0 = arith.constant 0 : i32
    %c0_i32_1 = arith.constant 0 : i32
    return %c0_i32, %c0_i32_0 : i32, i32
  }
  func.func @transform_3(%arg0: i32) -> (i32, i32) {
    %c0_i32 = arith.constant 0 : i32
    %c0_i32_0 = arith.constant 0 : i32
    %c0_i32_1 = arith.constant 0 : i32
    return %c0_i32, %c0_i32_0 : i32, i32
  }
  func.func @transform_4(%arg0: i32) -> (i32, i32) {
    %c0_i32 = arith.constant 0 : i32
    %c0_i32_0 = arith.constant 0 : i32
    %c0_i32_1 = arith.constant 0 : i32
    return %c0_i32, %c0_i32_0 : i32, i32
  }
  func.func @transform_5(%arg0: i32) -> (i32, i32) {
    %c0_i32 = arith.constant 0 : i32
    %c0_i32_0 = arith.constant 0 : i32
    return %arg0, %c0_i32 : i32, i32
  }
}

</mosaic_0001>

<bundles_post_ra>
// kernel: unet_forward.1
= control target key start
LH: loop header
LB: loop body
LE: loop exit
PB: predicated region body
PF: predicated region fallthrough
CT: control target
= control target key end

     0   :  { %10 = vsyncpa [#allocation4], 0  ;;  %s6375_s18 = smov [#allocation3]   ;;  %s7634_s0 = inlined_call_operand.vmem [shape: f32[64,4], index: 0, kind: input, shape index: {}]   ;;  %s7635_s1 = inlined_call_operand.hbm [shape: bf16[2736,128], index: 1, kind: input, shape index: {}]   ;;  %s7636_s2 = inlined_call_operand.vmem [shape: f32[23,128], index: 2, kind: input, shape index: {}]   ;;  %s7637_s3 = inlined_call_operand.vmem [shape: bf16[64,32], index: 3, kind: input, shape index: {}]   ;;  %s7638_s4 = inlined_call_operand.vmem [shape: bf16[64,32], index: 4, kind: input, shape index: {}]   ;;  %s7639_s5 = inlined_call_operand.vmem [shape: f32[64,4], index: 5, kind: output, shape index: {}]  }
   0x1   :  { %s18_s19 = sshll.u32 %s6375_s18, 4  ;;  %s6351_s22 = scalar_lea.hbm %s7635_s1, 21888  ;;  %s19_s19 = int_to_ptr.vmem [resolvable:$true] %s18_s19 }
   0x2   :  { %p6352_p0 = scmp.ne.s32.totalorder %s7635_s1, %s6351_s22  ;;  %p6355_p1 = scmp.lt.u32.totalorder %s6351_s22, %s7635_s1 }
   0x4   :  { %p6357_p2 = pnand %p6355_p1, %p6352_p0 }
   0x6   :  { %6360 = shalt.err (!%p6357_p2)
}
   0x7   :  { %s6361_s27 = scalar_lea.vmem %s19_s19, 21888  ;;  %p6366_p4 = scmp.lt.s32.totalorder %s19_s19, %s19_s19 }
   0x8   :  { %p6362_p3 = scmp.ne.s32.totalorder %s19_s19, %s6361_s27  ;;  %p6367_p5 = scmp.lt.s32.totalorder %s6361_s27, %s6361_s27 }
   0xa   :  { %p6368_p6 = por %p6367_p5, %p6366_p4 }
   0xc   :  { %p6369_p7 = pnand %p6368_p6, %p6362_p3 }
   0xe   :  { %6372 = shalt.err (!%p6369_p7)
}
   0xf   :  { %s6376_s28 = smov 64   ;;  %s6377_s29 = smov 4  }
  0x10   :  { %24 = dma.hbm_to_vmem [thread:$0]  %s7635_s1, 21888, %s19_s19, [#allocation4], %s6376_s28, %s6376_s28, %s6377_s29  }
  0x11   :  { %6373 = dma.done.wait [#allocation4], 21888  }
  0x12   :  { %6374 = vsyncadd [#allocation4], 4294945408  ;;  %v104_v0 = vlaneseq  ;;  %vm54_vm0 = vcmask 1040384   ;;  %vm79_vm1 = vcmask 1046528   ;;  %vm285_vm3 = vcmask 1045504   ;;  %v35_v4 = vld [vmem:[%s7634_s0] sm:$0xff] }
  0x13   :  { %v36_v5 = vld [vmem:[%s7634_s0 + $0x8] sm:$0xff]  ;;  %v37_v6 = vld [vmem:[%s7634_s0 + $0x10] sm:$0xff]  ;;  %v55_v11 = vrot.slane %v35_v4, 7  ;;  %v38_v12 = vld [vmem:[%s7634_s0 + $0x18] sm:$0xff]  ;;  %v80_v15 = vrot.slane %v35_v4, 1  ;;  %vm245_vm7 = vcmask 31744  }
  0x14   :  { %v6429_v1 = vshrl.u32 %v104_v0, 7  ;;  %v56_v8 = vrot.slane %v36_v5, 7  ;;  %v81_v9 = vrot.slane %v36_v5, 1  ;;  %v213_v10 = vpack.c.bf16 %v36_v5, %v35_v4  ;;  %v39_v13 = vld [vmem:[%s7634_s0 + $0x20] sm:$0xff]  ;;  %v40_v14 = vld [vmem:[%s7634_s0 + $0x28] sm:$0xff]  ;;  %v41_v19 = vld [vmem:[%s7634_s0 + $0x30] sm:$0xff] }
  0x15   :  { %v58_v16 = vrot.slane %v37_v6, 7  ;;  %v83_v17 = vrot.slane %v37_v6, 1  ;;  %v60_v18 = vrot.slane %v38_v12, 7  ;;  %v78_v20 = vsel %vm54_vm0, 0.0, %v55_v11  ;;  %v42_v24 = vld [vmem:[%s7634_s0 + $0x38] sm:$0xff]  ;;  %s6378_s0 = smov 8  }
  0x16   :  { %v6432_v2 = vadd.s32 24, %v6429_v1  ;;  %v6435_v3 = vadd.s32 56, %v6429_v1  ;;  %vm7659_vm2 = vcmp.eq.s32.totalorder %v6429_v1, 0  ;;  %v6450_v7 = vadd.s32 32, %v6429_v1  ;;  %225 = vrot.lane.b32.xlu0 %v213_v10, %s6377_s29  ;;  %v6167_v29 = vld [vmem:[#allocation3] sm:$0x3f]  }
  0x17   :  { %v85_v21 = vrot.slane %v38_v12, 1  ;;  %v214_v22 = vpack.c.bf16 %v38_v12, %v37_v6  ;;  %v87_v23 = vrot.slane %v39_v13, 1  ;;  %v82_v25 = vsel %vm79_vm1, %v80_v15, %v81_v9  ;;  %6151 = vmatprep.subr.msk.bf16.mxu0 %vm285_vm3, %v6167_v29  ;;  %s6379_s24 = smov 16   ;;  %s6380_s30 = smov 32  }
  0x18   :  { %7664 = vst [vmem:[#allocation6_spill] sm:$0xff] %v6435_v3  ;;  %vm7644_vm4 = vcmp.eq.s32.totalorder %v6432_v2, 31  ;;  %vm7641_vm5 = vcmp.eq.s32.totalorder %v6435_v3, 63  ;;  %7665 = vst [vmem:[#allocation7_spill] sm:$0xff] %v6450_v7  ;;  %v84_v26 = vsel %vm79_vm1, %v81_v9, %v83_v17  ;;  %v64_v27 = vrot.slane %v40_v14, 7 }
  0x19   :  { %v89_v28 = vrot.slane %v40_v14, 1  ;;  %v217_v30 = vpack.c.bf16 %v84_v26, %v82_v25  ;;  %v86_v31 = vsel %vm79_vm1, %v83_v17, %v85_v21  ;;  %v88_v32 = vsel %vm79_vm1, %v85_v21, %v87_v23  ;;  %v6169_v26 = vld [vmem:[#allocation3 + $0x10] ss:$0 sps:$4 sm:$0xff]  }
  0x1a   :  { %v204_v33 = vsel %vm7644_vm4, 0.0, %v88_v32  ;;  %v215_v34 = vpack.c.bf16 %v40_v14, %v39_v13  ;;  %v66_v35 = vrot.slane %v41_v19, 7  ;;  %v91_v36 = vrot.slane %v41_v19, 1  ;;  %227 = vrot.lane.b32.xlu0 %v214_v22, %s6377_s29 }
  0x1b   :  { %237 = vrot.lane.b32.xlu1 %v217_v30, %s6378_s0  ;;  %v218_v37 = vpack.c.bf16 %v204_v33, %v86_v31  ;;  %v68_v38 = vrot.slane %v42_v24, 7  ;;  %v93_v39 = vrot.slane %v42_v24, 1  ;;  %v90_v40 = vsel %vm79_vm1, %v87_v23, %v89_v28 }
  0x1c   :  { %v92_v41 = vsel %vm79_vm1, %v89_v28, %v91_v36  ;;  %v57_v42 = vsel %vm54_vm0, %v55_v11, %v56_v8  ;;  %v177_v43 = vsel %vm7659_vm2, 0.0, %v78_v20  ;;  %v59_v44 = vsel %vm54_vm0, %v56_v8, %v58_v16  ;;  %v5269_v20 = vld [vmem:[%s7636_s2] ss:$0 sm:$0xff] }
  0x1d   :  { %v216_v45 = vpack.c.bf16 %v42_v24, %v41_v19  ;;  %v103_v46 = vsel %vm79_vm1, %v93_v39, 0.0  ;;  %v209_v47 = vpack.c.bf16 %v57_v42, %v177_v43  ;;  %vm7640_vm6 = vcmp.eq.s32.totalorder %v6450_v7, 32  ;;  %v6168_v19 = vld [vmem:[#allocation3 + $0x8] sm:$0xff]  }
  0x1e   :  { %v208_v48 = vsel %vm7641_vm5, 0.0, %v103_v46  ;;  %v61_v49 = vsel %vm54_vm0, %v58_v16, %v60_v18  ;;  %v287_v50 = vsel %vm285_vm3, %v6167_v29, 0  ;;  %v62_v51 = vrot.slane %v39_v13, 7  ;;  %229 = vrot.lane.b32.xlu0 %v215_v34, %s6377_s29  ;;  %5759 = vmatprep.subr.bf16.mxu1 %v6168_v19 }
  0x1f   :  { %239 = vrot.lane.b32.xlu1 %v218_v37, %s6378_s0  ;;  %v219_v52 = vpack.c.bf16 %v92_v41, %v90_v40  ;;  %v210_v53 = vpack.c.bf16 %v61_v49, %v59_v44  ;;  %v67_v54 = vsel %vm54_vm0, %v64_v27, %v66_v35  ;;  %v94_v55 = vsel %vm79_vm1, %v91_v36, %v93_v39 }
  0x20   :  { %5750 = vmatpush3.bf16.msra.mxu0 %v287_v50  ;;  %v63_v56 = vsel %vm54_vm0, %v60_v18, %v62_v51  ;;  %v65_v57 = vsel %vm54_vm0, %v62_v51, %v64_v27  ;;  %v69_v58 = vsel %vm54_vm0, %v66_v35, %v68_v38  ;;  %v220_v62 = vpack.c.bf16 %v208_v48, %v94_v55 }
  0x21   :  { %v181_v59 = vsel %vm7640_vm6, 0.0, %v63_v56  ;;  %v212_v60 = vpack.c.bf16 %v69_v58, %v67_v54  ;;  %vm7660_vm8 = vcmask 64512   ;;  %vm276_vm9 = vcmask 97280   ;;  %5760 = vmatpush3.bf16.msra.mxu1 %v6168_v19 }
  0x22   :  { %v211_v61 = vpack.c.bf16 %v65_v57, %v181_v59  ;;  %241 = vrot.lane.b32.xlu0 %v219_v52, %s6378_s0  ;;  %vm7661_vm10 = vcmask 1043456   ;;  %vm7646_vm11 = vcmask 130048   ;;  %vm7642_vm12 = vcmask 195584  }
  0x23   :  { %231 = vrot.lane.b32.xlu1 %v216_v45, %s6377_s29  ;;  %6152 = vmatprep.subr.msk.bf16.mxu1 %vm7661_vm10, %v6169_v26  ;;  %v519_v33 = vsel %vm7661_vm10, %v6169_v26, 0  ;;  %vm861_vm15 = vcmask 261120   ;;  %vm7645_vm3 = vcmask 392192  }
  0x25   :  { %5762 = vmatpush3.bf16.msra.mxu1 %v519_v33 }
  0x27   :  { %243 = vrot.lane.b32.xlu1 %v220_v62, %s6378_s0 }
  0x88   :  { %v226_v63 = vpop.permute.xlu0 %225 }
  0x89   :  { %v248_v0 = vsel %vm245_vm7, %v209_v47, %v226_v63 }
  0x8c   :  { %v228_v5 = vpop.permute.xlu0 %227 }
  0x8d   :  { %v238_v4 = vpop.permute.xlu1 %237  ;;  %v251_v8 = vsel %vm245_vm7, %v210_v53, %v228_v5 }
  0x8e   :  { %v260_v6 = vsel %vm7660_vm8, %v248_v0, %v238_v4 }
  0x8f   :  { %5751 = vmatprep.mubr.msk.bf16.mxu0 %vm276_vm9, %v260_v6 }
  0x90   :  { %v230_v10 = vpop.permute.xlu0 %229 }
  0x91   :  { %v240_v9 = vpop.permute.xlu1 %239  ;;  %v254_v12 = vsel %vm245_vm7, %v211_v61, %v230_v10 }
  0x92   :  { %v262_v11 = vsel %vm7660_vm8, %v251_v8, %v240_v9 }
  0x93   :  { %5752 = vmatmul.mubr.msk.bf16.vlgmr.msra.gmra.mrb[0].mxu0 %vm276_vm9, %v262_v11 }
  0x94   :  { %v242_v14 = vpop.permute.xlu0 %241 }
  0x95   :  { %v232_v13 = vpop.permute.xlu1 %231  ;;  %v264_v15 = vsel %vm7660_vm8, %v254_v12, %v242_v14 }
  0x96   :  { %5755 = vmatprep.mubr.msk.bf16.mxu0 %vm276_vm9, %v264_v15  ;;  %v257_v16 = vsel %vm245_vm7, %v212_v60, %v232_v13 }
  0x99   :  { %v244_v17 = vpop.permute.xlu1 %243 }
  0x9a   :  { %v266_v18 = vsel %vm7660_vm8, %v257_v16, %v244_v17 }
  0x9b   :  { %5756 = vmatmul.mubr.msk.bf16.gmra.mrb[4].mxu0 %vm276_vm9, %v266_v18  ;;  %vm6382_vm9 = vmmov 0  }
 0x166   :  { %v5753_v21 = vpop.f32.mrb[0].mxu0 }
 0x167   :  { %v332_v22 = vadd.f32 %v5753_v21, %v5269_v20  ;;  %v323_v23 = vpop.f32.mrb[1].mxu0 }
 0x168   :  { %v324_v24 = vadd.f32 %v5269_v20, %v323_v23  ;;  %v5754_v25 = vpop.f32.mrb[2].mxu0 }
 0x169   :  { %v356_v27 = vmax.f32 %v332_v22, 0.0  ;;  %v335_v28 = vadd.f32 %v5754_v25, %v5269_v20  ;;  %v326_v29 = vpop.f32.mrb[3].mxu0 }
 0x16a   :  { %v354_v30 = vmax.f32 %v324_v24, 0.0  ;;  %v327_v31 = vadd.f32 %v5269_v20, %v326_v29 }
 0x16b   :  { %v357_v32 = vmax.f32 %v335_v28, 0.0  ;;  %v377_v34 = vrot.slane %v356_v27, 7  ;;  %v401_v35 = vrot.slane %v356_v27, 1 }
 0x16c   :  { %v374_v36 = vrot.slane %v354_v30, 7  ;;  %v355_v37 = vmax.f32 %v327_v31, 0.0  ;;  %v398_v38 = vrot.slane %v354_v30, 1 }
 0x16d   :  { %v379_v39 = vrot.slane %v357_v32, 7  ;;  %v403_v40 = vrot.slane %v357_v32, 1  ;;  %v443_v41 = vpack.c.bf16 %v357_v32, %v356_v27 }
 0x16e   :  { %v397_v42 = vsel %vm54_vm0, 0.0, %v374_v36  ;;  %v375_v43 = vrot.slane %v355_v37, 7  ;;  %v399_v44 = vrot.slane %v355_v37, 1  ;;  %v5757_v45 = vpop.f32.mrb[4].mxu0  ;;  %v442_v46 = vpack.c.bf16 %v355_v37, %v354_v30 }
 0x16f   :  { %v348_v47 = vadd.f32 %v5757_v45, %v5269_v20  ;;  %456 = vrot.lane.b32.xlu1 %v443_v41, %s6378_s0  ;;  %v339_v48 = vpop.f32.mrb[5].mxu0  ;;  %v404_v49 = vsel %vm79_vm1, %v401_v35, %v403_v40  ;;  %v6523_v50 = vsel %vm54_vm0, %v377_v34, %v379_v39  ;;  %v422_v51 = vsel %vm7659_vm2, 0.0, %v397_v42 }
 0x170   :  { %v340_v52 = vadd.f32 %v5269_v20, %v339_v48  ;;  %v5758_v53 = vpop.f32.mrb[6].mxu0  ;;  %454 = vrot.lane.b32.xlu0 %v442_v46, %s6378_s0  ;;  %v400_v54 = vsel %vm79_vm1, %v398_v38, %v399_v44  ;;  %v402_v55 = vsel %vm79_vm1, %v399_v44, %v401_v35  ;;  %v378_v56 = vsel %vm54_vm0, %v375_v43, %v377_v34 }
 0x171   :  { %v360_v57 = vmax.f32 %v348_v47, 0.0  ;;  %v351_v58 = vadd.f32 %v5758_v53, %v5269_v20  ;;  %v342_v59 = vpop.f32.mrb[7].mxu0  ;;  %v446_v60 = vpack.c.bf16 %v402_v55, %v400_v54  ;;  %v439_v61 = vpack.c.bf16 %v6523_v50, %v378_v56 }
 0x172   :  { %v358_v62 = vmax.f32 %v340_v52, 0.0  ;;  %v343_v63 = vadd.f32 %v5269_v20, %v342_v59  ;;  %v376_v0 = vsel %vm54_vm0, %v374_v36, %v375_v43 }
 0x173   :  { %v361_v4 = vmax.f32 %v351_v58, 0.0  ;;  %v438_v5 = vpack.c.bf16 %v376_v0, %v422_v51  ;;  %v385_v6 = vrot.slane %v360_v57, 7  ;;  %v409_v11 = vrot.slane %v360_v57, 1  ;;  %v5275_v51 = vld [vmem:[%s7636_s2 + $0x1] ss:$0 sm:$0xff] }
 0x174   :  { %v381_v8 = vrot.slane %v358_v62, 7  ;;  %v405_v9 = vrot.slane %v358_v62, 1  ;;  %v359_v10 = vmax.f32 %v343_v63, 0.0  ;;  %466 = vrot.lane.b32.xlu0 %v446_v60, %s6379_s24 }
 0x175   :  { %v387_v12 = vrot.slane %v361_v4, 7  ;;  %v411_v13 = vrot.slane %v361_v4, 1  ;;  %v445_v14 = vpack.c.bf16 %v361_v4, %v360_v57 }
 0x176   :  { %v383_v15 = vrot.slane %v359_v10, 7  ;;  %v407_v16 = vrot.slane %v359_v10, 1  ;;  %v444_v17 = vpack.c.bf16 %v359_v10, %v358_v62  ;;  %v406_v18 = vsel %vm79_vm1, %v403_v40, %v405_v9 }
 0x177   :  { %v433_v19 = vsel %vm7644_vm4, 0.0, %v406_v18  ;;  %v412_v20 = vsel %vm79_vm1, %v409_v11, %v411_v13  ;;  %v421_v21 = vsel %vm79_vm1, %v411_v13, 0.0  ;;  %v382_v22 = vsel %vm54_vm0, %v379_v39, %v381_v8 }
 0x178   :  { %458 = vrot.lane.b32.xlu0 %v444_v17, %s6378_s0  ;;  %v447_v23 = vpack.c.bf16 %v433_v19, %v404_v49  ;;  %v408_v24 = vsel %vm79_vm1, %v405_v9, %v407_v16  ;;  %v410_v25 = vsel %vm79_vm1, %v407_v16, %v409_v11  ;;  %v437_v26 = vsel %vm7641_vm5, 0.0, %v421_v21 }
 0x179   :  { %v448_v27 = vpack.c.bf16 %v410_v25, %v408_v24  ;;  %v449_v28 = vpack.c.bf16 %v437_v26, %v412_v20  ;;  %v384_v29 = vsel %vm54_vm0, %v381_v8, %v383_v15  ;;  %v426_v30 = vsel %vm7640_vm6, 0.0, %v382_v22 }
 0x17a   :  { %468 = vrot.lane.b32.xlu1 %v447_v23, %s6379_s24  ;;  %v440_v31 = vpack.c.bf16 %v384_v29, %v426_v30  ;;  %v386_v32 = vsel %vm54_vm0, %v383_v15, %v385_v6  ;;  %v388_v33 = vsel %vm54_vm0, %v385_v6, %v387_v12 }
 0x17b   :  { %v441_v34 = vpack.c.bf16 %v388_v33, %v386_v32 }
 0x17c   :  { %470 = vrot.lane.b32.xlu0 %v448_v27, %s6379_s24 }
 0x17e   :  { %460 = vrot.lane.b32.xlu1 %v445_v14, %s6378_s0  ;;  %v6170_v14 = vld [vmem:[#allocation3 + $0x18] sm:$0xff]  }
 0x17f   :  { %5771 = vmatprep.subr.bf16.mxu0 %v6170_v14 }
 0x180   :  { %5772 = vmatpush3.bf16.msra.mxu0 %v6170_v14 }
 0x182   :  { %472 = vrot.lane.b32.xlu1 %v449_v28, %s6379_s24 }
 0x1e1   :  { %v457_v39 = vpop.permute.xlu1 %456 }
 0x1e2   :  { %v455_v35 = vpop.permute.xlu0 %454  ;;  %v479_v41 = vsel %vm7660_vm8, %v439_v61, %v457_v39 }
 0x1e3   :  { %v476_v36 = vsel %vm7660_vm8, %v438_v5, %v455_v35 }
 0x1e6   :  { %v467_v37 = vpop.permute.xlu0 %466 }
 0x1e7   :  { %v488_v38 = vsel %vm7646_vm11, %v476_v36, %v467_v37  ;;  %v6635_v36 = vadd.s32 8, %v6429_v1  ;;  %v6638_v37 = vadd.s32 16, %v6429_v1 }
 0x1e8   :  { %5763 = vmatprep.mubr.msk.bf16.mxu1 %vm7642_vm12, %v488_v38 }
 0x1e9   :  { %vm7656_vm13 = vcmp.eq.s32.totalorder %v6635_v36, 15  ;;  %vm7643_vm14 = vcmp.eq.s32.totalorder %v6638_v37, 16 }
 0x1ea   :  { %v459_v40 = vpop.permute.xlu0 %458 }
 0x1eb   :  { %v482_v44 = vsel %vm7660_vm8, %v440_v31, %v459_v40 }
 0x1ec   :  { %v469_v42 = vpop.permute.xlu1 %468 }
 0x1ed   :  { %v490_v43 = vsel %vm7646_vm11, %v479_v41, %v469_v42 }
 0x1ee   :  { %v471_v45 = vpop.permute.xlu0 %470  ;;  %5764 = vmatmul.mubr.msk.bf16.vlgmr.msra.gmra.mrb[0].mxu1 %vm7642_vm12, %v490_v43 }
 0x1ef   :  { %v492_v46 = vsel %vm7646_vm11, %v482_v44, %v471_v45 }
 0x1f0   :  { %v461_v47 = vpop.permute.xlu1 %460  ;;  %5767 = vmatprep.mubr.msk.bf16.mxu1 %vm7642_vm12, %v492_v46 }
 0x1f1   :  { %v485_v48 = vsel %vm7660_vm8, %v441_v34, %v461_v47 }
 0x1f4   :  { %v473_v49 = vpop.permute.xlu1 %472 }
 0x1f5   :  { %v494_v50 = vsel %vm7646_vm11, %v485_v48, %v473_v49 }
 0x1f6   :  { %5768 = vmatmul.mubr.msk.bf16.gmra.mrb[4].mxu1 %vm7642_vm12, %v494_v50 }
 0x2c1   :  { %v5765_v52 = vpop.f32.mrb[0].mxu1 }
 0x2c2   :  { %v564_v53 = vadd.f32 %v5765_v52, %v5275_v51  ;;  %v555_v54 = vpop.f32.mrb[1].mxu1 }
 0x2c3   :  { %v556_v55 = vadd.f32 %v5275_v51, %v555_v54  ;;  %v5766_v56 = vpop.f32.mrb[2].mxu1 }
 0x2c4   :  { %v6569_v57 = vmax.f32 %v564_v53, 0.0  ;;  %v567_v58 = vadd.f32 %v5766_v56, %v5275_v51  ;;  %v558_v59 = vpop.f32.mrb[3].mxu1  ;;  %v6171_v53 = vld [vmem:[#allocation3 + $0x20] ss:$0 sps:$4 sm:$0xff]  }
 0x2c5   :  { %v6571_v60 = vmax.f32 %v556_v55, 0.0  ;;  %v559_v61 = vadd.f32 %v5275_v51, %v558_v59  ;;  %6153 = vmatprep.subr.msk.bf16.mxu0 %vm7661_vm10, %v6171_v53 }
 0x2c6   :  { %596 = vst.msk [vmem:[#allocation2 + $0x10] sm:$0xff] %vm7660_vm8, %v6569_v57  ;;  %v6575_v62 = vmax.f32 %v567_v58, 0.0  ;;  %v4630_v63 = vrot.slane %v6569_v57, 7  ;;  %v4654_v0 = vrot.slane %v6569_v57, 1 }
 0x2c7   :  { %594 = vst.msk [vmem:[#allocation2] sm:$0xff] %vm7660_vm8, %v6571_v60  ;;  %v4627_v4 = vrot.slane %v6571_v60, 7  ;;  %v6582_v5 = vmax.f32 %v559_v61, 0.0  ;;  %v4651_v6 = vrot.slane %v6571_v60, 1 }
 0x2c8   :  { %597 = vst.msk [vmem:[#allocation2 + $0x18] sm:$0xff] %vm7660_vm8, %v6575_v62  ;;  %v4632_v8 = vrot.slane %v6575_v62, 7  ;;  %v4656_v9 = vrot.slane %v6575_v62, 1 }
 0x2c9   :  { %595 = vst.msk [vmem:[#allocation2 + $0x8] sm:$0xff] %vm7660_vm8, %v6582_v5  ;;  %v4628_v11 = vrot.slane %v6582_v5, 7  ;;  %v4652_v12 = vrot.slane %v6582_v5, 1  ;;  %v5769_v13 = vpop.f32.mrb[4].mxu1  ;;  %v4650_v16 = vsel %vm54_vm0, 0.0, %v4627_v4 }
 0x2ca   :  { %v580_v17 = vadd.f32 %v5769_v13, %v5275_v51  ;;  %v571_v18 = vpop.f32.mrb[5].mxu1  ;;  %v6599_v19 = vsel %vm79_vm1, %v4654_v0, %v4656_v9  ;;  %v6604_v20 = vsel %vm54_vm0, %v4630_v63, %v4632_v8  ;;  %v6608_v21 = vsel %vm7659_vm2, 0.0, %v4650_v16 }
 0x2cb   :  { %v572_v22 = vadd.f32 %v5275_v51, %v571_v18  ;;  %v5770_v23 = vpop.f32.mrb[6].mxu1  ;;  %v6611_v24 = vsel %vm79_vm1, %v4651_v6, %v4652_v12  ;;  %v6614_v25 = vsel %vm79_vm1, %v4652_v12, %v4654_v0  ;;  %v6617_v26 = vsel %vm54_vm0, %v4628_v11, %v4630_v63 }
 0x2cc   :  { %v6619_v27 = vmax.f32 %v580_v17, 0.0  ;;  %v583_v28 = vadd.f32 %v5770_v23, %v5275_v51  ;;  %v574_v29 = vpop.f32.mrb[7].mxu1  ;;  %v6628_v34 = vsel %vm54_vm0, %v4627_v4, %v4628_v11  ;;  %v739_v0 = vsel %vm7661_vm10, %v6171_v53, 0 }
 0x2cd   :  { %v6625_v32 = vmax.f32 %v572_v22, 0.0  ;;  %v575_v33 = vadd.f32 %v5275_v51, %v574_v29  ;;  %5774 = vmatpush3.bf16.msra.mxu0 %v739_v0 }
 0x2ce   :  { %600 = vst.msk [vmem:[#allocation2 + $0x30] sm:$0xff] %vm7660_vm8, %v6619_v27  ;;  %v6632_v35 = vmax.f32 %v583_v28, 0.0  ;;  %v4638_v39 = vrot.slane %v6619_v27, 7  ;;  %v4662_v40 = vrot.slane %v6619_v27, 1 }
 0x2cf   :  { %598 = vst.msk [vmem:[#allocation2 + $0x20] sm:$0xff] %vm7660_vm8, %v6625_v32  ;;  %v4658_v41 = vrot.slane %v6625_v32, 1  ;;  %v6647_v42 = vmax.f32 %v575_v33, 0.0  ;;  %v604_v43 = vld [vmem:[#allocation2 + $0x10] ss:$2 sm:$0xff]  ;;  %v4634_v44 = vrot.slane %v6625_v32, 7 }
 0x2d0   :  { %601 = vst.msk [vmem:[#allocation2 + $0x38] sm:$0xff] %vm7660_vm8, %v6632_v35  ;;  %v602_v45 = vld [vmem:[#allocation2] ss:$2 sm:$0xff]  ;;  %v610_v46 = vld [vmem:[#allocation2 + $0x1] ss:$2 sm:$0xff]  ;;  %v4664_v48 = vrot.slane %v6632_v35, 1 }
 0x2d1   :  { %v4640_v49 = vrot.slane %v6632_v35, 7  ;;  %599 = vst.msk [vmem:[#allocation2 + $0x28] sm:$0xff] %vm7660_vm8, %v6647_v42  ;;  %v4660_v50 = vrot.slane %v6647_v42, 1  ;;  %v612_v51 = vld [vmem:[#allocation2 + $0x11] ss:$2 sm:$0xff]  ;;  %v617_v52 = vmax.f32 %v602_v45, %v610_v46  ;;  %v4659_v54 = vsel %vm79_vm1, %v4656_v9, %v4658_v41 }
 0x2d2   :  { %v618_v55 = vmax.f32 %v604_v43, %v612_v51  ;;  %v6662_v56 = vsel %vm7644_vm4, 0.0, %v4659_v54  ;;  %v6667_v59 = vsel %vm79_vm1, %v4662_v40, %v4664_v48  ;;  %v4636_v61 = vrot.slane %v6647_v42, 7 }
 0x2d3   :  { %v629_v63 = vrot.slane %v617_v52, 7  ;;  %v641_v9 = vrot.slane %v617_v52, 1  ;;  %v4674_v12 = vsel %vm79_vm1, %v4664_v48, 0.0  ;;  %v6681_v16 = vsel %vm79_vm1, %v4658_v41, %v4660_v50 }
 0x2d4   :  { %v695_v6 = vpack.c.bf16 %v618_v55, %v617_v52  ;;  %v630_v11 = vrot.slane %v618_v55, 7  ;;  %v6678_v14 = vsel %vm7641_vm5, 0.0, %v4674_v12  ;;  %v6684_v17 = vsel %vm79_vm1, %v4660_v50, %v4662_v40 }
 0x2d5   :  { %v640_v13 = vsel %vm54_vm0, 0.0, %v629_v63  ;;  %v642_v18 = vrot.slane %v618_v55, 1  ;;  %v6695_v40 = vsel %vm54_vm0, %v4636_v61, %v4638_v39  ;;  %v6698_v45 = vsel %vm54_vm0, %v4638_v39, %v4640_v49 }
 0x2d6   :  { %701 = vrot.lane.b32.xlu0 %v695_v6, %s6378_s0  ;;  %v631_v22 = vsel %vm54_vm0, %v629_v63, %v630_v11  ;;  %v677_v23 = vsel %vm7659_vm2, 0.0, %v640_v13  ;;  %7666 = vst [vmem:[#allocation8_spill] sm:$0xff] %v6695_v40  ;;  %7667 = vst [vmem:[#allocation9_spill] sm:$0xff] %v6698_v45  ;;  %v4635_v52 = vsel %vm54_vm0, %v4632_v8, %v4634_v44  ;;  %vm7647_vm5 = vcmp.eq.s32.totalorder %v6635_v36, 8  ;;  %v6226_v40 = vld [vmem:[#allocation3 + $0x1d8] sm:$0xff]  }
 0x2d7   :  { %v608_v29 = vld [vmem:[#allocation2 + $0x30] ss:$2 sm:$0xff]  ;;  %v616_v33 = vld [vmem:[#allocation2 + $0x31] ss:$2 sm:$0xff]  ;;  %v693_v43 = vpack.c.bf16 %v631_v22, %v677_v23  ;;  %v6706_v53 = vsel %vm54_vm0, %v4634_v44, %v4636_v61  ;;  %v6710_v55 = vsel %vm7640_vm6, 0.0, %v4635_v52  ;;  %v643_v61 = vsel %vm79_vm1, %v641_v9, %v642_v18 }
 0x2d8   :  { %v606_v46 = vld [vmem:[#allocation2 + $0x20] ss:$2 sm:$0xff]  ;;  %v614_v48 = vld [vmem:[#allocation2 + $0x21] ss:$2 sm:$0xff]  ;;  %v620_v50 = vmax.f32 %v608_v29, %v616_v33  ;;  %7668 = vst [vmem:[#allocation10_spill] sm:$0xff] %v6710_v55  ;;  %vm7657_vm6 = vcmp.eq.s32.totalorder %v6429_v1, 7 }
 0x2d9   :  { %v619_v54 = vmax.f32 %v606_v46, %v614_v48  ;;  %v2185_v55 = vld [vmem:[%s7638_s4] sm:$0xf] }
 0x2da   :  { %v646_v39 = vrot.slane %v620_v50, 1  ;;  %v634_v49 = vrot.slane %v620_v50, 7 }
 0x2db   :  { %v696_v0 = vpack.c.bf16 %v620_v50, %v619_v54  ;;  %v644_v6 = vrot.slane %v619_v54, 1  ;;  %v632_v8 = vrot.slane %v619_v54, 7 }
 0x2dc   :  { %v652_v44 = vsel %vm79_vm1, %v646_v39, 0.0 }
 0x2dd   :  { %703 = vrot.lane.b32.xlu1 %v696_v0, %s6378_s0  ;;  %v647_v12 = vsel %vm79_vm1, %v644_v6, %v646_v39  ;;  %v692_v13 = vsel %vm7644_vm4, 0.0, %v652_v44  ;;  %v645_v22 = vsel %vm79_vm1, %v642_v18, %v644_v6  ;;  %v633_v23 = vsel %vm54_vm0, %v630_v11, %v632_v8  ;;  %v6173_v44 = vld [vmem:[#allocation3 + $0x30] sm:$0xff]  }
 0x2de   :  { %v698_v29 = vpack.c.bf16 %v692_v13, %v647_v12  ;;  %v690_v33 = vsel %vm7656_vm13, 0.0, %v645_v22  ;;  %v635_v46 = vsel %vm54_vm0, %v632_v8, %v634_v49  ;;  %v679_v9 = vsel %vm7643_vm14, 0.0, %v633_v23  ;;  %v6172_v8 = vld [vmem:[#allocation3 + $0x28] sm:$0xff]  }
 0x2df   :  { %v697_v48 = vpack.c.bf16 %v690_v33, %v643_v61  ;;  %v694_v50 = vpack.c.bf16 %v635_v46, %v679_v9  ;;  %5779 = vmatprep.subr.bf16.mxu1 %v6172_v8  ;;  %v6174_v61 = vld [vmem:[#allocation3 + $0x38] sm:$0xff]  }
 0x2e0   :  { %5780 = vmatpush3.bf16.msra.mxu1 %v6172_v8 }
 0x2e1   :  { %709 = vrot.lane.b32.xlu1 %v698_v29, %s6379_s24  ;;  %707 = vrot.lane.b32.xlu0 %v697_v48, %s6379_s24 }
 0x2e2   :  { %5781 = vmatprep.subr.bf16.mxu1 %v6173_v44 }
 0x2e4   :  { %5782 = vmatpush3.bf16.msra.mxu1 %v6173_v44 }
 0x2e5   :  { %5783 = vmatprep.subr.bf16.mxu1 %v6174_v61 }
 0x2e8   :  { %5784 = vmatpush3.bf16.msra.mxu1 %v6174_v61 }
 0x348   :  { %v702_v52 = vpop.permute.xlu0 %701 }
 0x349   :  { %v713_v18 = vsel %vm7660_vm8, %v693_v43, %v702_v52  ;;  %v5282_v43 = vld [vmem:[%s7636_s2 + $0x2] ss:$0 sm:$0xff] }
 0x34f   :  { %v704_v54 = vpop.permute.xlu1 %703 }
 0x350   :  { %v716_v11 = vsel %vm7660_vm8, %v694_v50, %v704_v54 }
 0x353   :  { %v710_v39 = vpop.permute.xlu1 %709  ;;  %v708_v0 = vpop.permute.xlu0 %707 }
 0x354   :  { %v720_v6 = vsel %vm7646_vm11, %v716_v11, %v710_v39  ;;  %v718_v49 = vsel %vm7646_vm11, %v713_v18, %v708_v0 }
 0x355   :  { %5775 = vmatprep.mubr.msk.bf16.mxu0 %vm7642_vm12, %v718_v49 }
 0x356   :  { %5776 = vmatmul.mubr.msk.bf16.vlgmr.msra.gmra.mrb[8].mxu0 %vm7642_vm12, %v720_v6  ;;  %vm1122_vm12 = vcmask 523264  }
 0x429   :  { %v5777_v12 = vpop.f32.mrb[8].mxu0 }
 0x42a   :  { %v784_v13 = vadd.f32 %v5777_v12, %v5282_v43  ;;  %v775_v22 = vpop.f32.mrb[9].mxu0 }
 0x42b   :  { %v776_v23 = vadd.f32 %v5282_v43, %v775_v22  ;;  %v5778_v29 = vpop.f32.mrb[10].mxu0 }
 0x42c   :  { %v792_v33 = vmax.f32 %v784_v13, 0.0  ;;  %v787_v46 = vadd.f32 %v5778_v29, %v5282_v43  ;;  %v778_v9 = vpop.f32.mrb[11].mxu0 }
 0x42d   :  { %v790_v48 = vmax.f32 %v776_v23, 0.0  ;;  %v779_v50 = vadd.f32 %v5282_v43, %v778_v9 }
 0x42e   :  { %v793_v52 = vmax.f32 %v787_v46, 0.0  ;;  %v808_v54 = vrot.slane %v792_v33, 7  ;;  %v820_v18 = vrot.slane %v792_v33, 1 }
 0x42f   :  { %v805_v11 = vrot.slane %v790_v48, 7  ;;  %v791_v39 = vmax.f32 %v779_v50, 0.0  ;;  %v817_v0 = vrot.slane %v790_v48, 1 }
 0x430   :  { %v810_v6 = vrot.slane %v793_v52, 7  ;;  %v822_v49 = vrot.slane %v793_v52, 1  ;;  %v840_v8 = vpack.c.bf16 %v793_v52, %v792_v33 }
 0x431   :  { %v816_v44 = vsel %vm54_vm0, 0.0, %v805_v11  ;;  %v806_v61 = vrot.slane %v791_v39, 7  ;;  %v818_v12 = vrot.slane %v791_v39, 1  ;;  %v839_v22 = vpack.c.bf16 %v791_v39, %v790_v48 }
 0x432   :  { %847 = vrot.lane.b32.xlu1 %v840_v8, %s6379_s24  ;;  %v823_v13 = vsel %vm79_vm1, %v820_v18, %v822_v49  ;;  %v828_v43 = vsel %vm79_vm1, %v822_v49, 0.0  ;;  %v811_v23 = vsel %vm54_vm0, %v808_v54, %v810_v6  ;;  %v829_v29 = vsel %vm7659_vm2, 0.0, %v816_v44 }
 0x433   :  { %845 = vrot.lane.b32.xlu0 %v839_v22, %s6379_s24  ;;  %v836_v33 = vsel %vm7644_vm4, 0.0, %v828_v43  ;;  %v819_v46 = vsel %vm79_vm1, %v817_v0, %v818_v12  ;;  %v821_v9 = vsel %vm79_vm1, %v818_v12, %v820_v18  ;;  %v809_v48 = vsel %vm54_vm0, %v806_v61, %v808_v54  ;;  %v6175_v43 = vld [vmem:[#allocation3 + $0x40] sm:$0xff]  }
 0x434   :  { %v842_v50 = vpack.c.bf16 %v836_v33, %v823_v13  ;;  %v834_v52 = vsel %vm7656_vm13, 0.0, %v821_v9  ;;  %v831_v39 = vsel %vm7643_vm14, 0.0, %v809_v48  ;;  %v807_v6 = vsel %vm54_vm0, %v805_v11, %v806_v61  ;;  %v5287_v33 = vld [vmem:[%s7636_s2 + $0x3] ss:$0 sm:$0xff] }
 0x435   :  { %v841_v49 = vpack.c.bf16 %v834_v52, %v819_v46  ;;  %v838_v8 = vpack.c.bf16 %v811_v23, %v831_v39  ;;  %v837_v44 = vpack.c.bf16 %v807_v6, %v829_v29  ;;  %v7648_v23 = vmov 0.0   ;;  %v6176_v29 = vld [vmem:[#allocation3 + $0x48] sm:$0xff]  }
 0x436   :  { %853 = vrot.lane.b32.xlu1 %v842_v50, %s6380_s30  ;;  %5789 = vmatprep.subr.bf16.mxu0 %v7648_v23 }
 0x437   :  { %851 = vrot.lane.b32.xlu0 %v841_v49, %s6380_s30  ;;  %5799 = vmatprep.subr.bf16.mxu1 %v7648_v23 }
 0x438   :  { %5790 = vmatpush3.bf16.msra.mxu0 %v6175_v43  ;;  %5795 = vmatprep.mubr.msk.bf16.mxu0 %vm6382_vm9, %v7648_v23 }
 0x439   :  { %5791 = vmatprep.subr.bf16.mxu0 %v7648_v23 }
 0x43c   :  { %5792 = vmatpush3.bf16.msra.mxu0 %v6176_v29 }
 0x43d   :  { %5793 = vmatprep.subr.bf16.mxu0 %v7648_v23 }
 0x4a4   :  { %v848_v18 = vpop.permute.xlu1 %847 }
 0x4a5   :  { %v846_v0 = vpop.permute.xlu0 %845  ;;  %v860_v13 = vsel %vm7646_vm11, %v838_v8, %v848_v18 }
 0x4a6   :  { %v857_v12 = vsel %vm7646_vm11, %v837_v44, %v846_v0 }
 0x4a8   :  { %v854_v54 = vpop.permute.xlu1 %853 }
 0x4a9   :  { %v852_v22 = vpop.permute.xlu0 %851  ;;  %v865_v61 = vsel %vm861_vm15, %v860_v13, %v854_v54 }
 0x4aa   :  { %v863_v11 = vsel %vm861_vm15, %v857_v12, %v852_v22 }
 0x4ab   :  { %5785 = vmatprep.mubr.msk.bf16.mxu1 %vm7645_vm3, %v863_v11 }
 0x4ac   :  { %5786 = vmatmul.mubr.msk.bf16.vlgmr.msra.gmra.mrb[8].mxu1 %vm7645_vm3, %v865_v61  ;;  %v6177_v61 = vld [vmem:[#allocation3 + $0x50] sm:$0xff]  }
 0x4ad   :  { %5794 = vmatpush3.bf16.msra.mxu0 %v6177_v61  ;;  %5811 = vmatprep.mubr.msk.bf16.mxu1 %vm6382_vm9, %v7648_v23 }
 0x4ae   :  { %5815 = vmatprep.subr.bf16.mxu0 %v7648_v23 }
 0x57f   :  { %v5787_v46 = vpop.f32.mrb[8].mxu1 }
 0x580   :  { %v936_v9 = vadd.f32 %v5787_v46, %v5287_v33  ;;  %v927_v48 = vpop.f32.mrb[9].mxu1 }
 0x581   :  { %v928_v50 = vadd.f32 %v5287_v33, %v927_v48  ;;  %v5788_v52 = vpop.f32.mrb[10].mxu1 }
 0x582   :  { %v6773_v39 = vmax.f32 %v936_v9, 0.0  ;;  %v939_v6 = vadd.f32 %v5788_v52, %v5287_v33  ;;  %v930_v49 = vpop.f32.mrb[11].mxu1  ;;  %v7650_v9 = vmov 0  }
 0x583   :  { %v6775_v8 = vmax.f32 %v928_v50, 0.0  ;;  %v931_v44 = vadd.f32 %v5287_v33, %v930_v49 }
 0x584   :  { %948 = vst.msk [vmem:[#allocation2 + $0x10] sm:$0xff] %vm7646_vm11, %v6773_v39  ;;  %v6779_v18 = vmax.f32 %v939_v6, 0.0  ;;  %v3774_v0 = vrot.slane %v6773_v39, 7  ;;  %v3786_v54 = vrot.slane %v6773_v39, 1 }
 0x585   :  { %946 = vst.msk [vmem:[#allocation2] sm:$0xff] %vm7646_vm11, %v6775_v8  ;;  %v3771_v12 = vrot.slane %v6775_v8, 7  ;;  %v6786_v22 = vmax.f32 %v931_v44, 0.0  ;;  %v3783_v13 = vrot.slane %v6775_v8, 1 }
 0x586   :  { %949 = vst.msk [vmem:[#allocation2 + $0x18] sm:$0xff] %vm7646_vm11, %v6779_v18  ;;  %v3776_v11 = vrot.slane %v6779_v18, 7  ;;  %v3788_v29 = vrot.slane %v6779_v18, 1 }
 0x587   :  { %947 = vst.msk [vmem:[#allocation2 + $0x8] sm:$0xff] %vm7646_vm11, %v6786_v22  ;;  %v3772_v33 = vrot.slane %v6786_v22, 7  ;;  %v3784_v46 = vrot.slane %v6786_v22, 1  ;;  %v3782_v48 = vsel %vm54_vm0, 0.0, %v3771_v12 }
 0x588   :  { %v6803_v50 = vsel %vm79_vm1, %v3786_v54, %v3788_v29  ;;  %v3794_v52 = vsel %vm79_vm1, %v3788_v29, 0.0  ;;  %v6808_v6 = vsel %vm7659_vm2, 0.0, %v3782_v48  ;;  %v6811_v49 = vsel %vm54_vm0, %v3774_v0, %v3776_v11 }
 0x589   :  { %v6815_v44 = vsel %vm79_vm1, %v3783_v13, %v3784_v46  ;;  %v3787_v51 = vsel %vm79_vm1, %v3784_v46, %v3786_v54  ;;  %v6820_v61 = vsel %vm7644_vm4, 0.0, %v3794_v52  ;;  %v6823_v29 = vsel %vm54_vm0, %v3771_v12, %v3772_v33 }
 0x58a   :  { %v6827_v48 = vsel %vm7656_vm13, 0.0, %v3787_v51  ;;  %v3775_v12 = vsel %vm54_vm0, %v3772_v33, %v3774_v0  ;;  %vm1238_vm4 = vcmp.eq.s32.totalorder %v6429_v1, 3 }
 0x58b   :  { %v6842_v51 = vsel %vm7643_vm14, 0.0, %v3775_v12  ;;  %vm1165_vm14 = vcmask 785408  }
 0x58d   :  { %v952_v46 = vld [vmem:[#allocation2 + $0x10] ss:$2 sm:$0xff]  ;;  %v954_v52 = vld [vmem:[#allocation2 + $0x11] ss:$2 sm:$0xff] }
 0x58e   :  { %v950_v31 = vld [vmem:[#allocation2] ss:$2 sm:$0xff]  ;;  %v953_v38 = vld [vmem:[#allocation2 + $0x1] ss:$2 sm:$0xff]  ;;  %v956_v41 = vmax.f32 %v952_v46, %v954_v52 }
 0x58f   :  { %v955_v28 = vmax.f32 %v950_v31, %v953_v38 }
 0x590   :  { %v973_v58 = vrot.slane %v956_v41, 1  ;;  %v967_v47 = vrot.slane %v956_v41, 7 }
 0x591   :  { %v999_v30 = vpack.c.bf16 %v956_v41, %v955_v28  ;;  %v972_v4 = vrot.slane %v955_v28, 1  ;;  %v966_v0 = vrot.slane %v955_v28, 7 }
 0x592   :  { %v977_v33 = vsel %vm79_vm1, %v973_v58, 0.0 }
 0x593   :  { %1002 = vrot.lane.b32.xlu0 %v999_v30, %s6379_s24  ;;  %v974_v12 = vsel %vm79_vm1, %v972_v4, %v973_v58  ;;  %v997_v15 = vsel %vm7656_vm13, 0.0, %v977_v33  ;;  %v968_v31 = vsel %vm54_vm0, %v966_v0, %v967_v47  ;;  %v971_v38 = vsel %vm54_vm0, 0.0, %v966_v0  ;;  %v6178_v0 = vld [vmem:[#allocation3 + $0x58] sm:$0xff]  }
 0x594   :  { %v996_v41 = vsel %vm7657_vm6, 0.0, %v974_v12  ;;  %v990_v46 = vsel %vm7659_vm2, 0.0, %v971_v38  ;;  %v991_v28 = vsel %vm7647_vm5, 0.0, %v968_v31  ;;  %5800 = vmatpush3.bf16.msra.mxu1 %v6178_v0  ;;  %v6179_v12 = vld [vmem:[#allocation3 + $0x60] sm:$0xff]   ;;  %v6181_v31 = vld [vmem:[#allocation3 + $0x70] sm:$0xff]   ;;  %v6182_v38 = vld [vmem:[#allocation3 + $0x78] sm:$0xff]  }
 0x595   :  { %v1000_v52 = vpack.c.bf16 %v997_v15, %v996_v41  ;;  %v998_v30 = vpack.c.bf16 %v991_v28, %v990_v46  ;;  %5801 = vmatprep.subr.bf16.mxu1 %v7648_v23  ;;  %v6180_v15 = vld [vmem:[#allocation3 + $0x68] sm:$0xff]   ;;  %v6183_v41 = vld [vmem:[#allocation3 + $0x80] sm:$0xff]  }
 0x596   :  { %v5293_v46 = vld [vmem:[%s7636_s2 + $0x4] ss:$0 sm:$0xff] }
 0x597   :  { %1005 = vrot.lane.b32.xlu1 %v1000_v52, %s6380_s30 }
 0x598   :  { %5802 = vmatpush3.bf16.msra.mxu1 %v6179_v12 }
 0x599   :  { %5803 = vmatprep.subr.bf16.mxu1 %v7648_v23 }
 0x59c   :  { %5804 = vmatpush3.bf16.msra.mxu1 %v6180_v15 }
 0x59d   :  { %5805 = vmatprep.subr.bf16.mxu1 %v7648_v23 }
 0x5a0   :  { %5806 = vmatpush3.bf16.msra.mxu1 %v6181_v31 }
 0x5a1   :  { %5807 = vmatprep.subr.bf16.mxu1 %v7648_v23 }
 0x5a4   :  { %5808 = vmatpush3.bf16.msra.mxu1 %v6182_v38 }
 0x5a5   :  { %5809 = vmatprep.subr.bf16.mxu1 %v7648_v23 }
 0x5a8   :  { %5810 = vmatpush3.bf16.msra.mxu1 %v6183_v41 }
 0x5a9   :  { %1466 = vmatprep.subr.bf16.mxu1 %v7650_v9 }
 0x605   :  { %v1003_v58 = vpop.permute.xlu0 %1002 }
 0x606   :  { %v1009_v4 = vsel %vm7646_vm11, %v998_v30, %v1003_v58  ;;  %vm1236_vm11 = vcmp.eq.s32.totalorder %v6429_v1, 4 }
 0x609   :  { %v1006_v33 = vpop.permute.xlu1 %1005 }
 0x60a   :  { %v1011_v47 = vsel %vm861_vm15, %v1009_v4, %v1006_v33 }
 0x60b   :  { %5796 = vmatmul.mubr.msk.bf16.vlgmr.msra.gmra.mrb[12].mxu0 %vm7645_vm3, %v1011_v47  ;;  %vm6943_vm3 = vmor %vm1238_vm4, %vm7657_vm6 }
 0x60c   :  { %5827 = vmatprep.mubr.msk.bf16.mxu0 %vm6382_vm9, %v7648_v23 }
 0x6de   :  { %v1070_v28 = vpop.f32.mrb[12].mxu0 }
 0x6df   :  { %v1071_v52 = vadd.f32 %v5293_v46, %v1070_v28  ;;  %v5797_v30 = vpop.f32.mrb[13].mxu0 }
 0x6e0   :  { %v1073_v58 = vpop.f32.mrb[14].mxu0 }
 0x6e1   :  { %v1077_v4 = vmax.f32 %v1071_v52, 0.0  ;;  %v1074_v33 = vadd.f32 %v5293_v46, %v1073_v58  ;;  %v5798_v47 = vpop.f32.mrb[15].mxu0 }
 0x6e3   :  { %v1094_v0 = vrot.slane %v1077_v4, 7  ;;  %v1078_v12 = vmax.f32 %v1074_v33, 0.0  ;;  %v1100_v15 = vrot.slane %v1077_v4, 1 }
 0x6e5   :  { %v1099_v31 = vsel %vm54_vm0, 0.0, %v1094_v0  ;;  %v1095_v38 = vrot.slane %v1078_v12, 7  ;;  %v1111_v10 = vpack.c.bf16 %v1078_v12, %v1077_v4  ;;  %v1101_v63 = vrot.slane %v1078_v12, 1  ;;  %v6185_v12 = vld [vmem:[#allocation3 + $0x90] sm:$0xff]  }
 0x6e6   :  { %v1106_v30 = vsel %vm7659_vm2, 0.0, %v1099_v31  ;;  %v6187_v31 = vld [vmem:[#allocation3 + $0xa0] sm:$0xff]  }
 0x6e7   :  { %1114 = vrot.lane.b32.xlu0 %v1111_v10, %s6380_s30  ;;  %v1102_v13 = vsel %vm79_vm1, %v1100_v15, %v1101_v63  ;;  %v1105_v41 = vsel %vm79_vm1, %v1101_v63, 0.0  ;;  %v1096_v28 = vsel %vm54_vm0, %v1094_v0, %v1095_v38  ;;  %v6184_v0 = vld [vmem:[#allocation3 + $0x88] sm:$0xff]   ;;  %v6186_v15 = vld [vmem:[#allocation3 + $0x98] sm:$0xff]  }
 0x6e8   :  { %v1108_v46 = vsel %vm7657_vm6, 0.0, %v1102_v13  ;;  %v1109_v52 = vsel %vm7656_vm13, 0.0, %v1105_v41  ;;  %v1107_v58 = vsel %vm7647_vm5, 0.0, %v1096_v28  ;;  %5816 = vmatpush3.bf16.msra.mxu0 %v6184_v0  ;;  %v6188_v38 = vld [vmem:[#allocation3 + $0xa8] sm:$0xff]   ;;  %v5298_v41 = vld [vmem:[%s7636_s2 + $0x5] ss:$0 sm:$0xff] }
 0x6e9   :  { %v1112_v4 = vpack.c.bf16 %v1109_v52, %v1108_v46  ;;  %v1110_v10 = vpack.c.bf16 %v1107_v58, %v1106_v30  ;;  %5817 = vmatprep.subr.bf16.mxu0 %v7648_v23 }
 0x6eb   :  { %1117 = vrot.lane.b32.xlu1 %v1112_v4, %s6376_s28 }
 0x6ec   :  { %5818 = vmatpush3.bf16.msra.mxu0 %v6185_v12 }
 0x6ed   :  { %5819 = vmatprep.subr.bf16.mxu0 %v7648_v23 }
 0x6f0   :  { %5820 = vmatpush3.bf16.msra.mxu0 %v6186_v15 }
 0x6f1   :  { %5821 = vmatprep.subr.bf16.mxu0 %v7648_v23 }
 0x6f4   :  { %5822 = vmatpush3.bf16.msra.mxu0 %v6187_v31 }
 0x6f5   :  { %5823 = vmatprep.subr.bf16.mxu0 %v7648_v23 }
 0x6f8   :  { %5824 = vmatpush3.bf16.msra.mxu0 %v6188_v38 }
 0x6f9   :  { %5825 = vmatprep.subr.bf16.mxu0 %v7648_v23 }
 0x759   :  { %v1115_v33 = vpop.permute.xlu0 %1114 }
 0x75a   :  { %v1121_v63 = vsel %vm861_vm15, %v1110_v10, %v1115_v33 }
 0x75d   :  { %v1118_v47 = vpop.permute.xlu1 %1117 }
 0x75e   :  { %v1124_v13 = vsel %vm1122_vm12, %v1121_v63, %v1118_v47  ;;  %v6189_v47 = vld [vmem:[#allocation3 + $0xb0] sm:$0xff]  }
 0x75f   :  { %5812 = vmatmul.mubr.msk.bf16.vlgmr.msra.gmra.mrb[12].mxu1 %vm1165_vm14, %v1124_v13  ;;  %5826 = vmatpush3.bf16.msra.mxu0 %v6189_v47 }
 0x760   :  { %1643 = vmatprep.subr.bf16.mxu0 %v7650_v9 }
 0x832   :  { %v1202_v28 = vpop.f32.mrb[12].mxu1 }
 0x833   :  { %v1203_v46 = vadd.f32 %v5298_v41, %v1202_v28  ;;  %v5813_v52 = vpop.f32.mrb[13].mxu1 }
 0x834   :  { %v1205_v30 = vpop.f32.mrb[14].mxu1 }
 0x835   :  { %v6900_v58 = vmax.f32 %v1203_v46, 0.0  ;;  %v1206_v4 = vadd.f32 %v5298_v41, %v1205_v30  ;;  %v5814_v10 = vpop.f32.mrb[15].mxu1 }
 0x837   :  { %1211 = vst.msk [vmem:[#allocation2] sm:$0xff] %vm861_vm15, %v6900_v58  ;;  %v3097_v33 = vrot.slane %v6900_v58, 7  ;;  %v6905_v63 = vmax.f32 %v1206_v4, 0.0  ;;  %v3103_v13 = vrot.slane %v6900_v58, 1 }
 0x839   :  { %1212 = vst.msk [vmem:[#allocation2 + $0x8] sm:$0xff] %vm861_vm15, %v6905_v63  ;;  %v3098_v0 = vrot.slane %v6905_v63, 7  ;;  %v3104_v15 = vrot.slane %v6905_v63, 1  ;;  %v3102_v31 = vsel %vm54_vm0, 0.0, %v3097_v33 }
 0x83a   :  { %v6928_v30 = vsel %vm7659_vm2, 0.0, %v3102_v31  ;;  %v6298_v31 = vld [vmem:[#allocation3 + $0x3e8] sm:$0xff]  }
 0x83b   :  { %v3105_v38 = vsel %vm79_vm1, %v3103_v13, %v3104_v15  ;;  %v3108_v41 = vsel %vm79_vm1, %v3104_v15, 0.0  ;;  %v3099_v28 = vsel %vm54_vm0, %v3097_v33, %v3098_v0 }
 0x83c   :  { %v6920_v46 = vsel %vm7657_vm6, 0.0, %v3105_v38  ;;  %v6924_v52 = vsel %vm7656_vm13, 0.0, %v3108_v41  ;;  %v6932_v4 = vsel %vm7647_vm5, 0.0, %v3099_v28  ;;  %vm6955_vm5 = vmor %vm7659_vm2, %vm1236_vm11  ;;  %vm1546_vm11 = vcmp.eq.s32.totalorder %v6429_v1, 1 }
 0x83d   :  { %vm1542_vm13 = vcmask 1042432   ;;  %vm7012_vm6 = vmor %vm1546_vm11, %vm1238_vm4  ;;  %vm1544_vm4 = vcmp.eq.s32.totalorder %v6429_v1, 2 }
 0x83e   :  { %vm7027_vm11 = vmor %vm7659_vm2, %vm1544_vm4 }
 0x83f   :  { %vm5367_vm4 = vmneg %vm7027_vm11 }
 0x840   :  { %v1213_v47 = vld [vmem:[#allocation2] ss:$2 sm:$0xff]  ;;  %v1214_v13 = vld [vmem:[#allocation2 + $0x1] ss:$2 sm:$0xff]  ;;  %vm5372_vm2 = vmneg %vm7012_vm6 }
 0x841   :  { %v1215_v0 = vmax.f32 %v1213_v47, %v1214_v13  ;;  %vm5369_vm8 = vmpackc.low %vm5367_vm4, %vm5367_vm4  ;;  %v6293_v13 = vld [vmem:[#allocation3 + $0x460] sm:$0xff]   ;;  %vm7689_vm4 = vcmp.eq.s32.totalorder %v6635_v36, 8 }
 0x842   :  { %vm5374_vm10 = vmpackc.low %vm5372_vm2, %vm5372_vm2  ;;  %vm2191_vm2 = vcmask 1041408  }
 0x843   :  { %v1247_v15 = vpack.c.bf16 %v1215_v0, %v1215_v0  ;;  %v1233_v38 = vrot.slane %v1215_v0, 1  ;;  %v1230_v47 = vrot.slane %v1215_v0, 7  ;;  %v6190_v0 = vld [vmem:[#allocation3 + $0xb8] sm:$0xff]  }
 0x844   :  { %1467 = vmatpush1.bf16.msra.mxu1 %v6190_v0  ;;  %v6199_v0 = vld [vmem:[#allocation3 + $0x100] sm:$0xff]  }
 0x845   :  { %1250 = vrot.lane.b32.xlu0 %v1247_v15, %s6380_s30  ;;  %v1235_v41 = vsel %vm79_vm1, %v1233_v38, 0.0  ;;  %v1232_v43 = vsel %vm54_vm0, 0.0, %v1230_v47  ;;  %v6191_v47 = vld [vmem:[#allocation3 + $0xc0] sm:$0xff]   ;;  %1468 = vmatprep.subr.bf16.mxu1 %v7650_v9 }
 0x846   :  { %v1245_v28 = vsel %vm6943_vm3, 0.0, %v1235_v41  ;;  %v1242_v15 = vsel %vm6955_vm5, 0.0, %v1232_v43  ;;  %v6192_v43 = vld [vmem:[#allocation3 + $0xc8] sm:$0xff]  }
 0x847   :  { %v1248_v11 = vpack.c.bf16 %v1245_v28, %v1245_v28  ;;  %v1246_v54 = vpack.c.bf16 %v1242_v15, %v1242_v15  ;;  %v6194_v15 = vld [vmem:[#allocation3 + $0xd8] sm:$0xff]  }
 0x848   :  { %1469 = vmatpush1.bf16.msra.mxu1 %v6191_v47  ;;  %v6200_v47 = vld [vmem:[#allocation3 + $0x108] sm:$0xff]  }
 0x849   :  { %1253 = vrot.lane.b32.xlu1 %v1248_v11, %s6376_s28  ;;  %1470 = vmatprep.subr.bf16.mxu1 %v7650_v9 }
 0x84c   :  { %1471 = vmatpush1.bf16.msra.mxu1 %v6192_v43  ;;  %v6201_v43 = vld [vmem:[#allocation3 + $0x110] sm:$0xff]  }
 0x84d   :  { %1472 = vmatprep.subr.bf16.mxu1 %v7650_v9 }
 0x8b7   :  { %v1251_v38 = vpop.permute.xlu0 %1250 }
 0x8b8   :  { %v1257_v41 = vsel %vm861_vm15, %v1246_v54, %v1251_v38  ;;  %v6193_v54 = vld [vmem:[#allocation3 + $0xd0] sm:$0xff]   ;;  %v6195_v38 = vld [vmem:[#allocation3 + $0xe0] sm:$0xff]  }
 0x8b9   :  { %1473 = vmatpush1.bf16.msra.mxu1 %v6193_v54  ;;  %v5306_v54 = vld [vmem:[%s7636_s2 + $0x6] ss:$0 sm:$0xff] }
 0x8ba   :  { %1474 = vmatprep.subr.bf16.mxu1 %v7650_v9 }
 0x8bb   :  { %v1254_v28 = vpop.permute.xlu1 %1253 }
 0x8bc   :  { %v1259_v11 = vsel %vm1122_vm12, %v1257_v41, %v1254_v28  ;;  %v6196_v41 = vld [vmem:[#allocation3 + $0xe8] sm:$0xff]   ;;  %v6197_v28 = vld [vmem:[#allocation3 + $0xf0] sm:$0xff]  }
 0x8bd   :  { %5828 = vmatmul.mubr.msk.bf16.vlgmr.msra.gmra.mrb[16].mxu0 %vm1165_vm14, %v1259_v11  ;;  %1475 = vmatpush1.bf16.msra.mxu1 %v6194_v15  ;;  %v6198_v11 = vld [vmem:[#allocation3 + $0xf8] sm:$0xff]  }
 0x8be   :  { %1476 = vmatprep.subr.bf16.mxu1 %v7650_v9 }
 0x8c1   :  { %1477 = vmatpush1.bf16.msra.mxu1 %v6195_v38 }
 0x8c2   :  { %1478 = vmatprep.subr.bf16.mxu1 %v7650_v9 }
 0x8c5   :  { %1479 = vmatpush1.bf16.msra.mxu1 %v6196_v41 }
 0x8c6   :  { %1480 = vmatprep.subr.bf16.mxu1 %v7650_v9 }
 0x8c9   :  { %1481 = vmatpush1.bf16.msra.mxu1 %v6197_v28 }
 0x8ca   :  { %1482 = vmatprep.subr.bf16.mxu1 %v7650_v9 }
 0x8cd   :  { %1483 = vmatpush1.bf16.msra.mxu1 %v6198_v11 }
 0x8ce   :  { %1484 = vmatprep.subr.bf16.mxu1 %v7650_v9 }
 0x8d1   :  { %1485 = vmatpush1.bf16.msra.mxu1 %v6199_v0 }
 0x8d2   :  { %1486 = vmatprep.subr.bf16.mxu1 %v7650_v9 }
 0x8d5   :  { %1487 = vmatpush1.bf16.msra.mxu1 %v6200_v47 }
 0x8d6   :  { %1488 = vmatprep.subr.bf16.mxu1 %v7650_v9 }
 0x8d9   :  { %1489 = vmatpush1.bf16.msra.mxu1 %v6201_v43 }
 0x990   :  { %v1336_v15 = vpop.f32.mrb[16].mxu0 }
 0x991   :  { %v1337_v38 = vadd.f32 %v5306_v54, %v1336_v15  ;;  %v5829_v41 = vpop.f32.mrb[17].mxu0 }
 0x992   :  { %v1339_v28 = vpop.f32.mrb[18].mxu0  ;;  %v6203_v41 = vld [vmem:[#allocation3 + $0x120] sm:$0xff]  }
 0x993   :  { %v1342_v11 = vmax.f32 %v1337_v38, 0.0  ;;  %v5830_v33 = vpop.f32.mrb[19].mxu0  ;;  %v7673_v28 = vmov 0  }
 0x995   :  { %v1372_v10 = vrot.slane %v1342_v11, 1  ;;  %v1378_v0 = vpack.c.bf16 %v1342_v11, %v1342_v11  ;;  %v1369_v23 = vrot.slane %v1342_v11, 7  ;;  %v6205_v11 = vld [vmem:[#allocation3 + $0x130] sm:$0xff]  }
 0x997   :  { %v1374_v12 = vsel %vm79_vm1, %v1372_v10, 0.0  ;;  %1381 = vrot.lane.b32.xlu0 %v1378_v0, %s6376_s28  ;;  %v1371_v9 = vsel %vm54_vm0, 0.0, %v1369_v23  ;;  %v6202_v10 = vld [vmem:[#allocation3 + $0x118] sm:$0xff]   ;;  %v6208_v0 = vld [vmem:[#allocation3 + $0x148] sm:$0xff]  }
 0x998   :  { %v1376_v47 = vsel %vm6943_vm3, 0.0, %v1374_v12  ;;  %v1375_v54 = vsel %vm6955_vm5, 0.0, %v1371_v9  ;;  %1644 = vmatpush1.bf16.msra.mxu0 %v6202_v10  ;;  %v6204_v12 = vld [vmem:[#allocation3 + $0x128] sm:$0xff]   ;;  %v6206_v23 = vld [vmem:[#allocation3 + $0x138] sm:$0xff]   ;;  %v6207_v9 = vld [vmem:[#allocation3 + $0x140] sm:$0xff]  }
 0x999   :  { %v1379_v43 = vpack.c.bf16 %v1376_v47, %v1376_v47  ;;  %v1377_v15 = vpack.c.bf16 %v1375_v54, %v1375_v54  ;;  %1645 = vmatprep.subr.bf16.mxu0 %v7673_v28  ;;  %v6209_v47 = vld [vmem:[#allocation3 + $0x150] sm:$0xff]   ;;  %v6211_v54 = vld [vmem:[#allocation3 + $0x160] sm:$0xff]  }
 0x99a   :  { %v5314_v10 = vld [vmem:[%s7636_s2 + $0x7] ss:$0 sm:$0xff] }
 0x99b   :  { %5327 = vmatprep.mubr.msk.bf16.mxu1 %vm1122_vm12, %v1379_v43  ;;  %v6210_v43 = vld [vmem:[#allocation3 + $0x158] sm:$0xff]  }
 0x99c   :  { %1646 = vmatpush1.bf16.msra.mxu0 %v6203_v41 }
 0x99d   :  { %1647 = vmatprep.subr.bf16.mxu0 %v7673_v28 }
 0x9a0   :  { %1648 = vmatpush1.bf16.msra.mxu0 %v6204_v12 }
 0x9a1   :  { %1649 = vmatprep.subr.bf16.mxu0 %v7673_v28 }
 0x9a4   :  { %1650 = vmatpush1.bf16.msra.mxu0 %v6205_v11 }
 0x9a5   :  { %1651 = vmatprep.subr.bf16.mxu0 %v7673_v28 }
 0x9a8   :  { %1652 = vmatpush1.bf16.msra.mxu0 %v6206_v23 }
 0x9a9   :  { %1653 = vmatprep.subr.bf16.mxu0 %v7673_v28 }
 0x9ac   :  { %1654 = vmatpush1.bf16.msra.mxu0 %v6207_v9 }
 0x9ad   :  { %1655 = vmatprep.subr.bf16.mxu0 %v7673_v28 }
 0x9b0   :  { %1656 = vmatpush1.bf16.msra.mxu0 %v6208_v0 }
 0x9b1   :  { %1657 = vmatprep.subr.bf16.mxu0 %v7673_v28 }
 0x9b4   :  { %1658 = vmatpush1.bf16.msra.mxu0 %v6209_v47  ;;  %v6214_v47 = vld [vmem:[#allocation3 + $0x1b8] sm:$0xff]  }
 0x9b5   :  { %1659 = vmatprep.subr.bf16.mxu0 %v7673_v28  ;;  %5593 = vmatprep.subr.bf16.mxu1 %v6214_v47 }
 0x9b8   :  { %1660 = vmatpush1.bf16.msra.mxu0 %v6210_v43  ;;  %v6215_v43 = vld [vmem:[#allocation3 + $0x178] sm:$0xff]  }
 0x9b9   :  { %1661 = vmatprep.subr.bf16.mxu0 %v7673_v28 }
 0x9bc   :  { %1662 = vmatpush1.bf16.msra.mxu0 %v6211_v54  ;;  %v6217_v54 = vld [vmem:[#allocation3 + $0x1c0] sm:$0xff]  }
 0x9bd   :  { %1663 = vmatprep.subr.bf16.mxu0 %v7673_v28 }
 0xa09   :  { %v1382_v33 = vpop.permute.xlu0 %1381 }
 0xa0a   :  { %v1385_v38 = vsel %vm1122_vm12, %v1377_v15, %v1382_v33  ;;  %v6212_v15 = vld [vmem:[#allocation3 + $0x168] sm:$0xff]   ;;  %v6213_v33 = vld [vmem:[#allocation3 + $0x170] sm:$0xff]  }
 0xa0b   :  { %1499 = vmatmul.mubr.bf16.vlgmr.msra.gmra.mrb[16].mxu1 %v1385_v38  ;;  %1664 = vmatpush1.bf16.msra.mxu0 %v6212_v15  ;;  %v7674_v38 = vmov 0.0   ;;  %v6218_v15 = vld [vmem:[#allocation3 + $0x180] sm:$0xff]  }
 0xa0c   :  { %1665 = vmatprep.subr.bf16.mxu0 %v7673_v28  ;;  %5594 = vmatpush3.bf16.msra.mxu1 %v6215_v43 }
 0xa0d   :  { %5595 = vmatprep.subr.bf16.mxu1 %v6217_v54  ;;  %v6224_v54 = vld [vmem:[#allocation3 + $0x190] sm:$0xff]  }
 0xa0f   :  { %1666 = vmatpush1.bf16.msra.mxu0 %v6213_v33  ;;  %v6220_v33 = vld [vmem:[#allocation3 + $0x1c8] sm:$0xff]  }
 0xa10   :  { %5831 = vmatprep.subr.bf16.mxu0 %v7674_v38  ;;  %5596 = vmatpush3.bf16.msra.mxu1 %v6218_v15  ;;  %v6227_v15 = vld [vmem:[#allocation3 + $0x198] sm:$0xff]  }
 0xa11   :  { %5597 = vmatprep.subr.bf16.mxu1 %v6220_v33  ;;  %v6229_v33 = vld [vmem:[#allocation3 + $0x1e0] sm:$0xff]  }
 0xade   :  { %v1500_v41 = vpop.f32.mrb[16].mxu1 }
 0xadf   :  { %v1501_v12 = vadd.f32 %v5314_v10, %v1500_v41  ;;  %v1502_v11 = vpop.f32.mrb[17].mxu1 }
 0xae0   :  { %v1503_v23 = vpop.f32.mrb[18].mxu1  ;;  %v6240_v11 = vld [vmem:[#allocation3 + $0x240] sm:$0xff]  }
 0xae1   :  { %v7005_v9 = vmax.f32 %v1501_v12, 0.0  ;;  %v1504_v0 = vpop.f32.mrb[19].mxu1  ;;  %v6221_v23 = vld [vmem:[#allocation3 + $0x188] sm:$0xff]  }
 0xae2   :  { %v6223_v0 = vld [vmem:[#allocation3 + $0x1d0] sm:$0xff]   ;;  %5598 = vmatpush3.bf16.msra.mxu1 %v6221_v23  ;;  %v6241_v23 = vld [vmem:[#allocation3 + $0x280] sm:$0xff]  }
 0xae3   :  { %1507 = vst.msk [vmem:[#allocation2] sm:$0xff] %vm1122_vm12, %v7005_v9  ;;  %5599 = vmatprep.subr.bf16.mxu1 %v6223_v0  ;;  %v2358_v45 = vrot.slane %v7005_v9, 1 }
 0xae6   :  { %5600 = vmatpush3.bf16.msra.mxu1 %v6224_v54  ;;  %v6222_v54 = vld [vmem:[#allocation3 + $0x208] sm:$0xff]  }
 0xae7   :  { %5601 = vmatprep.subr.bf16.mxu1 %v6226_v40 }
 0xaea   :  { %v1508_v7 = vld [vmem:[#allocation2] ss:$2 sm:$0xf]  ;;  %v1509_v3 = vld [vmem:[#allocation2 + $0x1] ss:$2 sm:$0xf]  ;;  %5602 = vmatpush3.bf16.msra.mxu1 %v6227_v15 }
 0xaeb   :  { %v1510_v10 = vmax.f32 %v1508_v7, %v1509_v3  ;;  %v2364_v7 = vpack.c.bf16 %v7005_v9, %v7005_v9  ;;  %5603 = vmatprep.subr.bf16.mxu1 %v6229_v33  ;;  %v6225_v15 = vld [vmem:[#allocation3 + $0x210] sm:$0xff]   ;;  %v6228_v33 = vld [vmem:[#allocation3 + $0x218] sm:$0xff]  }
 0xaed   :  { %v1555_v41 = vpack.c.bf16 %v1510_v10, %v1510_v10  ;;  %v1540_v12 = vrot.slane %v1510_v10, 1 }
 0xaef   :  { %1558 = vrot.lane.b32.xlu1 %v1555_v41, %s6376_s28  ;;  %v1543_v47 = vsel %vm1542_vm13, %v1540_v12, 0.0  ;;  %v6230_v41 = vld [vmem:[#allocation3 + $0x1a0] sm:$0xff]   ;;  %v1537_v12 = vrot.slane %v1510_v10, 7 }
 0xaf0   :  { %v1553_v3 = vsel %vm7012_vm6, 0.0, %v1543_v47  ;;  %5604 = vmatpush3.bf16.msra.mxu1 %v6230_v41  ;;  %v6219_v10 = vld [vmem:[#allocation3 + $0x200] sm:$0xff]  }
 0xaf1   :  { %v1556_v43 = vpack.c.bf16 %v1553_v3, %v1553_v3  ;;  %v1539_v0 = vsel %vm54_vm0, 0.0, %v1537_v12  ;;  %v6216_v3 = vld [vmem:[#allocation3 + $0x1f8] sm:$0xff]   ;;  %v6231_v41 = vld [vmem:[#allocation3 + $0x220] sm:$0xff]   ;;  %v6232_v12 = vld [vmem:[#allocation3 + $0x1e8] sm:$0xff]  }
 0xaf2   :  { %v1550_v47 = vsel %vm7027_vm11, 0.0, %v1539_v0  ;;  %v6233_v0 = vld [vmem:[#allocation3 + $0x1a8] sm:$0xff]   ;;  %5605 = vmatprep.subr.bf16.mxu1 %v6232_v12  ;;  %vm7688_vm11 = vcmp.eq.s32.totalorder %v6429_v1, 0 }
 0xaf3   :  { %2367 = vrot.lane.b32.xlu1 %v2364_v7, %s6376_s28  ;;  %5341 = vmatprep.mubr.msk.bf16.mxu0 %vm1122_vm12, %v1556_v43  ;;  %v1554_v40 = vpack.c.bf16 %v1550_v47, %v1550_v47  ;;  %v6234_v47 = vld [vmem:[#allocation3 + $0x228] sm:$0xff]  }
 0xaf4   :  { %5606 = vmatpush3.bf16.msra.mxu1 %v6233_v0 }
 0xb61   :  { %v1559_v7 = vpop.permute.xlu1 %1558 }
 0xb62   :  { %v1562_v43 = vsel %vm1122_vm12, %v1554_v40, %v1559_v7  ;;  %v6235_v40 = vld [vmem:[#allocation3 + $0x1f0] sm:$0xff]  }
 0xb63   :  { %1676 = vmatmul.mubr.bf16.vlgmr.msra.gmra.mrb[20].mxu0 %v1562_v43  ;;  %v6237_v7 = vld [vmem:[#allocation3 + $0x230] sm:$0xff]   ;;  %5607 = vmatprep.subr.bf16.mxu1 %v6235_v40  ;;  %v5328_v43 = vld [vmem:[%s7636_s2 + $0x8] ss:$0 sm:$0xff] }
 0xb64   :  { %5832 = vmatpush3.bf16.msra.mxu0 %v6216_v3  ;;  %5847 = vmatprep.mubr.msk.bf16.mxu0 %vm6382_vm9, %v7674_v38  ;;  %v6236_v3 = vld [vmem:[#allocation3 + $0x1b0] sm:$0xff]  }
 0xb65   :  { %5833 = vmatprep.subr.bf16.mxu0 %v7674_v38  ;;  %5608 = vmatpush3.bf16.msra.mxu1 %v6236_v3 }
 0xb66   :  { %5851 = vmatprep.subr.bf16.mxu1 %v7674_v38 }
 0xb68   :  { %5834 = vmatpush3.bf16.msra.mxu0 %v6219_v10 }
 0xb69   :  { %5835 = vmatprep.subr.bf16.mxu0 %v7674_v38 }
 0xb6c   :  { %5836 = vmatpush3.bf16.msra.mxu0 %v6222_v54 }
 0xb6d   :  { %5837 = vmatprep.subr.bf16.mxu0 %v7674_v38 }
 0xb70   :  { %5838 = vmatpush3.bf16.msra.mxu0 %v6225_v15 }
 0xb71   :  { %5839 = vmatprep.subr.bf16.mxu0 %v7674_v38 }
 0xb74   :  { %5840 = vmatpush3.bf16.msra.mxu0 %v6228_v33 }
 0xb75   :  { %5841 = vmatprep.subr.bf16.mxu0 %v7674_v38 }
 0xb78   :  { %5842 = vmatpush3.bf16.msra.mxu0 %v6231_v41 }
 0xb79   :  { %5843 = vmatprep.subr.bf16.mxu0 %v7674_v38 }
 0xb7c   :  { %5844 = vmatpush3.bf16.msra.mxu0 %v6234_v47 }
 0xb7d   :  { %5845 = vmatprep.subr.bf16.mxu0 %v7674_v38 }
 0xb80   :  { %5846 = vmatpush3.bf16.msra.mxu0 %v6237_v7 }
 0xb81   :  { %5871 = vmatprep.subr.bf16.mxu0 %v7674_v38 }
 0xc36   :  { %v1677_v10 = vpop.f32.mrb[20].mxu0 }
 0xc37   :  { %v1678_v54 = vadd.f32 %v5328_v43, %v1677_v10  ;;  %v1679_v15 = vpop.f32.mrb[21].mxu0  ;;  %v6238_v43 = vld [vmem:[#allocation3 + $0x238] sm:$0xff]  }
 0xc38   :  { %v1680_v33 = vpop.f32.mrb[22].mxu0  ;;  %v6239_v10 = vld [vmem:[#allocation3 + $0x278] sm:$0xff]  }
 0xc39   :  { %v1683_v41 = vmax.f32 %v1678_v54, 0.0  ;;  %v1681_v12 = vpop.f32.mrb[23].mxu0  ;;  %v6242_v33 = vld [vmem:[#allocation3 + $0x248] sm:$0xff]  }
 0xc3a   :  { %v6244_v12 = vld [vmem:[#allocation3 + $0x250] sm:$0xff]  }
 0xc3b   :  { %v1734_v0 = vrot.slane %v1683_v41, 7  ;;  %v1737_v47 = vrot.slane %v1683_v41, 1  ;;  %v1743_v40 = vpack.c.bf16 %v1683_v41, %v1683_v41  ;;  %v6243_v41 = vld [vmem:[#allocation3 + $0x288] sm:$0xff]  }
 0xc3d   :  { %v1736_v3 = vsel %vm54_vm0, 0.0, %v1734_v0  ;;  %v1739_v7 = vsel %vm1542_vm13, %v1737_v47, 0.0  ;;  %1925 = vmatprep.mubr.bf16.mxu1 %v1743_v40  ;;  %v6245_v0 = vld [vmem:[#allocation3 + $0x290] sm:$0xff]   ;;  %v6246_v47 = vld [vmem:[#allocation3 + $0x258] sm:$0xff]   ;;  %vm7686_vm13 = vcmp.eq.s32.totalorder %v6429_v1, 7 }
 0xc3e   :  { %v5370_v54 = vpack.c.bf16 %v1736_v3, %v1736_v3  ;;  %v5375_v15 = vpack.c.bf16 %v1739_v7, %v1739_v7  ;;  %v6247_v40 = vld [vmem:[#allocation3 + $0x298] sm:$0xff]   ;;  %v6248_v3 = vld [vmem:[#allocation3 + $0x260] sm:$0xff]  }
 0xc3f   :  { %v6249_v7 = vld [vmem:[#allocation3 + $0x2a0] sm:$0xff]  }
 0xc40   :  { %5371 = vmatmul.mubr.msk.bf16.vlgmr.msra.gmra.mrb[20].mxu1 %vm5369_vm8, %v5370_v54  ;;  %5848 = vmatmul.mubr.msk.bf16.vlgmr.msra.gmra.mrb[24].mxu0 %vm5374_vm10, %v5375_v15  ;;  %v6252_v54 = vld [vmem:[#allocation3 + $0x270] sm:$0xff]   ;;  %vm7684_vm8 = vcmask 64512  }
 0xc41   :  { %5852 = vmatpush3.bf16.msra.mxu1 %v6238_v43  ;;  %5872 = vmatpush3.bf16.msra.mxu0 %v6239_v10  ;;  %v6250_v43 = vld [vmem:[#allocation3 + $0x268] sm:$0xff]   ;;  %v6253_v15 = vld [vmem:[#allocation3 + $0x2b0] sm:$0xff]   ;;  %vm7685_vm10 = vmmov %vm7684_vm8 }
 0xc42   :  { %5853 = vmatprep.subr.bf16.mxu1 %v7674_v38  ;;  %5873 = vmatprep.subr.bf16.mxu0 %v7674_v38  ;;  %v6251_v10 = vld [vmem:[#allocation3 + $0x2a8] sm:$0xff]  }
 0xc43   :  { %5867 = vmatprep.mubr.msk.bf16.mxu1 %vm6382_vm9, %v7674_v38  ;;  %5887 = vmatprep.mubr.msk.bf16.mxu0 %vm6382_vm9, %v7674_v38 }
 0xc45   :  { %5854 = vmatpush3.bf16.msra.mxu1 %v6240_v11  ;;  %5874 = vmatpush3.bf16.msra.mxu0 %v6241_v23 }
 0xc46   :  { %5855 = vmatprep.subr.bf16.mxu1 %v7674_v38  ;;  %5875 = vmatprep.subr.bf16.mxu0 %v7674_v38 }
 0xc49   :  { %5856 = vmatpush3.bf16.msra.mxu1 %v6242_v33  ;;  %5876 = vmatpush3.bf16.msra.mxu0 %v6243_v41  ;;  %v5342_v33 = vld [vmem:[%s7636_s2 + $0x9] ss:$0 sm:$0xff] }
 0xc4a   :  { %5857 = vmatprep.subr.bf16.mxu1 %v7674_v38  ;;  %5877 = vmatprep.subr.bf16.mxu0 %v7674_v38 }
 0xc4d   :  { %5858 = vmatpush3.bf16.msra.mxu1 %v6244_v12  ;;  %5878 = vmatpush3.bf16.msra.mxu0 %v6245_v0 }
 0xc4e   :  { %5859 = vmatprep.subr.bf16.mxu1 %v7674_v38  ;;  %5879 = vmatprep.subr.bf16.mxu0 %v7674_v38 }
 0xc51   :  { %5860 = vmatpush3.bf16.msra.mxu1 %v6246_v47  ;;  %5880 = vmatpush3.bf16.msra.mxu0 %v6247_v40 }
 0xc52   :  { %5861 = vmatprep.subr.bf16.mxu1 %v7674_v38  ;;  %5881 = vmatprep.subr.bf16.mxu0 %v7674_v38 }
 0xc55   :  { %5862 = vmatpush3.bf16.msra.mxu1 %v6248_v3  ;;  %5882 = vmatpush3.bf16.msra.mxu0 %v6249_v7 }
 0xc56   :  { %5863 = vmatprep.subr.bf16.mxu1 %v7674_v38  ;;  %5883 = vmatprep.subr.bf16.mxu0 %v7674_v38 }
 0xc59   :  { %5864 = vmatpush3.bf16.msra.mxu1 %v6250_v43  ;;  %5884 = vmatpush3.bf16.msra.mxu0 %v6251_v10 }
 0xc5a   :  { %5865 = vmatprep.subr.bf16.mxu1 %v7674_v38  ;;  %5885 = vmatprep.subr.bf16.mxu0 %v7674_v38 }
 0xc5d   :  { %5866 = vmatpush3.bf16.msra.mxu1 %v6252_v54  ;;  %5886 = vmatpush3.bf16.msra.mxu0 %v6253_v15 }
 0xc5e   :  { %5891 = vmatprep.subr.bf16.mxu1 %v7674_v38  ;;  %5897 = vmatprep.subr.bf16.mxu0 %v7674_v38 }
 0xd13   :  { %v5609_v11 = vpop.f32.mrb[20].mxu1  ;;  %v1967_v23 = vpop.f32.mrb[24].mxu0 }
 0xd14   :  { %v5610_v41 = vpop.f32.mrb[21].mxu1  ;;  %v5849_v12 = vpop.f32.mrb[25].mxu0 }
 0xd15   :  { %v5611_v0 = vadd.f32 %v5610_v41, %v5609_v11  ;;  %v5612_v47 = vpop.f32.mrb[22].mxu1  ;;  %v1970_v40 = vpop.f32.mrb[26].mxu0  ;;  %v2360_v41 = vsel %vm79_vm1, %v2358_v45, 0.0  ;;  %v2184_v45 = vld [vmem:[%s7637_s3] sm:$0xf] }
 0xd16   :  { %v5613_v3 = vpop.f32.mrb[23].mxu1  ;;  %v5850_v7 = vpop.f32.mrb[27].mxu0 }
 0xd17   :  { %v1928_v43 = vadd.f32 %v5611_v0, %v5342_v33 }
 0xd19   :  { %v1968_v10 = vadd.f32 %v1967_v23, %v1928_v43 }
 0xd1b   :  { %v1973_v54 = vmax.f32 %v1968_v10, 0.0 }
 0xd1d   :  { %v2007_v15 = vpack.c.bf16 %v1973_v54, %v1973_v54 }
 0xd1f   :  { %5868 = vmatmul.mubr.bf16.vlgmr.msra.gmra.mrb[24].mxu1 %v2007_v15  ;;  %5888 = vmatmul.mubr.bf16.vlgmr.msra.gmra.mrb[28].mxu0 %v2007_v15  ;;  %v2362_v15 = vsel %vm6943_vm3, 0.0, %v2360_v41  ;;  %v6255_v41 = vld [vmem:[#allocation3 + $0x320] sm:$0xff]  }
 0xd20   :  { %5893 = vmatprep.mubr.msk.bf16.mxu1 %vm6382_vm9, %v7674_v38  ;;  %5899 = vmatprep.mubr.msk.bf16.mxu0 %vm6382_vm9, %v7674_v38 }
 0xdf2   :  { %v2090_v12 = vpop.f32.mrb[24].mxu1  ;;  %v2178_v11 = vpop.f32.mrb[28].mxu0 }
 0xdf3   :  { %v2186_v47 = vpack.c.bf16 %v2090_v12, %v2090_v12  ;;  %v2187_v33 = vpack.c.bf16 %v2178_v11, %v2178_v11  ;;  %v5869_v23 = vpop.f32.mrb[25].mxu1  ;;  %v5889_v0 = vpop.f32.mrb[29].mxu0  ;;  %v6254_v12 = vld [vmem:[#allocation3 + $0x318] sm:$0xff]   ;;  %v2365_v11 = vpack.c.bf16 %v2362_v15, %v2362_v15  ;;  %v6265_v15 = vld [vmem:[#allocation3 + $0x370] sm:$0xff]  }
 0xdf4   :  { %v2093_v40 = vpop.f32.mrb[26].mxu1  ;;  %v2181_v3 = vpop.f32.mrb[30].mxu0  ;;  %v6258_v23 = vld [vmem:[#allocation3 + $0x338] sm:$0xff]   ;;  %v6260_v0 = vld [vmem:[#allocation3 + $0x348] sm:$0xff]  }
 0xdf5   :  { %v2239_v7 = vsel %vm2191_vm2, %v2186_v47, 0  ;;  %v2193_v43 = vsel %vm2191_vm2, %v2187_v33, 0  ;;  %v5870_v10 = vpop.f32.mrb[27].mxu1  ;;  %v5890_v54 = vpop.f32.mrb[31].mxu0  ;;  %v6256_v47 = vld [vmem:[#allocation3 + $0x328] sm:$0xff]   ;;  %v6257_v33 = vld [vmem:[#allocation3 + $0x330] sm:$0xff]   ;;  %vm7690_vm2 = vmmov %vm7686_vm13 }
 0xdf6   :  { %5892 = vmatpush3.bf16.msra.mxu1 %v2193_v43  ;;  %5898 = vmatpush3.bf16.msra.mxu0 %v2239_v7  ;;  %v6261_v40 = vld [vmem:[#allocation3 + $0x350] sm:$0xff]   ;;  %v6262_v3 = vld [vmem:[#allocation3 + $0x358] sm:$0xff]   ;;  %v6263_v7 = vld [vmem:[#allocation3 + $0x360] sm:$0xff]   ;;  %v2355_v43 = vrot.slane %v7005_v9, 7 }
 0xdf7   :  { %2448 = vmatprep.subr.bf16.mxu1 %v7673_v28  ;;  %2563 = vmatprep.subr.bf16.mxu0 %v7673_v28  ;;  %v6264_v10 = vld [vmem:[#allocation3 + $0x368] sm:$0xff]  }
 0xdf8   :  { %v2357_v54 = vsel %vm54_vm0, 0.0, %v2355_v43  ;;  %v6275_v43 = vld [vmem:[#allocation3 + $0x300] sm:$0xff]  }
 0xdf9   :  { %5894 = vmatmul.mubr.msk.bf16.vlgmr.msra.gmra.mrb[28].mxu1 %vm245_vm7, %v2185_v55  ;;  %5900 = vmatmul.mubr.msk.bf16.vlgmr.msra.gmra.mrb[32].mxu0 %vm245_vm7, %v2184_v45  ;;  %v6259_v55 = vld [vmem:[#allocation3 + $0x340] sm:$0xff]   ;;  %v2361_v45 = vsel %vm6955_vm5, 0.0, %v2357_v54  ;;  %v6277_v54 = vld [vmem:[#allocation3 + $0x310] sm:$0xff]  }
 0xdfa   :  { %2449 = vmatpush1.bf16.msra.mxu1 %v6254_v12  ;;  %5408 = vmatprep.mubr.msk.bf16.mxu1 %vm1122_vm12, %v2365_v11  ;;  %v2368_v12 = vpop.permute.xlu1 %2367  ;;  %v2363_v11 = vpack.c.bf16 %v2361_v45, %v2361_v45  ;;  %v5395_v45 = vld [vmem:[%s7636_s2 + $0xa] ss:$0 sm:$0xff] }
 0xdfb   :  { %2450 = vmatprep.subr.bf16.mxu1 %v7673_v28 }
 0xdfc   :  { %v2371_v9 = vsel %vm1122_vm12, %v2363_v11, %v2368_v12 }
 0xdfe   :  { %2451 = vmatpush1.bf16.msra.mxu1 %v6255_v41  ;;  %v6266_v41 = vld [vmem:[#allocation3 + $0x2b8] sm:$0xff]  }
 0xdff   :  { %2452 = vmatprep.subr.bf16.mxu1 %v7673_v28  ;;  %2564 = vmatpush1.bf16.msra.mxu0 %v6266_v41 }
 0xe00   :  { %2565 = vmatprep.subr.bf16.mxu0 %v7673_v28 }
 0xe02   :  { %2453 = vmatpush1.bf16.msra.mxu1 %v6256_v47  ;;  %v6267_v47 = vld [vmem:[#allocation3 + $0x2c0] sm:$0xff]  }
 0xe03   :  { %2454 = vmatprep.subr.bf16.mxu1 %v7673_v28  ;;  %2566 = vmatpush1.bf16.msra.mxu0 %v6267_v47 }
 0xe04   :  { %2567 = vmatprep.subr.bf16.mxu0 %v7673_v28 }
 0xe06   :  { %2455 = vmatpush1.bf16.msra.mxu1 %v6257_v33  ;;  %v6268_v33 = vld [vmem:[#allocation3 + $0x2c8] sm:$0xff]  }
 0xe07   :  { %2456 = vmatprep.subr.bf16.mxu1 %v7673_v28  ;;  %2568 = vmatpush1.bf16.msra.mxu0 %v6268_v33 }
 0xe08   :  { %2569 = vmatprep.subr.bf16.mxu0 %v7673_v28 }
 0xe0a   :  { %2457 = vmatpush1.bf16.msra.mxu1 %v6258_v23  ;;  %v6269_v23 = vld [vmem:[#allocation3 + $0x2d0] sm:$0xff]  }
 0xe0b   :  { %2458 = vmatprep.subr.bf16.mxu1 %v7673_v28  ;;  %2570 = vmatpush1.bf16.msra.mxu0 %v6269_v23 }
 0xe0c   :  { %2571 = vmatprep.subr.bf16.mxu0 %v7673_v28 }
 0xe0e   :  { %2459 = vmatpush1.bf16.msra.mxu1 %v6259_v55  ;;  %v6270_v55 = vld [vmem:[#allocation3 + $0x2d8] sm:$0xff]  }
 0xe0f   :  { %2460 = vmatprep.subr.bf16.mxu1 %v7673_v28  ;;  %2572 = vmatpush1.bf16.msra.mxu0 %v6270_v55 }
 0xe10   :  { %2573 = vmatprep.subr.bf16.mxu0 %v7673_v28 }
 0xe12   :  { %2461 = vmatpush1.bf16.msra.mxu1 %v6260_v0  ;;  %v6271_v0 = vld [vmem:[#allocation3 + $0x2e0] sm:$0xff]  }
 0xe13   :  { %2462 = vmatprep.subr.bf16.mxu1 %v7673_v28  ;;  %2574 = vmatpush1.bf16.msra.mxu0 %v6271_v0 }
 0xe14   :  { %2575 = vmatprep.subr.bf16.mxu0 %v7673_v28 }
 0xe16   :  { %2463 = vmatpush1.bf16.msra.mxu1 %v6261_v40  ;;  %v6272_v40 = vld [vmem:[#allocation3 + $0x2e8] sm:$0xff]  }
 0xe17   :  { %2464 = vmatprep.subr.bf16.mxu1 %v7673_v28  ;;  %2576 = vmatpush1.bf16.msra.mxu0 %v6272_v40 }
 0xe18   :  { %2577 = vmatprep.subr.bf16.mxu0 %v7673_v28 }
 0xe1a   :  { %2465 = vmatpush1.bf16.msra.mxu1 %v6262_v3  ;;  %v6273_v3 = vld [vmem:[#allocation3 + $0x2f0] sm:$0xff]  }
 0xe1b   :  { %2466 = vmatprep.subr.bf16.mxu1 %v7673_v28  ;;  %2578 = vmatpush1.bf16.msra.mxu0 %v6273_v3 }
 0xe1c   :  { %2579 = vmatprep.subr.bf16.mxu0 %v7673_v28 }
 0xe1e   :  { %2467 = vmatpush1.bf16.msra.mxu1 %v6263_v7  ;;  %v6274_v7 = vld [vmem:[#allocation3 + $0x2f8] sm:$0xff]  }
 0xe1f   :  { %2468 = vmatprep.subr.bf16.mxu1 %v7673_v28  ;;  %2580 = vmatpush1.bf16.msra.mxu0 %v6274_v7 }
 0xe20   :  { %2581 = vmatprep.subr.bf16.mxu0 %v7673_v28 }
 0xe22   :  { %2469 = vmatpush1.bf16.msra.mxu1 %v6264_v10  ;;  %v6276_v10 = vld [vmem:[#allocation3 + $0x308] sm:$0xff]  }
 0xe23   :  { %2470 = vmatprep.subr.bf16.mxu1 %v7673_v28  ;;  %2582 = vmatpush1.bf16.msra.mxu0 %v6275_v43 }
 0xe24   :  { %2583 = vmatprep.subr.bf16.mxu0 %v7673_v28 }
 0xe26   :  { %2471 = vmatpush1.bf16.msra.mxu1 %v6265_v15 }
 0xe27   :  { %2732 = vmatprep.subr.bf16.mxu1 %v7673_v28  ;;  %2584 = vmatpush1.bf16.msra.mxu0 %v6276_v10 }
 0xe28   :  { %2585 = vmatprep.subr.bf16.mxu0 %v7673_v28 }
 0xe29   :  { %2481 = vmatmul.mubr.bf16.vlgmr.msra.gmra.mrb[32].mxu1 %v2371_v9 }
 0xe2b   :  { %2586 = vmatpush1.bf16.msra.mxu0 %v6277_v54 }
 0xe2c   :  { %5903 = vmatprep.subr.bf16.mxu0 %v7674_v38 }
 0xecc   :  { %v2229_v15 = vpop.f32.mrb[28].mxu1  ;;  %v2275_v12 = vpop.f32.mrb[32].mxu0 }
 0xecd   :  { %v2276_v11 = vadd.f32 %v2275_v12, %v2229_v15  ;;  %v5895_v9 = vpop.f32.mrb[29].mxu1  ;;  %v5901_v41 = vpop.f32.mrb[33].mxu0 }
 0xece   :  { %v2232_v47 = vpop.f32.mrb[30].mxu1  ;;  %v2278_v33 = vpop.f32.mrb[34].mxu0 }
 0xecf   :  { %v2285_v23 = vadd.f32 %v5395_v45, %v2276_v11  ;;  %v5896_v55 = vpop.f32.mrb[31].mxu1  ;;  %v5902_v0 = vpop.f32.mrb[35].mxu0 }
 0xed0   :  { %v6278_v0 = vld [vmem:[#allocation3 + $0x378] sm:$0xff]  }
 0xed1   :  { %v2339_v40 = vrot.slane %v2285_v23, 1  ;;  %v2345_v3 = vpack.c.bf16 %v2285_v23, %v2285_v23  ;;  %v2336_v41 = vrot.slane %v2285_v23, 7  ;;  %2733 = vmatpush1.bf16.msra.mxu1 %v6278_v0  ;;  %v6280_v23 = vld [vmem:[#allocation3 + $0x388] sm:$0xff]  }
 0xed2   :  { %2734 = vmatprep.subr.bf16.mxu1 %v7673_v28 }
 0xed3   :  { %2348 = vrot.lane.b32.xlu0 %v2345_v3, %s6376_s28  ;;  %v2341_v7 = vsel %vm79_vm1, %v2339_v40, 0.0  ;;  %v2338_v45 = vsel %vm54_vm0, 0.0, %v2336_v41  ;;  %v6279_v40 = vld [vmem:[#allocation3 + $0x380] sm:$0xff]   ;;  %v6281_v3 = vld [vmem:[#allocation3 + $0x390] sm:$0xff]   ;;  %v6288_v41 = vld [vmem:[#allocation3 + $0x3c8] sm:$0xff]  }
 0xed4   :  { %v2343_v43 = vsel %vm6943_vm3, 0.0, %v2341_v7  ;;  %v2342_v11 = vsel %vm6955_vm5, 0.0, %v2338_v45  ;;  %v6282_v7 = vld [vmem:[#allocation3 + $0x398] sm:$0xff]   ;;  %v6289_v45 = vld [vmem:[#allocation3 + $0x3d0] sm:$0xff]  }
 0xed5   :  { %v2346_v10 = vpack.c.bf16 %v2343_v43, %v2343_v43  ;;  %v2344_v47 = vpack.c.bf16 %v2342_v11, %v2342_v11  ;;  %2735 = vmatpush1.bf16.msra.mxu1 %v6279_v40  ;;  %v6283_v43 = vld [vmem:[#allocation3 + $0x3a0] sm:$0xff]   ;;  %v5422_v11 = vld [vmem:[%s7636_s2 + $0xb] ss:$0 sm:$0xff] }
 0xed6   :  { %2736 = vmatprep.subr.bf16.mxu1 %v7673_v28 }
 0xed7   :  { %5421 = vmatprep.mubr.msk.bf16.mxu0 %vm1122_vm12, %v2346_v10  ;;  %v6284_v10 = vld [vmem:[#allocation3 + $0x3a8] sm:$0xff]  }
 0xed9   :  { %2737 = vmatpush1.bf16.msra.mxu1 %v6280_v23 }
 0xeda   :  { %2738 = vmatprep.subr.bf16.mxu1 %v7673_v28 }
 0xedd   :  { %2739 = vmatpush1.bf16.msra.mxu1 %v6281_v3 }
 0xede   :  { %2740 = vmatprep.subr.bf16.mxu1 %v7673_v28 }
 0xee1   :  { %2741 = vmatpush1.bf16.msra.mxu1 %v6282_v7 }
 0xee2   :  { %2742 = vmatprep.subr.bf16.mxu1 %v7673_v28 }
 0xee5   :  { %2743 = vmatpush1.bf16.msra.mxu1 %v6283_v43 }
 0xee6   :  { %2744 = vmatprep.subr.bf16.mxu1 %v7673_v28 }
 0xee9   :  { %2745 = vmatpush1.bf16.msra.mxu1 %v6284_v10 }
 0xeea   :  { %2746 = vmatprep.subr.bf16.mxu1 %v7673_v28 }
 0xefc   :  { %v2482_v54 = vpop.f32.mrb[32].mxu1 }
 0xefd   :  { %v2484_v15 = vpop.f32.mrb[33].mxu1 }
 0xefe   :  { %v2485_v12 = vpop.f32.mrb[34].mxu1  ;;  %v6285_v15 = vld [vmem:[#allocation3 + $0x3b0] sm:$0xff]  }
 0xeff   :  { %v2486_v9 = vpop.f32.mrb[35].mxu1  ;;  %2747 = vmatpush1.bf16.msra.mxu1 %v6285_v15  ;;  %v6286_v12 = vld [vmem:[#allocation3 + $0x3b8] sm:$0xff]  }
 0xf00   :  { %2748 = vmatprep.subr.bf16.mxu1 %v7673_v28  ;;  %v6287_v9 = vld [vmem:[#allocation3 + $0x3c0] sm:$0xff]  }
 0xf03   :  { %2749 = vmatpush1.bf16.msra.mxu1 %v6286_v12  ;;  %v7679_v12 = vpack.c.bf16 %v6905_v63, %v6900_v58 }
 0xf04   :  { %2750 = vmatprep.subr.bf16.mxu1 %v7673_v28 }
 0xf07   :  { %2751 = vmatpush1.bf16.msra.mxu1 %v6287_v9  ;;  %v6296_v9 = vld [vmem:[#allocation3 + $0x3d8] sm:$0xff]  }
 0xf08   :  { %2752 = vmatprep.subr.bf16.mxu1 %v7673_v28 }
 0xf0b   :  { %2753 = vmatpush1.bf16.msra.mxu1 %v6288_v41  ;;  %v6297_v41 = vld [vmem:[#allocation3 + $0x3e0] sm:$0xff]  }
 0xf0c   :  { %2754 = vmatprep.subr.bf16.mxu1 %v7673_v28 }
 0xf0f   :  { %2755 = vmatpush1.bf16.msra.mxu1 %v6289_v45 }
 0xf10   :  { %5939 = vmatprep.subr.bf16.mxu1 %v7674_v38 }
 0xf45   :  { %v2349_v33 = vpop.permute.xlu0 %2348 }
 0xf46   :  { %v2352_v55 = vsel %vm1122_vm12, %v2344_v47, %v2349_v33 }
 0xf47   :  { %2596 = vmatmul.mubr.bf16.vlgmr.msra.gmra.mrb[36].mxu0 %v2352_v55 }
 0xf48   :  { %5911 = vmatprep.mubr.msk.bf16.mxu0 %vm6382_vm9, %v7674_v38  ;;  %5904 = vmatpush3.bf16.msra.mxu0 %v6296_v9 }
 0xf49   :  { %5905 = vmatprep.subr.bf16.mxu0 %v7674_v38 }
 0xf4c   :  { %5906 = vmatpush3.bf16.msra.mxu0 %v6297_v41 }
 0xf4d   :  { %5907 = vmatprep.subr.bf16.mxu0 %v7674_v38 }
 0xf50   :  { %5908 = vmatpush3.bf16.msra.mxu0 %v6298_v31  ;;  %v6300_v31 = vld [vmem:[#allocation3 + $0x3f8] sm:$0xff]  }
 0xf51   :  { %5909 = vmatprep.subr.bf16.mxu0 %v7674_v38 }
0x101a   :  { %v2597_v47 = vpop.f32.mrb[36].mxu0 }
0x101b   :  { %v2598_v33 = vadd.f32 %v2597_v47, %v2482_v54  ;;  %v2599_v55 = vpop.f32.mrb[37].mxu0  ;;  %v7680_v54 = vpack.c.bf16 %v6924_v52, %v6920_v46  ;;  %v6290_v52 = vld [vmem:[#allocation3 + $0x448] sm:$0xff]  }
0x101c   :  { %v2600_v0 = vpop.f32.mrb[38].mxu0  ;;  %v6292_v55 = vld [vmem:[#allocation3 + $0x458] sm:$0xff]  }
0x101d   :  { %v2607_v40 = vadd.f32 %v5422_v11, %v2598_v33  ;;  %v2601_v23 = vpop.f32.mrb[39].mxu0  ;;  %v6291_v33 = vld [vmem:[#allocation3 + $0x450] sm:$0xff]   ;;  %v6294_v0 = vld [vmem:[#allocation3 + $0x468] sm:$0xff]  }
0x101e   :  { %v6295_v23 = vld [vmem:[#allocation3 + $0x470] sm:$0xff]  }
0x101f   :  { %v2608_v3 = vmax.f32 %v2607_v40, 0.0 }
0x1021   :  { %v2638_v7 = vrot.slane %v2608_v3, 1  ;;  %v2644_v43 = vpack.c.bf16 %v2608_v3, %v2608_v3  ;;  %v2635_v58 = vrot.slane %v2608_v3, 7 }
0x1023   :  { %2647 = vrot.lane.b32.xlu0 %v2644_v43, %s6376_s28  ;;  %v2640_v28 = vsel %vm79_vm1, %v2638_v7, 0.0  ;;  %v2637_v63 = vsel %vm54_vm0, 0.0, %v2635_v58  ;;  %v7681_v7 = vpack.c.bf16 %v6932_v4, %v6928_v30 }
0x1024   :  { %v2642_v10 = vsel %vm6943_vm3, 0.0, %v2640_v28  ;;  %v2641_v45 = vsel %vm6955_vm5, 0.0, %v2637_v63  ;;  %v6301_v63 = vld [vmem:[#allocation3 + $0x400] sm:$0xff]   ;;  %vm7682_vm5 = vcmask 1043456   ;;  %vm7687_vm3 = vcmp.eq.s32.totalorder %v6635_v36, 15 }
0x1025   :  { %v2645_v15 = vpack.c.bf16 %v2642_v10, %v2642_v10  ;;  %v2643_v46 = vpack.c.bf16 %v2641_v45, %v2641_v45  ;;  %v6299_v10 = vld [vmem:[#allocation3 + $0x3f0] sm:$0xff]   ;;  %v6302_v45 = vld [vmem:[#allocation3 + $0x408] sm:$0xff]   ;;  %vm7683_vm6 = vmmov %vm7682_vm5 }
0x1026   :  { %5910 = vmatpush3.bf16.msra.mxu0 %v6299_v10 }
0x1027   :  { %3117 = vrot.lane.b32.xlu0 %v7679_v12, %s6380_s30  ;;  %5436 = vmatprep.mubr.msk.bf16.mxu1 %vm1122_vm12, %v2645_v15  ;;  %v5423_v15 = vld [vmem:[%s7636_s2 + $0xc] ss:$0 sm:$0xff] }
0x1028   :  { %5915 = vmatprep.subr.bf16.mxu0 %v7674_v38 }
0x102b   :  { %3120 = vrot.lane.b32.xlu0 %v7680_v54, %s6376_s28 }
0x1095   :  { %v2648_v11 = vpop.permute.xlu0 %2647 }
0x1096   :  { %v2651_v47 = vsel %vm1122_vm12, %v2643_v46, %v2648_v11  ;;  %v6303_v46 = vld [vmem:[#allocation3 + $0x410] sm:$0xff]  }
0x1097   :  { %2765 = vmatmul.mubr.bf16.vlgmr.msra.gmra.mrb[36].mxu1 %v2651_v47 }
0x1098   :  { %5940 = vmatpush3.bf16.msra.mxu1 %v6290_v52  ;;  %5951 = vmatprep.mubr.msk.bf16.mxu1 %vm6382_vm9, %v7674_v38 }
0x1099   :  { %5941 = vmatprep.subr.bf16.mxu1 %v7674_v38  ;;  %v3118_v40 = vpop.permute.xlu0 %3117 }
0x109a   :  { %v3124_v43 = vsel %vm861_vm15, %v7681_v7, %v3118_v40 }
0x109c   :  { %5942 = vmatpush3.bf16.msra.mxu1 %v6291_v33 }
0x109d   :  { %5943 = vmatprep.subr.bf16.mxu1 %v7674_v38  ;;  %v3121_v3 = vpop.permute.xlu0 %3120 }
0x109e   :  { %v3126_v28 = vsel %vm1122_vm12, %v3124_v43, %v3121_v3 }
0x10a0   :  { %5944 = vmatpush3.bf16.msra.mxu1 %v6292_v55 }
0x10a1   :  { %5945 = vmatprep.subr.bf16.mxu1 %v7674_v38 }
0x10a4   :  { %5946 = vmatpush3.bf16.msra.mxu1 %v6293_v13 }
0x10a5   :  { %5947 = vmatprep.subr.bf16.mxu1 %v7674_v38 }
0x10a8   :  { %5948 = vmatpush3.bf16.msra.mxu1 %v6294_v0 }
0x10a9   :  { %5949 = vmatprep.subr.bf16.mxu1 %v7674_v38 }
0x10ac   :  { %5950 = vmatpush3.bf16.msra.mxu1 %v6295_v23 }
0x10ad   :  { %5971 = vmatprep.subr.bf16.mxu1 %v7674_v38 }
0x10af   :  { %5952 = vmatmul.mubr.msk.bf16.vlgmr.msra.gmra.mrb[40].mxu1 %vm1165_vm14, %v3126_v28 }
0x10b0   :  { %5983 = vmatprep.mubr.msk.bf16.mxu1 %vm6382_vm9, %v7674_v38 }
0x116a   :  { %v2766_v30 = vpop.f32.mrb[36].mxu1 }
0x116b   :  { %v2767_v4 = vadd.f32 %v5423_v15, %v2766_v30  ;;  %v2768_v12 = vpop.f32.mrb[37].mxu1  ;;  %v6304_v30 = vld [vmem:[%s7638_s4] sm:$0xff]  }
0x116c   :  { %v2769_v54 = vpop.f32.mrb[38].mxu1  ;;  %v6305_v12 = vld [vmem:[%s7637_s3] sm:$0xff]  }
0x116d   :  { %v2772_v9 = vmax.f32 %v2767_v4, 0.0  ;;  %v2770_v41 = vpop.f32.mrb[39].mxu1  ;;  %v6306_v54 = vld [vmem:[#allocation3 + $0x418] sm:$0xff]  }
0x116e   :  { %v6308_v41 = vld [vmem:[#allocation3 + $0x428] sm:$0xff]  }
0x116f   :  { %v2790_v58 = vpack.c.bf16 %v2772_v9, %v2772_v9  ;;  %v6307_v9 = vld [vmem:[#allocation3 + $0x420] sm:$0xff]  }
0x1171   :  { %5912 = vmatmul.mubr.msk.bf16.vlgmr.msra.gmra.mrb[40].mxu0 %vm1122_vm12, %v2790_v58 }
0x1172   :  { %5916 = vmatpush3.bf16.msra.mxu0 %v6300_v31  ;;  %5923 = vmatprep.mubr.msk.bf16.mxu0 %vm6382_vm9, %v7674_v38  ;;  %v6309_v31 = vld [vmem:[#allocation3 + $0x430] sm:$0xff]  }
0x1173   :  { %5917 = vmatprep.subr.bf16.mxu0 %v7674_v38 }
0x1176   :  { %5918 = vmatpush3.bf16.msra.mxu0 %v6301_v63 }
0x1177   :  { %5919 = vmatprep.subr.bf16.mxu0 %v7674_v38 }
0x117a   :  { %5920 = vmatpush3.bf16.msra.mxu0 %v6302_v45 }
0x117b   :  { %5921 = vmatprep.subr.bf16.mxu0 %v7674_v38 }
0x117e   :  { %5922 = vmatpush3.bf16.msra.mxu0 %v6303_v46 }
0x117f   :  { %5927 = vmatprep.subr.bf16.mxu0 %v7674_v38 }
0x1181   :  { %5924 = vmatmul.mubr.msk.bf16.vlgmr.msra.gmra.mrb[44].mxu0 %vm1122_vm12, %v2790_v58  ;;  %v6310_v58 = vld [vmem:[#allocation3 + $0x438] sm:$0xff]  }
0x1182   :  { %v7203_v52 = vpop.f32.mrb[40].mxu1  ;;  %5929 = vmatprep.mubr.msk.bf16.mxu0 %vm6382_vm9, %v7674_v38 }
0x1183   :  { %v5953_v11 = vpop.f32.mrb[41].mxu1 }
0x1184   :  { %v7207_v47 = vpop.f32.mrb[42].mxu1 }
0x1185   :  { %v5954_v33 = vpop.f32.mrb[43].mxu1 }
0x1186   :  { %v6311_v33 = vld [vmem:[#allocation3 + $0x440] sm:$0xff]  }
0x1244   :  { %v2852_v55 = vpop.f32.mrb[40].mxu0 }
0x1245   :  { %v5913_v13 = vpop.f32.mrb[41].mxu0  ;;  %v2926_v28 = vpack.c.bf16 %v2852_v55, %v2852_v55  ;;  %v5451_v55 = vld [vmem:[%s7636_s2 + $0xd] ss:$0 sm:$0xff] }
0x1246   :  { %v2855_v0 = vpop.f32.mrb[42].mxu0 }
0x1247   :  { %v5914_v40 = vpop.f32.mrb[43].mxu0  ;;  %v2989_v4 = vsel %vm7683_vm6, %v2926_v28, 0  ;;  %vm7692_vm6 = vmmov %vm7688_vm11 }
0x1254   :  { %v2916_v23 = vpop.f32.mrb[44].mxu0 }
0x1255   :  { %v2927_v3 = vpack.c.bf16 %v2916_v23, %v2916_v23  ;;  %v5925_v7 = vpop.f32.mrb[45].mxu0 }
0x1256   :  { %v2919_v43 = vpop.f32.mrb[46].mxu0 }
0x1257   :  { %v2937_v10 = vsel %vm7682_vm5, %v2927_v3, 0  ;;  %v5926_v15 = vpop.f32.mrb[47].mxu0  ;;  %vm7691_vm5 = vmmov %vm7687_vm3 }
0x1258   :  { %5928 = vmatpush3.bf16.msra.mxu0 %v2937_v10 }
0x1259   :  { %5933 = vmatprep.subr.bf16.mxu0 %v7674_v38 }
0x125b   :  { %5930 = vmatmul.mubr.msk.bf16.vlgmr.msra.gmra.mrb[48].mxu0 %vm7684_vm8, %v6304_v30  ;;  %vm7693_vm8 = vmmov %vm7689_vm4 }
0x125c   :  { %5934 = vmatpush3.bf16.msra.mxu0 %v2989_v4  ;;  %5935 = vmatprep.mubr.msk.bf16.mxu0 %vm6382_vm9, %v7674_v38 }
0x125d   :  { %5955 = vmatprep.subr.bf16.mxu0 %v7674_v38 }
0x1263   :  { %5936 = vmatmul.mubr.msk.bf16.vlgmr.msra.gmra.mrb[52].mxu0 %vm7685_vm10, %v6305_v12  ;;  %vm7699_vm10 = vcmask 130048  }
0x1264   :  { %5967 = vmatprep.mubr.msk.bf16.mxu0 %vm6382_vm9, %v7674_v38  ;;  %5956 = vmatpush3.bf16.msra.mxu0 %v6306_v54 }
0x1265   :  { %5957 = vmatprep.subr.bf16.mxu0 %v7674_v38 }
0x1268   :  { %5958 = vmatpush3.bf16.msra.mxu0 %v6307_v9 }
0x1269   :  { %5959 = vmatprep.subr.bf16.mxu0 %v7674_v38 }
0x126c   :  { %5960 = vmatpush3.bf16.msra.mxu0 %v6308_v41 }
0x126d   :  { %5961 = vmatprep.subr.bf16.mxu0 %v7674_v38 }
0x1270   :  { %5962 = vmatpush3.bf16.msra.mxu0 %v6309_v31 }
0x1271   :  { %5963 = vmatprep.subr.bf16.mxu0 %v7674_v38 }
0x1274   :  { %5964 = vmatpush3.bf16.msra.mxu0 %v6310_v58 }
0x1275   :  { %5965 = vmatprep.subr.bf16.mxu0 %v7674_v38 }
0x1278   :  { %5966 = vmatpush3.bf16.msra.mxu0 %v6311_v33 }
0x1279   :  { %5987 = vmatprep.subr.bf16.mxu0 %v7674_v38 }
0x132e   :  { %v2973_v63 = vpop.f32.mrb[48].mxu0 }
0x132f   :  { %v5931_v45 = vpop.f32.mrb[49].mxu0 }
0x1330   :  { %v2976_v46 = vpop.f32.mrb[50].mxu0 }
0x1331   :  { %v5932_v11 = vpop.f32.mrb[51].mxu0 }
0x1336   :  { %v3025_v13 = vpop.f32.mrb[52].mxu0 }
0x1337   :  { %v3026_v0 = vadd.f32 %v3025_v13, %v2973_v63  ;;  %v5937_v40 = vpop.f32.mrb[53].mxu0 }
0x1338   :  { %v3028_v23 = vpop.f32.mrb[54].mxu0 }
0x1339   :  { %v3036_v3 = vadd.f32 %v5451_v55, %v3026_v0  ;;  %v3029_v7 = vadd.f32 %v3028_v23, %v2976_v46  ;;  %v5938_v43 = vpop.f32.mrb[55].mxu0  ;;  %v6312_v23 = vld [vmem:[#allocation3 + $0x478] sm:$0xff]  }
0x133a   :  { %5972 = vmatpush3.bf16.msra.mxu1 %v6312_v23  ;;  %v6315_v43 = vld [vmem:[#allocation3 + $0x490] sm:$0xff]  }
0x133b   :  { %v3065_v28 = vrot.slane %v3036_v3, 7  ;;  %v3037_v10 = vadd.f32 %v5451_v55, %v3029_v7  ;;  %v3071_v15 = vrot.slane %v3036_v3, 1  ;;  %5973 = vmatprep.subr.bf16.mxu1 %v7674_v38  ;;  %v6314_v7 = vld [vmem:[#allocation3 + $0x488] sm:$0xff]  }
0x133d   :  { %v3066_v30 = vrot.slane %v3037_v10, 7  ;;  %v3082_v4 = vpack.c.bf16 %v3037_v10, %v3036_v3  ;;  %v3072_v12 = vrot.slane %v3037_v10, 1  ;;  %v3070_v54 = vsel %vm54_vm0, 0.0, %v3065_v28  ;;  %v6313_v3 = vld [vmem:[#allocation3 + $0x480] sm:$0xff]  }
0x133e   :  { %v3077_v45 = vsel %vm7688_vm11, 0.0, %v3070_v54  ;;  %5974 = vmatpush3.bf16.msra.mxu1 %v6313_v3  ;;  %v6317_v10 = vld [vmem:[#allocation3 + $0x4a0] sm:$0xff]  }
0x133f   :  { %3085 = vrot.lane.b32.xlu1 %v3082_v4, %s6380_s30  ;;  %v3073_v9 = vsel %vm79_vm1, %v3071_v15, %v3072_v12  ;;  %v3076_v41 = vsel %vm79_vm1, %v3072_v12, 0.0  ;;  %v3067_v31 = vsel %vm54_vm0, %v3065_v28, %v3066_v30  ;;  %5975 = vmatprep.subr.bf16.mxu1 %v7674_v38  ;;  %v6316_v28 = vld [vmem:[#allocation3 + $0x498] sm:$0xff]   ;;  %v5466_v15 = vld [vmem:[%s7636_s2 + $0xe] ss:$0 sm:$0xff] }
0x1340   :  { %v3079_v58 = vsel %vm7686_vm13, 0.0, %v3073_v9  ;;  %v3080_v63 = vsel %vm7687_vm3, 0.0, %v3076_v41  ;;  %v3078_v46 = vsel %vm7689_vm4, 0.0, %v3067_v31  ;;  %v6318_v9 = vld [vmem:[#allocation3 + $0x4e0] sm:$0xff]   ;;  %vm7700_vm13 = vcmask 392192   ;;  %vm7704_vm3 = vmmov %vm7699_vm10 }
0x1341   :  { %v3083_v11 = vpack.c.bf16 %v3080_v63, %v3079_v58  ;;  %v3081_v33 = vpack.c.bf16 %v3078_v46, %v3077_v45  ;;  %vm7706_vm11 = vmmov %vm7704_vm3 }
0x1342   :  { %5976 = vmatpush3.bf16.msra.mxu1 %v6314_v7  ;;  %vm7707_vm4 = vmmov %vm7704_vm3 }
0x1343   :  { %3088 = vrot.lane.b32.xlu1 %v3083_v11, %s6376_s28  ;;  %5977 = vmatprep.subr.bf16.mxu1 %v7674_v38 }
0x1346   :  { %5978 = vmatpush3.bf16.msra.mxu1 %v6315_v43 }
0x1347   :  { %5979 = vmatprep.subr.bf16.mxu1 %v7674_v38 }
0x134a   :  { %5980 = vmatpush3.bf16.msra.mxu1 %v6316_v28 }
0x134b   :  { %5981 = vmatprep.subr.bf16.mxu1 %v7674_v38 }
0x134e   :  { %5982 = vmatpush3.bf16.msra.mxu1 %v6317_v10 }
0x134f   :  { %6015 = vmatprep.subr.bf16.mxu1 %v6318_v9 }
0x13b1   :  { %v3086_v55 = vpop.permute.xlu1 %3085 }
0x13b2   :  { %v3092_v13 = vsel %vm861_vm15, %v3081_v33, %v3086_v55 }
0x13b5   :  { %v3089_v0 = vpop.permute.xlu1 %3088 }
0x13b6   :  { %v3094_v40 = vsel %vm1122_vm12, %v3092_v13, %v3089_v0 }
0x13b7   :  { %5968 = vmatmul.mubr.msk.bf16.vlgmr.msra.gmra.mrb[56].mxu0 %vm1165_vm14, %v3094_v40 }
0x13b8   :  { %5991 = vmatprep.mubr.msk.bf16.mxu0 %vm6382_vm9, %v7674_v38 }
0x148a   :  { %v3278_v30 = vpop.f32.mrb[56].mxu0 }
0x148b   :  { %v3279_v4 = vadd.f32 %v3278_v30, %v7203_v52  ;;  %v5969_v12 = vpop.f32.mrb[57].mxu0  ;;  %v7694_v30 = vpack.c.bf16 %v6786_v22, %v6775_v8 }
0x148c   :  { %v3281_v54 = vpop.f32.mrb[58].mxu0  ;;  %v7696_v12 = vpack.c.bf16 %v6779_v18, %v6773_v39  ;;  %v7698_v39 = vpack.c.bf16 %v6823_v29, %v6808_v6  ;;  %v6321_v29 = vld [vmem:[#allocation3 + $0x4a8] sm:$0xff]  }
0x148d   :  { %v3289_v41 = vadd.f32 %v5466_v15, %v3279_v4  ;;  %v3282_v31 = vadd.f32 %v3281_v54, %v7207_v47  ;;  %v5970_v58 = vpop.f32.mrb[59].mxu0  ;;  %v7695_v4 = vpack.c.bf16 %v6827_v48, %v6815_v44  ;;  %v7697_v54 = vpack.c.bf16 %v6820_v61, %v6803_v50  ;;  %v6320_v50 = vld [vmem:[#allocation3 + $0x4f0] sm:$0xff]   ;;  %5988 = vmatpush3.bf16.msra.mxu0 %v6321_v29 }
0x148e   :  { %v6319_v58 = vld [vmem:[#allocation3 + $0x4e8] sm:$0xff]   ;;  %5989 = vmatprep.subr.bf16.mxu0 %v7674_v38 }
0x148f   :  { %v3291_v63 = vmax.f32 %v3289_v41, 0.0  ;;  %v3290_v45 = vadd.f32 %v5466_v15, %v3282_v31 }
0x1491   :  { %v3308_v46 = vrot.slane %v3291_v63, 7  ;;  %v3292_v11 = vmax.f32 %v3290_v45, 0.0  ;;  %v3314_v33 = vrot.slane %v3291_v63, 1 }
0x1493   :  { %v3309_v55 = vrot.slane %v3292_v11, 7  ;;  %v3325_v13 = vpack.c.bf16 %v3292_v11, %v3291_v63  ;;  %v3315_v0 = vrot.slane %v3292_v11, 1  ;;  %v3313_v40 = vsel %vm54_vm0, 0.0, %v3308_v46  ;;  %v6322_v11 = vld [vmem:[#allocation3 + $0x4b0] sm:$0xff]  }
0x1494   :  { %v3320_v43 = vsel %vm7692_vm6, 0.0, %v3313_v40  ;;  %5990 = vmatpush3.bf16.msra.mxu0 %v6322_v11 }
0x1495   :  { %3328 = vrot.lane.b32.xlu1 %v3325_v13, %s6380_s30  ;;  %v3316_v52 = vsel %vm79_vm1, %v3314_v33, %v3315_v0  ;;  %v3319_v23 = vsel %vm79_vm1, %v3315_v0, 0.0  ;;  %v3310_v47 = vsel %vm54_vm0, %v3308_v46, %v3309_v55  ;;  %5995 = vmatprep.subr.bf16.mxu0 %v7674_v38  ;;  %v5467_v33 = vld [vmem:[%s7636_s2 + $0xf] ss:$0 sm:$0xff] }
0x1496   :  { %v3322_v3 = vsel %vm7690_vm2, 0.0, %v3316_v52  ;;  %v3323_v7 = vsel %vm7691_vm5, 0.0, %v3319_v23  ;;  %v3321_v28 = vsel %vm7693_vm8, 0.0, %v3310_v47  ;;  %v6323_v47 = vld [vmem:[#allocation3 + $0x4b8] sm:$0xff]   ;;  %vm7708_vm2 = vmmov %vm7692_vm6  ;;  %vm7709_vm5 = vcmp.eq.s32.totalorder %v6432_v2, 31 }
0x1497   :  { %v3326_v10 = vpack.c.bf16 %v3323_v7, %v3322_v3  ;;  %v3324_v15 = vpack.c.bf16 %v3321_v28, %v3320_v43  ;;  %v6324_v7 = vld [vmem:[#allocation3 + $0x4c0] sm:$0xff]   ;;  %vm7710_vm6 = vcmp.eq.s32.totalorder %v6635_v36, 15  ;;  %vm7711_vm8 = vcmp.eq.s32.totalorder %v6638_v37, 16 }
0x1498   :  { %v6325_v43 = vld [vmem:[%s7638_s4] sm:$0xff]   ;;  %v7721_v36 = vpack.c.bf16 %v6582_v5, %v6571_v60  ;;  %v7722_v37 = vpack.c.bf16 %v6662_v56, %v6599_v19  ;;  %v7725_v60 = vpack.c.bf16 %v6647_v42, %v6625_v32  ;;  %v7727_v5 = vpack.c.bf16 %v6684_v17, %v6681_v16  ;;  %v6337_v16 = vld [vmem:[#allocation3 + $0x530] sm:$0xff]  }
0x1499   :  { %3811 = vrot.lane.b32.xlu1 %v7694_v30, %s6379_s24  ;;  %3331 = vrot.lane.b32.xlu0 %v3326_v10, %s6376_s28 }
0x149d   :  { %3817 = vrot.lane.b32.xlu1 %v7695_v4, %s6380_s30  ;;  %3813 = vrot.lane.b32.xlu0 %v7696_v12, %s6379_s24 }
0x14a1   :  { %3819 = vrot.lane.b32.xlu0 %v7697_v54, %s6380_s30 }
0x1507   :  { %v3329_v41 = vpop.permute.xlu1 %3328 }
0x1508   :  { %v3335_v8 = vsel %vm861_vm15, %v3324_v15, %v3329_v41 }
0x150b   :  { %v3812_v22 = vpop.permute.xlu1 %3811  ;;  %v3332_v31 = vpop.permute.xlu0 %3331 }
0x150c   :  { %v3337_v63 = vsel %vm1122_vm12, %v3335_v8, %v3332_v31  ;;  %v3823_v18 = vsel %vm7699_vm10, %v7698_v39, %v3812_v22  ;;  %vm7702_vm12 = vmmov %vm7699_vm10  ;;  %v6327_v31 = vld [vmem:[%s7637_s3] sm:$0xff]   ;;  %v6330_v39 = vld [vmem:[#allocation3 + $0x4d0] sm:$0xff]  }
0x150d   :  { %5984 = vmatmul.mubr.msk.bf16.vlgmr.msra.gmra.mrb[44].mxu1 %vm1165_vm14, %v3337_v63  ;;  %vm7703_vm14 = vmmov %vm7700_vm13  ;;  %v6329_v63 = vld [vmem:[#allocation3 + $0x4c8] sm:$0xff]  }
0x150e   :  { %6016 = vmatpush3.bf16.msra.mxu1 %v6318_v9  ;;  %v7701_v9 = vpack.c.bf16 %v6811_v49, %v6842_v51  ;;  %vm7712_vm10 = vmmov %vm7704_vm3 }
0x150f   :  { %v3818_v44 = vpop.permute.xlu1 %3817  ;;  %v3814_v48 = vpop.permute.xlu0 %3813  ;;  %6017 = vmatprep.subr.bf16.mxu1 %v6319_v58 }
0x1510   :  { %v3828_v61 = vsel %vm861_vm15, %v3823_v18, %v3818_v44  ;;  %v3826_v46 = vsel %vm7702_vm12, %v7701_v9, %v3814_v48  ;;  %v6331_v18 = vld [vmem:[#allocation3 + $0x4d8] sm:$0xff]   ;;  %v5489_v44 = vld [vmem:[%s7636_s2 + $0x10] ss:$0 sm:$0xff]  ;;  %vm7714_vm12 = vmmov %vm7703_vm14 }
0x1511   :  { %6021 = vmatprep.mubr.msk.bf16.mxu1 %vm7700_vm13, %v3828_v61  ;;  %vm7713_vm13 = vmmov %vm7704_vm3 }
0x1512   :  { %6018 = vmatpush3.bf16.msra.mxu1 %v6319_v58  ;;  %v6328_v58 = vld [vmem:[%s7637_s3 + $0x8] sm:$0xff]  }
0x1513   :  { %6019 = vmatprep.subr.bf16.mxu1 %v6320_v50  ;;  %v3820_v45 = vpop.permute.xlu0 %3819 }
0x1514   :  { %v3830_v6 = vsel %vm861_vm15, %v3826_v46, %v3820_v45 }
0x1516   :  { %6020 = vmatpush3.bf16.msra.mxu1 %v6320_v50 }
0x1517   :  { %6025 = vmatprep.subr.bf16.mxu1 %v6329_v63 }
0x1519   :  { %6022 = vmatmul.mubr.msk.bf16.vlgmr.msra.gmra.mrb[48].mxu1 %vm7703_vm14, %v3830_v6  ;;  %vm7715_vm14 = vmmov %vm7714_vm12 }
0x151a   :  { %6026 = vmatpush3.bf16.msra.mxu1 %v6329_v63 }
0x151b   :  { %6027 = vmatprep.subr.bf16.mxu1 %v6330_v39 }
0x151e   :  { %6028 = vmatpush3.bf16.msra.mxu1 %v6330_v39 }
0x151f   :  { %6029 = vmatprep.subr.bf16.mxu1 %v6331_v18 }
0x1522   :  { %6030 = vmatpush3.bf16.msra.mxu1 %v6331_v18 }
0x15e0   :  { %v3414_v55 = vpop.f32.mrb[44].mxu1 }
0x15e1   :  { %v3415_v49 = vadd.f32 %v5467_v33, %v3414_v55  ;;  %v5985_v51 = vpop.f32.mrb[45].mxu1 }
0x15e2   :  { %v3417_v13 = vpop.f32.mrb[46].mxu1 }
0x15e3   :  { %v3418_v0 = vadd.f32 %v5467_v33, %v3417_v13  ;;  %v5986_v40 = vpop.f32.mrb[47].mxu1  ;;  %v3421_v52 = vmax.f32 %v3415_v49, 0.0 }
0x15e5   :  { %v3422_v23 = vmax.f32 %v3418_v0, 0.0 }
0x15e7   :  { %v3432_v3 = vpack.c.bf16 %v3422_v23, %v3421_v52 }
0x15e9   :  { %5992 = vmatmul.mubr.msk.bf16.vlgmr.msra.gmra.mrb[60].mxu0 %vm861_vm15, %v3432_v3 }
0x15ea   :  { %5996 = vmatpush3.bf16.msra.mxu0 %v6323_v47  ;;  %5999 = vmatprep.mubr.msk.bf16.mxu0 %vm6382_vm9, %v7674_v38  ;;  %vm7705_vm9 = vmmov %vm7704_vm3 }
0x15eb   :  { %5997 = vmatprep.subr.bf16.mxu0 %v7674_v38  ;;  %v6326_v38 = vld [vmem:[%s7638_s4 + $0x8] sm:$0xff]  }
0x15ee   :  { %5998 = vmatpush3.bf16.msra.mxu0 %v6324_v7 }
0x15f1   :  { %6000 = vmatmul.mubr.msk.bf16.vlgmr.msra.gmra.mrb[64].mxu0 %vm861_vm15, %v3432_v3 }
0x15f2   :  { %6005 = vmatprep.mubr.msk.bf16.mxu0 %vm7704_vm3, %v6325_v43  ;;  %vm7716_vm3 = vmmov %vm7708_vm2 }
0x16bc   :  { %v3482_v28 = vpop.f32.mrb[60].mxu0 }
0x16bd   :  { %v5993_v10 = vpop.f32.mrb[61].mxu0 }
0x16be   :  { %v3485_v15 = vpop.f32.mrb[62].mxu0 }
0x16bf   :  { %v3550_v30 = vpack.c.bf16 %v3485_v15, %v3482_v28  ;;  %v5994_v4 = vpop.f32.mrb[63].mxu0 }
0x16c4   :  { %v3535_v12 = vpop.f32.mrb[64].mxu0 }
0x16c5   :  { %v6001_v54 = vpop.f32.mrb[65].mxu0 }
0x16c6   :  { %v3538_v41 = vpop.f32.mrb[66].mxu0 }
0x16c7   :  { %v3551_v8 = vpack.c.bf16 %v3538_v41, %v3535_v12  ;;  %v6002_v22 = vpop.f32.mrb[67].mxu0 }
0x16c9   :  { %6003 = vmatprep.subr.bf16.mxu0 %v3551_v8 }
0x16ca   :  { %6004 = vmatpush3.bf16.msra.mxu0 %v3551_v8 }
0x16cb   :  { %6009 = vmatprep.subr.bf16.mxu0 %v3550_v30 }
0x16cd   :  { %6006 = vmatmul.mubr.msk.bf16.vlgmr.msra.gmra.mrb[68].mxu0 %vm7705_vm9, %v6326_v38  ;;  %vm7717_vm9 = vmmov %vm7709_vm5 }
0x16ce   :  { %6010 = vmatpush3.bf16.msra.mxu0 %v3550_v30  ;;  %6011 = vmatprep.mubr.msk.bf16.mxu0 %vm7706_vm11, %v6327_v31  ;;  %vm7718_vm11 = vmmov %vm7710_vm6 }
0x16d9   :  { %6012 = vmatmul.mubr.msk.bf16.vlgmr.msra.gmra.mrb[68].mxu0 %vm7707_vm4, %v6328_v58  ;;  %vm7719_vm4 = vmmov %vm7711_vm8 }
0x17ac   :  { %v6013_v48 = vpop.f32.mrb[68].mxu0 }
0x17ad   :  { %v3688_v50 = vadd.f32 %v6013_v48, %v5489_v44  ;;  %v3667_v61 = vpop.f32.mrb[69].mxu0 }
0x17ae   :  { %v3686_v45 = vadd.f32 %v5489_v44, %v3667_v61  ;;  %v6014_v9 = vpop.f32.mrb[70].mxu0 }
0x17af   :  { %v3689_v46 = vadd.f32 %v6014_v9, %v5489_v44  ;;  %v3670_v6 = vpop.f32.mrb[71].mxu0  ;;  %v3710_v29 = vrot.slane %v3688_v50, 7  ;;  %v3722_v11 = vrot.slane %v3688_v50, 1  ;;  %v6333_v9 = vld [vmem:[#allocation3 + $0x500] sm:$0xff]  }
0x17b0   :  { %v3707_v33 = vrot.slane %v3686_v45, 7  ;;  %v3687_v55 = vadd.f32 %v5489_v44, %v3670_v6  ;;  %v3719_v49 = vrot.slane %v3686_v45, 1  ;;  %v5500_v6 = vld [vmem:[%s7636_s2 + $0x11] ss:$0 sm:$0xff] }
0x17b1   :  { %v3712_v51 = vrot.slane %v3689_v46, 7  ;;  %v3724_v13 = vrot.slane %v3689_v46, 1  ;;  %v3742_v0 = vpack.c.bf16 %v3689_v46, %v3688_v50  ;;  %v6334_v46 = vld [vmem:[#allocation3 + $0x508] sm:$0xff]  }
0x17b2   :  { %v3718_v40 = vsel %vm54_vm0, 0.0, %v3707_v33  ;;  %v3708_v52 = vrot.slane %v3687_v55, 7  ;;  %v3720_v23 = vrot.slane %v3687_v55, 1  ;;  %v3741_v47 = vpack.c.bf16 %v3687_v55, %v3686_v45  ;;  %v6332_v45 = vld [vmem:[#allocation3 + $0x4f8] sm:$0xff]  }
0x17b3   :  { %3749 = vrot.lane.b32.xlu0 %v3742_v0, %s6379_s24  ;;  %v3725_v3 = vsel %vm79_vm1, %v3722_v11, %v3724_v13  ;;  %v3730_v7 = vsel %vm79_vm1, %v3724_v13, 0.0  ;;  %v3713_v43 = vsel %vm54_vm0, %v3710_v29, %v3712_v51  ;;  %v3731_v28 = vsel %vm7708_vm2, 0.0, %v3718_v40  ;;  %6035 = vmatprep.subr.bf16.mxu0 %v6332_v45  ;;  %vm7728_vm2 = vmmov %vm7712_vm10 }
0x17b4   :  { %3747 = vrot.lane.b32.xlu1 %v3741_v47, %s6379_s24  ;;  %v3738_v10 = vsel %vm7709_vm5, 0.0, %v3730_v7  ;;  %v3721_v15 = vsel %vm79_vm1, %v3719_v49, %v3720_v23  ;;  %v3723_v30 = vsel %vm79_vm1, %v3720_v23, %v3722_v11  ;;  %v3711_v4 = vsel %vm54_vm0, %v3708_v52, %v3710_v29  ;;  %6036 = vmatpush3.bf16.msra.mxu0 %v6332_v45  ;;  %vm7729_vm5 = vmmov %vm7728_vm2 }
0x17b5   :  { %v3744_v12 = vpack.c.bf16 %v3738_v10, %v3725_v3  ;;  %v3736_v54 = vsel %vm7710_vm6, 0.0, %v3723_v30  ;;  %v3733_v41 = vsel %vm7711_vm8, 0.0, %v3711_v4  ;;  %v3709_v8 = vsel %vm54_vm0, %v3707_v33, %v3708_v52  ;;  %6037 = vmatprep.subr.bf16.mxu0 %v6333_v9  ;;  %vm7730_vm6 = vmmov %vm7714_vm12 }
0x17b6   :  { %v3743_v22 = vpack.c.bf16 %v3736_v54, %v3721_v15  ;;  %v3740_v38 = vpack.c.bf16 %v3713_v43, %v3733_v41  ;;  %v3739_v31 = vpack.c.bf16 %v3709_v8, %v3731_v28  ;;  %vm7731_vm8 = vmmov %vm7730_vm6 }
0x17b7   :  { %3755 = vrot.lane.b32.xlu0 %v3744_v12, %s6380_s30 }
0x17b8   :  { %3753 = vrot.lane.b32.xlu1 %v3743_v22, %s6380_s30  ;;  %6038 = vmatpush3.bf16.msra.mxu0 %v6333_v9 }
0x17b9   :  { %6039 = vmatprep.subr.bf16.mxu0 %v6334_v46 }
0x17bc   :  { %6040 = vmatpush3.bf16.msra.mxu0 %v6334_v46 }
0x1825   :  { %v3750_v58 = vpop.permute.xlu0 %3749 }
0x1826   :  { %v3748_v63 = vpop.permute.xlu1 %3747  ;;  %v3762_v48 = vsel %vm7713_vm13, %v3740_v38, %v3750_v58  ;;  %vm7734_vm13 = vmmov %vm7728_vm2 }
0x1827   :  { %v3759_v18 = vsel %vm7712_vm10, %v3739_v31, %v3748_v63  ;;  %vm7733_vm10 = vcmask 64512  }
0x1829   :  { %v3756_v39 = vpop.permute.xlu0 %3755 }
0x182a   :  { %v3754_v44 = vpop.permute.xlu1 %3753  ;;  %v3766_v61 = vsel %vm861_vm15, %v3762_v48, %v3756_v39 }
0x182b   :  { %v3764_v50 = vsel %vm861_vm15, %v3759_v18, %v3754_v44 }
0x182c   :  { %6031 = vmatprep.mubr.msk.bf16.mxu1 %vm7714_vm12, %v3764_v50  ;;  %vm7735_vm12 = vmmov %vm7728_vm2 }
0x182d   :  { %6032 = vmatmul.mubr.msk.bf16.vlgmr.msra.gmra.mrb[48].mxu1 %vm7715_vm14, %v3766_v61  ;;  %vm7736_vm14 = vmmov %vm7728_vm2 }
0x1900   :  { %v6033_v29 = vpop.f32.mrb[48].mxu1 }
0x1901   :  { %v3979_v11 = vadd.f32 %v6033_v29, %v5500_v6  ;;  %v3958_v33 = vpop.f32.mrb[49].mxu1  ;;  %v7723_v29 = vpack.c.bf16 %v6614_v25, %v6611_v24 }
0x1902   :  { %v3977_v55 = vadd.f32 %v5500_v6, %v3958_v33  ;;  %v6034_v49 = vpop.f32.mrb[50].mxu1 }
0x1903   :  { %v3983_v51 = vmax.f32 %v3979_v11, 0.0  ;;  %v3980_v13 = vadd.f32 %v6034_v49, %v5500_v6  ;;  %v3961_v0 = vpop.f32.mrb[51].mxu1  ;;  %v5501_v11 = vld [vmem:[%s7636_s2 + $0x12] ss:$0 sm:$0xff] }
0x1904   :  { %v3981_v40 = vmax.f32 %v3977_v55, 0.0  ;;  %v3978_v52 = vadd.f32 %v5500_v6, %v3961_v0  ;;  %v7720_v6 = vpack.c.bf16 %v6575_v62, %v6569_v57  ;;  %v7724_v57 = vpack.c.bf16 %v6632_v35, %v6619_v27 }
0x1905   :  { %v3984_v23 = vmax.f32 %v3980_v13, 0.0  ;;  %v3999_v47 = vrot.slane %v3983_v51, 7  ;;  %v4011_v3 = vrot.slane %v3983_v51, 1  ;;  %v7726_v62 = vpack.c.bf16 %v6678_v14, %v6667_v59  ;;  %v6335_v59 = vld [vmem:[#allocation3 + $0x510] sm:$0xff]   ;;  %v6336_v14 = vld [vmem:[#allocation3 + $0x518] sm:$0xff]  }
0x1906   :  { %v3996_v7 = vrot.slane %v3981_v40, 7  ;;  %v3982_v43 = vmax.f32 %v3978_v52, 0.0  ;;  %v4008_v28 = vrot.slane %v3981_v40, 1  ;;  %6045 = vmatprep.subr.bf16.mxu1 %v6335_v59  ;;  %6051 = vmatprep.subr.bf16.mxu0 %v6336_v14 }
0x1907   :  { %v4001_v10 = vrot.slane %v3984_v23, 7  ;;  %v4013_v15 = vrot.slane %v3984_v23, 1  ;;  %v4031_v30 = vpack.c.bf16 %v3984_v23, %v3983_v51  ;;  %6046 = vmatpush3.bf16.msra.mxu1 %v6335_v59  ;;  %v6346_v59 = vld [vmem:[%s7637_s3 + $0x18] sm:$0xff]  }
0x1908   :  { %v4007_v4 = vsel %vm54_vm0, 0.0, %v3996_v7  ;;  %v3997_v12 = vrot.slane %v3982_v43, 7  ;;  %v4009_v54 = vrot.slane %v3982_v43, 1  ;;  %v4030_v41 = vpack.c.bf16 %v3982_v43, %v3981_v40 }
0x1909   :  { %4038 = vrot.lane.b32.xlu0 %v4031_v30, %s6379_s24  ;;  %v4014_v8 = vsel %vm79_vm1, %v4011_v3, %v4013_v15  ;;  %v4019_v22 = vsel %vm79_vm1, %v4013_v15, 0.0  ;;  %v4002_v38 = vsel %vm54_vm0, %v3999_v47, %v4001_v10  ;;  %v4020_v31 = vsel %vm7716_vm3, 0.0, %v4007_v4  ;;  %v6338_v30 = vld [vmem:[#allocation3 + $0x538] ss:$0 sps:$4 sm:$0xff]   ;;  %vm7737_vm3 = vmmov %vm7728_vm2 }
0x190a   :  { %4036 = vrot.lane.b32.xlu1 %v4030_v41, %s6379_s24  ;;  %v4027_v58 = vsel %vm7717_vm9, 0.0, %v4019_v22  ;;  %v4010_v63 = vsel %vm79_vm1, %v4008_v28, %v4009_v54  ;;  %v4012_v39 = vsel %vm79_vm1, %v4009_v54, %v4011_v3  ;;  %v4000_v18 = vsel %vm54_vm0, %v3997_v12, %v3999_v47  ;;  %vm7738_vm9 = vmmov %vm7728_vm2 }
0x190b   :  { %v4033_v44 = vpack.c.bf16 %v4027_v58, %v4014_v8  ;;  %v4025_v48 = vsel %vm7718_vm11, 0.0, %v4012_v39  ;;  %v4022_v50 = vsel %vm7719_vm4, 0.0, %v4000_v18  ;;  %v3998_v61 = vsel %vm54_vm0, %v3996_v7, %v3997_v12 }
0x190c   :  { %v4032_v45 = vpack.c.bf16 %v4025_v48, %v4010_v63  ;;  %v4029_v9 = vpack.c.bf16 %v4002_v38, %v4022_v50  ;;  %v4028_v46 = vpack.c.bf16 %v3998_v61, %v4020_v31  ;;  %v7732_v4 = vpack.c.bf16 %v6628_v34, %v6608_v21  ;;  %v7745_v63 = vld [vmem:[#allocation10_spill] sm:$0xff]  ;;  %v7751_v50 = vld [vmem:[#allocation9_spill] sm:$0xff]  ;;  %v7752_v61 = vld [vmem:[#allocation8_spill] sm:$0xff] }
0x190d   :  { %4044 = vrot.lane.b32.xlu0 %v4033_v44, %s6380_s30  ;;  %vm7739_vm11 = vcmask 195584   ;;  %vm7740_vm4 = vcmask 1043456   ;;  %v7742_v22 = vpack.c.bf16 %v6604_v20, %v6617_v26  ;;  %v7746_v39 = vpack.c.bf16 %v6706_v53, %v7745_v63  ;;  %v6339_v53 = vld [vmem:[%s7638_s4] sm:$0xff]  }
0x190e   :  { %4042 = vrot.lane.b32.xlu1 %v4032_v45, %s6380_s30  ;;  %v7753_v20 = vpack.c.bf16 %v7751_v50, %v7752_v61 }
0x1911   :  { %4709 = vrot.lane.b32.xlu0 %v7720_v6, %s6378_s0 }
0x1912   :  { %4707 = vrot.lane.b32.xlu1 %v7721_v36, %s6378_s0 }
0x1915   :  { %4721 = vrot.lane.b32.xlu0 %v7722_v37, %s6379_s24 }
0x1916   :  { %4719 = vrot.lane.b32.xlu1 %v7723_v29, %s6379_s24 }
0x1919   :  { %4713 = vrot.lane.b32.xlu0 %v7724_v57, %s6378_s0 }
0x191a   :  { %4711 = vrot.lane.b32.xlu1 %v7725_v60, %s6378_s0 }
0x191d   :  { %4725 = vrot.lane.b32.xlu0 %v7726_v62, %s6379_s24 }
0x191e   :  { %4723 = vrot.lane.b32.xlu1 %v7727_v5, %s6379_s24 }
0x197b   :  { %v4039_v19 = vpop.permute.xlu0 %4038 }
0x197c   :  { %v4037_v24 = vpop.permute.xlu1 %4036  ;;  %v4051_v56 = vsel %vm7729_vm5, %v4029_v9, %v4039_v19  ;;  %vm7743_vm5 = vmmov %vm7733_vm10 }
0x197d   :  { %v4048_v27 = vsel %vm7728_vm2, %v4028_v46, %v4037_v24  ;;  %vm7741_vm2 = vmmov %vm7740_vm4 }
0x197e   :  { %v4765_v21 = vsel %vm7741_vm2, %v6338_v30, 0 }
0x197f   :  { %v4045_v25 = vpop.permute.xlu0 %4044 }
0x1980   :  { %v4043_v35 = vpop.permute.xlu1 %4042  ;;  %v4055_v42 = vsel %vm861_vm15, %v4051_v56, %v4045_v25  ;;  %v6340_v25 = vld [vmem:[%s7638_s4 + $0x8] sm:$0xff]   ;;  %v6343_v56 = vld [vmem:[%s7637_s3] sm:$0xff]  }
0x1981   :  { %v4053_v32 = vsel %vm861_vm15, %v4048_v27, %v4043_v35  ;;  %v6341_v27 = vld [vmem:[%s7638_s4 + $0x10] sm:$0xff]   ;;  %v6342_v35 = vld [vmem:[%s7638_s4 + $0x18] sm:$0xff]  }
0x1982   :  { %6041 = vmatprep.mubr.msk.bf16.mxu0 %vm7730_vm6, %v4053_v32  ;;  %vm7744_vm6 = vmmov %vm7737_vm3  ;;  %v6344_v32 = vld [vmem:[%s7637_s3 + $0x8] sm:$0xff]  }
0x1983   :  { %6042 = vmatmul.mubr.msk.bf16.vlgmr.msra.gmra.mrb[72].mxu0 %vm7731_vm8, %v4055_v42  ;;  %v4710_v47 = vpop.permute.xlu0 %4709  ;;  %vm7747_vm8 = vmmov %vm7743_vm5  ;;  %v6345_v42 = vld [vmem:[%s7637_s3 + $0x10] sm:$0xff]  }
0x1984   :  { %6052 = vmatpush3.bf16.msra.mxu0 %v6336_v14  ;;  %v4708_v17 = vpop.permute.xlu1 %4707  ;;  %v4732_v38 = vsel %vm7743_vm5, %v7742_v22, %v4710_v47  ;;  %v6347_v14 = vld [vmem:[#allocation3 + $0x520] sm:$0xff]  }
0x1985   :  { %6081 = vmatprep.subr.bf16.mxu0 %v6337_v16  ;;  %v4729_v12 = vsel %vm7733_vm10, %v7732_v4, %v4708_v17  ;;  %vm7748_vm10 = vmmov %vm7737_vm3 }
0x1987   :  { %v4722_v41 = vpop.permute.xlu0 %4721 }
0x1988   :  { %v4720_v52 = vpop.permute.xlu1 %4719  ;;  %v4742_v58 = vsel %vm7744_vm6, %v4732_v38, %v4722_v41 }
0x1989   :  { %v4740_v8 = vsel %vm7736_vm14, %v4729_v12, %v4720_v52  ;;  %vm7754_vm14 = vmmov %vm7743_vm5 }
0x198b   :  { %v4714_v31 = vpop.permute.xlu0 %4713 }
0x198c   :  { %v4712_v54 = vpop.permute.xlu1 %4711  ;;  %v4738_v26 = vsel %vm7754_vm14, %v7753_v20, %v4714_v31  ;;  %vm7767_vm14 = vmmov %vm7737_vm3 }
0x198d   :  { %v4735_v18 = vsel %vm7747_vm8, %v7746_v39, %v4712_v54 }
0x198f   :  { %v4726_v48 = vpop.permute.xlu0 %4725 }
0x1990   :  { %v4724_v34 = vpop.permute.xlu1 %4723  ;;  %v4746_v45 = vsel %vm7737_vm3, %v4738_v26, %v4726_v48 }
0x1991   :  { %v4744_v44 = vsel %vm7748_vm10, %v4735_v18, %v4724_v34  ;;  %vm7764_vm10 = vmmov %vm7737_vm3 }
0x1a56   :  { %v6043_v33 = vpop.f32.mrb[72].mxu0 }
0x1a57   :  { %v4125_v55 = vadd.f32 %v6043_v33, %v5501_v11  ;;  %v4116_v49 = vpop.f32.mrb[73].mxu0 }
0x1a58   :  { %v4117_v51 = vadd.f32 %v5501_v11, %v4116_v49  ;;  %v6044_v13 = vpop.f32.mrb[74].mxu0 }
0x1a59   :  { %v4128_v0 = vadd.f32 %v6044_v13, %v5501_v11  ;;  %v4119_v40 = vpop.f32.mrb[75].mxu0  ;;  %v4133_v3 = vmax.f32 %v4125_v55, 0.0 }
0x1a5a   :  { %v4120_v23 = vadd.f32 %v5501_v11, %v4119_v40  ;;  %v4131_v43 = vmax.f32 %v4117_v51, 0.0  ;;  %v6348_v11 = vld [vmem:[#allocation3 + $0x528] ss:$0 sps:$4 sm:$0xff]  }
0x1a5b   :  { %v4134_v7 = vmax.f32 %v4128_v0, 0.0 }
0x1a5c   :  { %v4132_v28 = vmax.f32 %v4120_v23, 0.0 }
0x1a5d   :  { %v4141_v10 = vpack.c.bf16 %v4134_v7, %v4133_v3 }
0x1a5e   :  { %v4140_v15 = vpack.c.bf16 %v4132_v28, %v4131_v43 }
0x1a60   :  { %6047 = vmatprep.mubr.msk.bf16.mxu1 %vm7734_vm13, %v4140_v15  ;;  %6053 = vmatprep.mubr.msk.bf16.mxu0 %vm7735_vm12, %v4140_v15  ;;  %vm7749_vm13 = vmmov %vm7739_vm11 }
0x1a61   :  { %6048 = vmatmul.mubr.msk.bf16.vlgmr.msra.gmra.mrb[52].mxu1 %vm7737_vm3, %v4141_v10  ;;  %6054 = vmatmul.mubr.msk.bf16.vlgmr.msra.gmra.mrb[76].mxu0 %vm7738_vm9, %v4141_v10  ;;  %vm7750_vm12 = vmmov %vm7739_vm11 }
0x1a62   :  { %6082 = vmatpush3.bf16.msra.mxu0 %v6337_v16  ;;  %6085 = vmatprep.mubr.msk.bf16.mxu0 %vm7739_vm11, %v4740_v8  ;;  %vm7755_vm9 = vmmov %vm7739_vm11  ;;  %v5529_v16 = vld [vmem:[%s7636_s2 + $0x13] ss:$0 sm:$0xff] }
0x1a63   :  { %6154 = vmatprep.subr.msk.bf16.mxu0 %vm7740_vm4, %v6338_v30  ;;  %6061 = vmatprep.mubr.msk.bf16.mxu1 %vm861_vm15, %v6339_v53  ;;  %vm7756_vm11 = vmmov %vm7741_vm2 }
0x1a64   :  { %vm7757_vm4 = vmmov %vm7741_vm2  ;;  %vm7759_vm2 = vcmp.eq.s32.totalorder %v6432_v2, 31 }
0x1a65   :  { %v4850_v40 = vsel %vm7757_vm4, %v6348_v11, 0  ;;  %vm7768_vm3 = vmmov %vm7747_vm8 }
0x1a66   :  { %6084 = vmatpush3.bf16.msra.mxu0 %v4765_v21  ;;  %vm7770_vm4 = vmmov %vm7755_vm9 }
0x1a67   :  { %6093 = vmatprep.subr.bf16.mxu0 %v6347_v14 }
0x1a69   :  { %6086 = vmatmul.mubr.msk.bf16.vlgmr.msra.gmra.mrb[80].mxu0 %vm7749_vm13, %v4742_v58  ;;  %vm7765_vm13 = vmmov %vm7755_vm9 }
0x1a6a   :  { %6089 = vmatprep.mubr.msk.bf16.mxu0 %vm7750_vm12, %v4744_v44  ;;  %6094 = vmatpush3.bf16.msra.mxu0 %v6347_v14  ;;  %vm7766_vm12 = vmmov %vm7747_vm8 }
0x1a6b   :  { %6155 = vmatprep.subr.msk.bf16.mxu0 %vm7756_vm11, %v6348_v11  ;;  %vm7769_vm11 = vmmov %vm7764_vm10 }
0x1a6e   :  { %6096 = vmatpush3.bf16.msra.mxu0 %v4850_v40 }
0x1a71   :  { %6090 = vmatmul.mubr.msk.bf16.gmra.mrb[84].mxu0 %vm7755_vm9, %v4746_v45 }
0x1b34   :  { %v6049_v9 = vpop.f32.mrb[52].mxu1  ;;  %v6055_v46 = vpop.f32.mrb[76].mxu0 }
0x1b35   :  { %v4188_v6 = vpop.f32.mrb[53].mxu1  ;;  %v4243_v36 = vpop.f32.mrb[77].mxu0 }
0x1b36   :  { %v6050_v37 = vpop.f32.mrb[54].mxu1  ;;  %v6056_v29 = vpop.f32.mrb[78].mxu0 }
0x1b37   :  { %v4275_v57 = vpack.c.bf16 %v6050_v37, %v6049_v9  ;;  %v4277_v60 = vpack.c.bf16 %v6056_v29, %v6055_v46  ;;  %v4191_v62 = vpop.f32.mrb[55].mxu1  ;;  %v4246_v5 = vpop.f32.mrb[79].mxu0 }
0x1b38   :  { %v4274_v19 = vpack.c.bf16 %v4191_v62, %v4188_v6  ;;  %v4276_v24 = vpack.c.bf16 %v4246_v5, %v4243_v36 }
0x1b3a   :  { %6057 = vmatprep.subr.bf16.mxu1 %v4276_v24 }
0x1b3b   :  { %6058 = vmatpush3.bf16.msra.mxu1 %v4276_v24 }
0x1b3c   :  { %6059 = vmatprep.subr.bf16.mxu1 %v4277_v60 }
0x1b3f   :  { %6060 = vmatpush3.bf16.msra.mxu1 %v4277_v60 }
0x1b40   :  { %6069 = vmatprep.subr.bf16.mxu1 %v4274_v19 }
0x1b42   :  { %6062 = vmatmul.mubr.msk.bf16.vlgmr.msra.gmra.mrb[56].mxu1 %vm861_vm15, %v6340_v25 }
0x1b43   :  { %6070 = vmatpush3.bf16.msra.mxu1 %v4274_v19  ;;  %6065 = vmatprep.mubr.msk.bf16.mxu1 %vm861_vm15, %v6341_v27 }
0x1b44   :  { %6071 = vmatprep.subr.bf16.mxu1 %v4275_v57 }
0x1b47   :  { %6072 = vmatpush3.bf16.msra.mxu1 %v4275_v57 }
0x1b4a   :  { %6066 = vmatmul.mubr.msk.bf16.gmra.mrb[60].mxu1 %vm861_vm15, %v6342_v35 }
0x1b4b   :  { %6073 = vmatprep.mubr.msk.bf16.mxu1 %vm861_vm15, %v6343_v56 }
0x1b52   :  { %6074 = vmatmul.mubr.msk.bf16.vlgmr.msra.gmra.mrb[56].mxu1 %vm861_vm15, %v6344_v32  ;;  %v7760_v32 = vld [vmem:[#allocation6_spill] sm:$0xff] }
0x1b53   :  { %6077 = vmatprep.mubr.msk.bf16.mxu1 %vm861_vm15, %v6345_v42  ;;  %vm7761_vm5 = vcmp.eq.s32.totalorder %v7760_v32, 63 }
0x1b5a   :  { %6078 = vmatmul.mubr.msk.bf16.gmra.mrb[60].mxu1 %vm861_vm15, %v6346_v59  ;;  %vm7758_vm15 = vcmp.eq.s32.totalorder %v6429_v1, 0 }
0x1c25   :  { %v6075_v17 = vpop.f32.mrb[56].mxu1 }
0x1c26   :  { %v4478_v33 = vadd.f32 %v6075_v17, %v5529_v16  ;;  %v4441_v55 = vpop.f32.mrb[57].mxu1 }
0x1c27   :  { %v4476_v49 = vadd.f32 %v5529_v16, %v4441_v55  ;;  %v6076_v51 = vpop.f32.mrb[58].mxu1 }
0x1c28   :  { %v4479_v13 = vadd.f32 %v6076_v51, %v5529_v16  ;;  %v4444_v0 = vpop.f32.mrb[59].mxu1  ;;  %v4502_v52 = vrot.slane %v4478_v33, 7  ;;  %v4526_v23 = vrot.slane %v4478_v33, 1 }
0x1c29   :  { %v4499_v47 = vrot.slane %v4476_v49, 7  ;;  %v4477_v3 = vadd.f32 %v5529_v16, %v4444_v0  ;;  %v4523_v7 = vrot.slane %v4476_v49, 1 }
0x1c2a   :  { %v4504_v43 = vrot.slane %v4479_v13, 7  ;;  %v4528_v28 = vrot.slane %v4479_v13, 1  ;;  %v4568_v10 = vpack.c.bf16 %v4479_v13, %v4478_v33 }
0x1c2b   :  { %v4522_v15 = vsel %vm54_vm0, 0.0, %v4499_v47  ;;  %v4500_v30 = vrot.slane %v4477_v3, 7  ;;  %v4524_v4 = vrot.slane %v4477_v3, 1  ;;  %v4567_v12 = vpack.c.bf16 %v4477_v3, %v4476_v49 }
0x1c2c   :  { %4581 = vrot.lane.b32.xlu0 %v4568_v10, %s6378_s0  ;;  %v4529_v54 = vsel %vm79_vm1, %v4526_v23, %v4528_v28  ;;  %v4505_v41 = vsel %vm54_vm0, %v4502_v52, %v4504_v43  ;;  %v4547_v8 = vsel %vm7758_vm15, 0.0, %v4522_v15  ;;  %vm7771_vm15 = vmmov %vm7768_vm3 }
0x1c2d   :  { %4579 = vrot.lane.b32.xlu1 %v4567_v12, %s6378_s0  ;;  %v6079_v21 = vpop.f32.mrb[60].mxu1  ;;  %v4525_v34 = vsel %vm79_vm1, %v4523_v7, %v4524_v4  ;;  %v4527_v22 = vsel %vm79_vm1, %v4524_v4, %v4526_v23  ;;  %v4503_v38 = vsel %vm54_vm0, %v4500_v30, %v4502_v52  ;;  %v4501_v31 = vsel %vm54_vm0, %v4499_v47, %v4500_v30 }
0x1c2e   :  { %v4482_v58 = vadd.f32 %v6079_v21, %v5529_v16  ;;  %v4457_v63 = vpop.f32.mrb[61].mxu1  ;;  %v4571_v39 = vpack.c.bf16 %v4527_v22, %v4525_v34  ;;  %v4564_v18 = vpack.c.bf16 %v4505_v41, %v4503_v38  ;;  %v4563_v44 = vpack.c.bf16 %v4501_v31, %v4547_v8  ;;  %v6349_v41 = vld [vmem:[#allocation3 + $0x540] sm:$0xff]   ;;  %v5542_v8 = vld [vmem:[%s7636_s2 + $0x14] ss:$0 sm:$0xff] }
0x1c2f   :  { %v4480_v48 = vadd.f32 %v5529_v16, %v4457_v63  ;;  %v6080_v50 = vpop.f32.mrb[62].mxu1  ;;  %6105 = vmatprep.subr.bf16.mxu1 %v6349_v41 }
0x1c30   :  { %v4483_v61 = vadd.f32 %v6080_v50, %v5529_v16  ;;  %v4460_v20 = vpop.f32.mrb[63].mxu1  ;;  %v4510_v26 = vrot.slane %v4482_v58, 7  ;;  %v4534_v46 = vrot.slane %v4482_v58, 1  ;;  %6106 = vmatpush3.bf16.msra.mxu1 %v6349_v41 }
0x1c31   :  { %v4506_v45 = vrot.slane %v4480_v48, 7  ;;  %v4530_v53 = vrot.slane %v4480_v48, 1  ;;  %v4481_v9 = vadd.f32 %v5529_v16, %v4460_v20  ;;  %4591 = vrot.lane.b32.xlu1 %v4571_v39, %s6379_s24  ;;  %v7762_v16 = vld [vmem:[#allocation7_spill] sm:$0xff] }
0x1c32   :  { %v4512_v6 = vrot.slane %v4483_v61, 7  ;;  %v4536_v36 = vrot.slane %v4483_v61, 1  ;;  %v4570_v37 = vpack.c.bf16 %v4483_v61, %v4482_v58  ;;  %vm7763_vm6 = vcmp.eq.s32.totalorder %v7762_v16, 32  ;;  %v6350_v58 = vld [vmem:[#allocation3 + $0x548] ss:$0 sps:$4 sm:$0xff]  }
0x1c33   :  { %v4508_v29 = vrot.slane %v4481_v9, 7  ;;  %v4532_v57 = vrot.slane %v4481_v9, 1  ;;  %v4569_v60 = vpack.c.bf16 %v4481_v9, %v4480_v48  ;;  %v4531_v62 = vsel %vm79_vm1, %v4528_v28, %v4530_v53 }
0x1c34   :  { %v4558_v5 = vsel %vm7759_vm2, 0.0, %v4531_v62  ;;  %v4537_v19 = vsel %vm79_vm1, %v4534_v46, %v4536_v36  ;;  %v4546_v24 = vsel %vm79_vm1, %v4536_v36, 0.0  ;;  %v4507_v25 = vsel %vm54_vm0, %v4504_v43, %v4506_v45  ;;  %vm7772_vm2 = vmmov %vm7764_vm10 }
0x1c35   :  { %4583 = vrot.lane.b32.xlu1 %v4569_v60, %s6378_s0  ;;  %v4572_v27 = vpack.c.bf16 %v4558_v5, %v4529_v54  ;;  %v4533_v35 = vsel %vm79_vm1, %v4530_v53, %v4532_v57  ;;  %v4535_v56 = vsel %vm79_vm1, %v4532_v57, %v4534_v46  ;;  %v4562_v42 = vsel %vm7761_vm5, 0.0, %v4546_v24  ;;  %vm7773_vm5 = vmmov %vm7770_vm4 }
0x1c36   :  { %v4573_v59 = vpack.c.bf16 %v4535_v56, %v4533_v35  ;;  %v4574_v14 = vpack.c.bf16 %v4562_v42, %v4537_v19  ;;  %v4551_v17 = vsel %vm7763_vm6, 0.0, %v4507_v25  ;;  %v4509_v11 = vsel %vm54_vm0, %v4506_v45, %v4508_v29 }
0x1c37   :  { %4593 = vrot.lane.b32.xlu0 %v4572_v27, %s6379_s24  ;;  %v4565_v33 = vpack.c.bf16 %v4509_v11, %v4551_v17  ;;  %v4511_v55 = vsel %vm54_vm0, %v4508_v29, %v4510_v26  ;;  %v4513_v49 = vsel %vm54_vm0, %v4510_v26, %v4512_v6  ;;  %vm7774_vm6 = vcmask 1043456  }
0x1c38   :  { %v4566_v51 = vpack.c.bf16 %v4513_v49, %v4511_v55  ;;  %6156 = vmatprep.subr.msk.bf16.mxu1 %vm7774_vm6, %v6350_v58 }
0x1c39   :  { %4595 = vrot.lane.b32.xlu1 %v4573_v59, %s6379_s24 }
0x1c3b   :  { %4585 = vrot.lane.b32.xlu0 %v4570_v37, %s6378_s0 }
0x1c3f   :  { %4597 = vrot.lane.b32.xlu0 %v4574_v14, %s6379_s24 }
0x1c9e   :  { %v4582_v23 = vpop.permute.xlu0 %4581 }
0x1c9f   :  { %v4580_v13 = vpop.permute.xlu1 %4579  ;;  %v4604_v3 = vsel %vm7766_vm12, %v4564_v18, %v4582_v23  ;;  %vm7778_vm12 = vmmov %vm7774_vm6 }
0x1ca0   :  { %v4601_v0 = vsel %vm7747_vm8, %v4563_v44, %v4580_v13  ;;  %vm7775_vm8 = vmmov %vm7774_vm6 }
0x1ca1   :  { %v5091_v61 = vsel %vm7775_vm8, %v6350_v58, 0 }
0x1ca2   :  { %6108 = vmatpush3.bf16.msra.mxu1 %v5091_v61 }
0x1ca3   :  { %v4592_v40 = vpop.permute.xlu1 %4591 }
0x1ca4   :  { %v4612_v52 = vsel %vm7764_vm10, %v4601_v0, %v4592_v40  ;;  %vm7776_vm10 = vcmp.eq.s32.totalorder %v6429_v1, 0 }
0x1ca5   :  { %6097 = vmatprep.mubr.msk.bf16.mxu0 %vm7765_vm13, %v4612_v52  ;;  %vm7777_vm13 = vcmp.eq.s32.totalorder %v6432_v2, 31 }
0x1ca7   :  { %v4584_v47 = vpop.permute.xlu1 %4583 }
0x1ca8   :  { %v4607_v28 = vsel %vm7768_vm3, %v4565_v33, %v4584_v47  ;;  %vm7780_vm3 = vcmp.eq.s32.totalorder %v7762_v16, 32 }
0x1ca9   :  { %v4594_v7 = vpop.permute.xlu0 %4593 }
0x1caa   :  { %v4614_v43 = vsel %vm7767_vm14, %v4604_v3, %v4594_v7  ;;  %vm7779_vm14 = vcmp.eq.s32.totalorder %v7760_v32, 63 }
0x1cab   :  { %6098 = vmatmul.mubr.msk.bf16.vlgmr.msra.gmra.mrb[80].mxu0 %vm7755_vm9, %v4614_v43  ;;  %v4596_v10 = vpop.permute.xlu1 %4595  ;;  %vm7782_vm9 = vmmov %vm7772_vm2 }
0x1cac   :  { %v4616_v15 = vsel %vm7769_vm11, %v4607_v28, %v4596_v10  ;;  %vm7783_vm11 = vmmov %vm7770_vm4 }
0x1cad   :  { %v4586_v30 = vpop.permute.xlu0 %4585  ;;  %6101 = vmatprep.mubr.msk.bf16.mxu0 %vm7770_vm4, %v4616_v15 }
0x1cae   :  { %v4610_v4 = vsel %vm7771_vm15, %v4566_v51, %v4586_v30 }
0x1cb1   :  { %v4598_v12 = vpop.permute.xlu0 %4597 }
0x1cb2   :  { %v4618_v54 = vsel %vm7772_vm2, %v4610_v4, %v4598_v12 }
0x1cb3   :  { %6102 = vmatmul.mubr.msk.bf16.gmra.mrb[84].mxu0 %vm7773_vm5, %v4618_v54  ;;  %v5166_v54 = vld [vmem:[#allocation3 + $0x550] sm:$0xf] }
0x1cb4   :  { %6157 = vmatprep.subr.msk.bf16.mxu0 %vm7778_vm12, %v5166_v54 }
0x1d7e   :  { %v6099_v21 = vpop.f32.mrb[80].mxu0 }
0x1d7f   :  { %v4923_v34 = vadd.f32 %v6099_v21, %v5542_v8  ;;  %v4886_v22 = vpop.f32.mrb[81].mxu0 }
0x1d80   :  { %v4921_v38 = vadd.f32 %v5542_v8, %v4886_v22  ;;  %v6100_v31 = vpop.f32.mrb[82].mxu0 }
0x1d81   :  { %v4931_v63 = vmax.f32 %v4923_v34, 0.0  ;;  %v4924_v39 = vadd.f32 %v6100_v31, %v5542_v8  ;;  %v4889_v18 = vpop.f32.mrb[83].mxu0 }
0x1d82   :  { %v4929_v44 = vmax.f32 %v4921_v38, 0.0  ;;  %v4922_v48 = vadd.f32 %v5542_v8, %v4889_v18 }
0x1d83   :  { %v4932_v50 = vmax.f32 %v4924_v39, 0.0  ;;  %v4952_v20 = vrot.slane %v4931_v63, 7  ;;  %v4976_v26 = vrot.slane %v4931_v63, 1 }
0x1d84   :  { %v4949_v45 = vrot.slane %v4929_v44, 7  ;;  %v4930_v53 = vmax.f32 %v4922_v48, 0.0  ;;  %v4973_v9 = vrot.slane %v4929_v44, 1 }
0x1d85   :  { %v4954_v46 = vrot.slane %v4932_v50, 7  ;;  %v4978_v6 = vrot.slane %v4932_v50, 1  ;;  %v5018_v36 = vpack.c.bf16 %v4932_v50, %v4931_v63 }
0x1d86   :  { %v4972_v37 = vsel %vm54_vm0, 0.0, %v4949_v45  ;;  %v4950_v29 = vrot.slane %v4930_v53, 7  ;;  %v4974_v57 = vrot.slane %v4930_v53, 1  ;;  %v6103_v60 = vpop.f32.mrb[84].mxu0  ;;  %v5017_v62 = vpack.c.bf16 %v4930_v53, %v4929_v44 }
0x1d87   :  { %v4927_v5 = vadd.f32 %v6103_v60, %v5542_v8  ;;  %5031 = vrot.lane.b32.xlu0 %v5018_v36, %s6378_s0  ;;  %v4902_v19 = vpop.f32.mrb[85].mxu0  ;;  %v4979_v24 = vsel %vm79_vm1, %v4976_v26, %v4978_v6  ;;  %v7547_v25 = vsel %vm54_vm0, %v4952_v20, %v4954_v46  ;;  %v4997_v27 = vsel %vm7776_vm10, 0.0, %v4972_v37 }
0x1d88   :  { %v4925_v35 = vadd.f32 %v5542_v8, %v4902_v19  ;;  %5029 = vrot.lane.b32.xlu1 %v5017_v62, %s6378_s0  ;;  %v6104_v56 = vpop.f32.mrb[86].mxu0  ;;  %v4975_v42 = vsel %vm79_vm1, %v4973_v9, %v4974_v57  ;;  %v4977_v59 = vsel %vm79_vm1, %v4974_v57, %v4976_v26  ;;  %v4953_v14 = vsel %vm54_vm0, %v4950_v29, %v4952_v20 }
0x1d89   :  { %v4935_v17 = vmax.f32 %v4927_v5, 0.0  ;;  %v4928_v11 = vadd.f32 %v6104_v56, %v5542_v8  ;;  %v4905_v33 = vpop.f32.mrb[87].mxu0  ;;  %v5021_v55 = vpack.c.bf16 %v4977_v59, %v4975_v42  ;;  %v5014_v49 = vpack.c.bf16 %v7547_v25, %v4953_v14 }
0x1d8a   :  { %v4933_v51 = vmax.f32 %v4925_v35, 0.0  ;;  %v4926_v13 = vadd.f32 %v5542_v8, %v4905_v33  ;;  %v4951_v1 = vsel %vm54_vm0, %v4949_v45, %v4950_v29  ;;  %v5189_v19 = vsel %vm7778_vm12, %v5166_v54, 0 }
0x1d8b   :  { %v4936_v0 = vmax.f32 %v4928_v11, 0.0  ;;  %v5013_v40 = vpack.c.bf16 %v4951_v1, %v4997_v27  ;;  %v4960_v52 = vrot.slane %v4935_v17, 7  ;;  %v4984_v7 = vrot.slane %v4935_v17, 1  ;;  %6118 = vmatpush3.bf16.msra.mxu0 %v5189_v19 }
0x1d8c   :  { %v4956_v23 = vrot.slane %v4933_v51, 7  ;;  %v4980_v47 = vrot.slane %v4933_v51, 1  ;;  %v4934_v3 = vmax.f32 %v4926_v13, 0.0  ;;  %5041 = vrot.lane.b32.xlu1 %v5021_v55, %s6379_s24 }
0x1d8d   :  { %v4962_v43 = vrot.slane %v4936_v0, 7  ;;  %v4986_v28 = vrot.slane %v4936_v0, 1  ;;  %v5020_v10 = vpack.c.bf16 %v4936_v0, %v4935_v17 }
0x1d8e   :  { %v4958_v15 = vrot.slane %v4934_v3, 7  ;;  %v4982_v30 = vrot.slane %v4934_v3, 1  ;;  %v5019_v4 = vpack.c.bf16 %v4934_v3, %v4933_v51  ;;  %v4981_v12 = vsel %vm79_vm1, %v4978_v6, %v4980_v47 }
0x1d8f   :  { %v5008_v41 = vsel %vm7777_vm13, 0.0, %v4981_v12  ;;  %v4987_v8 = vsel %vm79_vm1, %v4984_v7, %v4986_v28  ;;  %v4996_v21 = vsel %vm79_vm1, %v4986_v28, 0.0  ;;  %v4957_v34 = vsel %vm54_vm0, %v4954_v46, %v4956_v23  ;;  %v5550_v12 = vld [vmem:[%s7636_s2 + $0x16] ss:$0 sm:$0xff] }
0x1d90   :  { %5033 = vrot.lane.b32.xlu1 %v5019_v4, %s6378_s0  ;;  %v5022_v22 = vpack.c.bf16 %v5008_v41, %v4979_v24  ;;  %v4983_v38 = vsel %vm79_vm1, %v4980_v47, %v4982_v30  ;;  %v4985_v31 = vsel %vm79_vm1, %v4982_v30, %v4984_v7  ;;  %v5012_v58 = vsel %vm7779_vm14, 0.0, %v4996_v21  ;;  %vm7781_vm1 = vmmov %vm7771_vm15  ;;  %v5543_v24 = vld [vmem:[%s7636_s2 + $0x15] ss:$0 sm:$0xff] }
0x1d91   :  { %v5023_v2 = vpack.c.bf16 %v4985_v31, %v4983_v38  ;;  %v5024_v63 = vpack.c.bf16 %v5012_v58, %v4987_v8  ;;  %v5001_v39 = vsel %vm7780_vm3, 0.0, %v4957_v34  ;;  %v4959_v18 = vsel %vm54_vm0, %v4956_v23, %v4958_v15  ;;  %vm7784_vm4 = vmmov %vm7781_vm1 }
0x1d92   :  { %5043 = vrot.lane.b32.xlu0 %v5022_v22, %s6379_s24  ;;  %v5015_v44 = vpack.c.bf16 %v4959_v18, %v5001_v39  ;;  %v4961_v48 = vsel %vm54_vm0, %v4958_v15, %v4960_v52  ;;  %v4963_v50 = vsel %vm54_vm0, %v4960_v52, %v4962_v43  ;;  %vm7785_vm0 = vmmov %vm7772_vm2 }
0x1d93   :  { %v5016_v61 = vpack.c.bf16 %v4963_v50, %v4961_v48  ;;  %vm7786_vm15 = vmmov %vm7781_vm1 }
0x1d94   :  { %5045 = vrot.lane.b32.xlu1 %v5023_v2, %s6379_s24  ;;  %vm7787_vm2 = vmmov %vm7773_vm5 }
0x1d95   :  { %vm7788_vm5 = vmmov %vm7785_vm0 }
0x1d96   :  { %5035 = vrot.lane.b32.xlu0 %v5020_v10, %s6378_s0  ;;  %vm7789_vm6 = vmmov %vm7787_vm2 }
0x1d97   :  { %vm7790_vm8 = vmmov %vm7781_vm1 }
0x1d98   :  { %vm7791_vm10 = vmmov %vm7785_vm0 }
0x1d99   :  { %vm7792_vm13 = vmmov %vm7787_vm2 }
0x1d9a   :  { %5047 = vrot.lane.b32.xlu0 %v5024_v63, %s6379_s24  ;;  %vm7793_vm14 = vmmov %vm7781_vm1 }
0x1d9b   :  { %vm7794_vm3 = vmmov %vm7781_vm1 }
0x1df9   :  { %v5032_v45 = vpop.permute.xlu0 %5031 }
0x1dfa   :  { %v5030_v32 = vpop.permute.xlu1 %5029  ;;  %v5054_v9 = vsel %vm7784_vm4, %v5014_v49, %v5032_v45 }
0x1dfb   :  { %v5051_v16 = vsel %vm7781_vm1, %v5013_v40, %v5030_v32 }
0x1dfe   :  { %v5042_v20 = vpop.permute.xlu1 %5041 }
0x1dff   :  { %v5062_v26 = vsel %vm7782_vm9, %v5051_v16, %v5042_v20  ;;  %vm7795_vm9 = vmmov %vm7781_vm1 }
0x1e00   :  { %6109 = vmatprep.mubr.msk.bf16.mxu1 %vm7783_vm11, %v5062_v26 }
0x1e02   :  { %v5034_v53 = vpop.permute.xlu1 %5033 }
0x1e03   :  { %v5057_v36 = vsel %vm7786_vm15, %v5015_v44, %v5034_v53 }
0x1e04   :  { %v5044_v46 = vpop.permute.xlu0 %5043 }
0x1e05   :  { %v5064_v6 = vsel %vm7785_vm0, %v5054_v9, %v5044_v46 }
0x1e06   :  { %6110 = vmatmul.mubr.msk.bf16.vlgmr.msra.gmra.mrb[64].mxu1 %vm7787_vm2, %v5064_v6  ;;  %v5046_v37 = vpop.permute.xlu1 %5045 }
0x1e07   :  { %v5066_v29 = vsel %vm7788_vm5, %v5057_v36, %v5046_v37 }
0x1e08   :  { %v5036_v57 = vpop.permute.xlu0 %5035  ;;  %6113 = vmatprep.mubr.msk.bf16.mxu1 %vm7789_vm6, %v5066_v29 }
0x1e09   :  { %v5060_v60 = vsel %vm7790_vm8, %v5016_v61, %v5036_v57 }
0x1e0c   :  { %v5048_v62 = vpop.permute.xlu0 %5047 }
0x1e0d   :  { %v5068_v5 = vsel %vm7791_vm10, %v5060_v60, %v5048_v62 }
0x1e0e   :  { %6114 = vmatmul.mubr.msk.bf16.gmra.mrb[68].mxu1 %vm7792_vm13, %v5068_v5 }
0x1ed9   :  { %v6111_v25 = vpop.f32.mrb[64].mxu1 }
0x1eda   :  { %v5136_v27 = vadd.f32 %v6111_v25, %v5543_v24  ;;  %v5127_v35 = vpop.f32.mrb[65].mxu1 }
0x1edb   :  { %v5128_v56 = vadd.f32 %v5543_v24, %v5127_v35  ;;  %v6112_v42 = vpop.f32.mrb[66].mxu1 }
0x1edc   :  { %v5139_v59 = vadd.f32 %v6112_v42, %v5543_v24  ;;  %v5130_v14 = vpop.f32.mrb[67].mxu1  ;;  %v5160_v11 = vmax.f32 %v5136_v27, 0.0 }
0x1edd   :  { %v5131_v17 = vadd.f32 %v5543_v24, %v5130_v14  ;;  %v5158_v55 = vmax.f32 %v5128_v56, 0.0 }
0x1ede   :  { %v5161_v33 = vmax.f32 %v5139_v59, 0.0 }
0x1edf   :  { %v5159_v49 = vmax.f32 %v5131_v17, 0.0 }
0x1ee0   :  { %v5169_v51 = vpack.c.bf16 %v5161_v33, %v5160_v11 }
0x1ee1   :  { %v5168_v13 = vpack.c.bf16 %v5159_v49, %v5158_v55  ;;  %v6115_v1 = vpop.f32.mrb[68].mxu1 }
0x1ee2   :  { %v5152_v0 = vadd.f32 %v6115_v1, %v5543_v24  ;;  %v5143_v40 = vpop.f32.mrb[69].mxu1 }
0x1ee3   :  { %v5144_v52 = vadd.f32 %v5543_v24, %v5143_v40  ;;  %v6116_v23 = vpop.f32.mrb[70].mxu1  ;;  %6119 = vmatprep.mubr.msk.bf16.mxu0 %vm7793_vm14, %v5168_v13 }
0x1ee4   :  { %v5155_v47 = vadd.f32 %v6116_v23, %v5543_v24  ;;  %v5146_v3 = vpop.f32.mrb[71].mxu1  ;;  %6120 = vmatmul.mubr.msk.bf16.vlgmr.msra.gmra.mrb[88].mxu0 %vm7794_vm3, %v5169_v51  ;;  %v5164_v43 = vmax.f32 %v5152_v0, 0.0 }
0x1ee5   :  { %v5147_v7 = vadd.f32 %v5543_v24, %v5146_v3  ;;  %v5162_v10 = vmax.f32 %v5144_v52, 0.0 }
0x1ee6   :  { %v5165_v28 = vmax.f32 %v5155_v47, 0.0 }
0x1ee7   :  { %v5163_v15 = vmax.f32 %v5147_v7, 0.0 }
0x1ee8   :  { %v5171_v30 = vpack.c.bf16 %v5165_v28, %v5164_v43 }
0x1ee9   :  { %v5170_v4 = vpack.c.bf16 %v5163_v15, %v5162_v10 }
0x1eeb   :  { %6123 = vmatprep.mubr.msk.bf16.mxu0 %vm7781_vm1, %v5170_v4 }
0x1eec   :  { %6124 = vmatmul.mubr.msk.bf16.gmra.mrb[92].mxu0 %vm7795_vm9, %v5171_v30 }
0x1fb7   :  { %v6121_v54 = vpop.f32.mrb[88].mxu0 }
0x1fb8   :  { %v5234_v41 = vadd.f32 %v6121_v54, %v5550_v12  ;;  %v5225_v8 = vpop.f32.mrb[89].mxu0 }
0x1fb9   :  { %v5226_v21 = vadd.f32 %v5550_v12, %v5225_v8  ;;  %v6122_v34 = vpop.f32.mrb[90].mxu0 }
0x1fba   :  { %5258 = vst.msk [vmem:[%s7639_s5 + $0x10] sm:$0xff] %vm245_vm7, %v5234_v41  ;;  %v5237_v22 = vadd.f32 %v6122_v34, %v5550_v12  ;;  %v5228_v38 = vpop.f32.mrb[91].mxu0 }
0x1fbb   :  { %5256 = vst.msk [vmem:[%s7639_s5] sm:$0xff] %vm245_vm7, %v5226_v21  ;;  %v5229_v31 = vadd.f32 %v5550_v12, %v5228_v38 }
0x1fbc   :  { %5259 = vst.msk [vmem:[%s7639_s5 + $0x18] sm:$0xff] %vm245_vm7, %v5237_v22 }
0x1fbd   :  { %5257 = vst.msk [vmem:[%s7639_s5 + $0x8] sm:$0xff] %vm245_vm7, %v5229_v31 }
0x1fbf   :  { %v6125_v58 = vpop.f32.mrb[92].mxu0 }
0x1fc0   :  { %v5250_v2 = vadd.f32 %v6125_v58, %v5550_v12  ;;  %v5241_v63 = vpop.f32.mrb[93].mxu0 }
0x1fc1   :  { %v5242_v39 = vadd.f32 %v5550_v12, %v5241_v63  ;;  %v6126_v18 = vpop.f32.mrb[94].mxu0 }
0x1fc2   :  { %5262 = vst.msk [vmem:[%s7639_s5 + $0x30] sm:$0xff] %vm245_vm7, %v5250_v2  ;;  %v5253_v44 = vadd.f32 %v6126_v18, %v5550_v12  ;;  %v5244_v48 = vpop.f32.mrb[95].mxu0 }
0x1fc3   :  { %5260 = vst.msk [vmem:[%s7639_s5 + $0x20] sm:$0xff] %vm245_vm7, %v5242_v39  ;;  %v5245_v50 = vadd.f32 %v5550_v12, %v5244_v48 }
0x1fc4   :  { %5263 = vst.msk [vmem:[%s7639_s5 + $0x38] sm:$0xff] %vm245_vm7, %v5253_v44 }
0x1fc5   :  { %5261 = vst.msk [vmem:[%s7639_s5 + $0x28] sm:$0xff] %vm245_vm7, %v5245_v50 }
0x1fc6   :  { %5268 = vsyncpa [#allocation4], 1 }

</bundles_post_ra>
